<compile_context>
chip_gen: v5e
topology: v5e:2x2
jax: 0.10.0
libtpu: 0.0.40
codegen_flags: <defaults>
</compile_context>

<pallas_src>
import functools

import jax
import jax.numpy as jnp
from jax.experimental import pallas as pl
from jax.experimental.pallas import tpu as pltpu


# --------------------------------------------------------------------------- #
# Kernel
# --------------------------------------------------------------------------- #
def _mlp_kernel(num_layers, add_last, x_ref, w_ref, b_ref, o_ref):
    """All layers of one batch tile, uniform lane-dense width P everywhere."""
    x = x_ref[...]                                    # (bt, P), MXU operand dtype
    b_all = b_ref[...]                                # (L, P)  float32
    for layer in range(num_layers):
        w = w_ref[layer]                              # (P, P), static index -> VMEM view
        # MXU matmul, f32 accumulation.  x.astype is a no-op in the f32 path.
        y = jnp.dot(x.astype(w.dtype), w,
                    preferred_element_type=jnp.float32) + b_all[layer]
        x = jnp.tanh(y) if layer < num_layers - 1 else y
    if add_last:
        x = jnp.logaddexp(x, 0.0)                     # Softplus, numerically stable
    o_ref[...] = x.astype(o_ref.dtype)


# --------------------------------------------------------------------------- #
# Helpers
# --------------------------------------------------------------------------- #
def _round_up(v, m):
    return ((v + m - 1) // m) * m


def _tpu_info():
    """Best-effort (physical VMEM bytes per core, #TensorCores per chip)."""
    vmem_bytes = 64 * 1024 * 1024     # conservative: min across v5e/v6e/v7x
    num_tc = 1
    try:
        info = pltpu.get_tpu_info()
        cap = int(getattr(info, "vmem_capacity_bytes", 0) or 0)
        if cap > 0:
            vmem_bytes = cap
    except Exception:
        pass
    try:
        kind = jax.devices()[0].device_kind.lower()
        if "v7" in kind or "7x" in kind:
            num_tc = 2                # v7x: 2 TensorCores/chip
    except Exception:
        pass
    return vmem_bytes, num_tc


def _resident_spec(shape, single_buffer):
    """BlockSpec for a buffer that is identical for every grid step."""
    ndim = len(shape)
    index_map = lambda i: (0,) * ndim
    if single_buffer:
        # Constant-index blocks are fetched once; single-buffer to halve their
        # VMEM footprint.  Narrow fallback only covers spec construction.
        try:
            return pl.BlockSpec(shape, index_map,
                                pipeline_mode=pl.Buffered(buffer_count=1))
        except (TypeError, AttributeError):
            pass
    return pl.BlockSpec(shape, index_map)


# --------------------------------------------------------------------------- #
# Wrapper
# --------------------------------------------------------------------------- #
def mlp_forward(x, params, *, addLast=False, batch_tile=None,
                mxu_dtype=jnp.float32, single_buffer_weights=True,
                vmem_limit_bytes=None):
    """x: [B, dim_in]; params: list of (W [fan_in, fan_out], b [fan_out])."""
    B, dim_in = x.shape
    num_layers = len(params)
    dims = [dim_in] + [w.shape[1] for (w, _) in params]
    dim_out = dims[-1]

    # Uniform lane-dense width: pad every fan-in/fan-out to P (multiple of 128).
    P = _round_up(max(dims), 128)

    # Pack all zero-padded weights into one (L, P, P) buffer (pre-cast to the
    # MXU operand dtype) and all biases into one (L, P) f32 buffer.
    w_pack = jnp.zeros((num_layers, P, P), mxu_dtype)
    b_pack = jnp.zeros((num_layers, P), jnp.float32)
    for l, (w, b) in enumerate(params):
        fi, fo = w.shape
        w_pack = w_pack.at[l, :fi, :fo].set(w.astype(mxu_dtype))
        b_pack = b_pack.at[l, :fo].set(b.astype(jnp.float32))

    # Lane-dense input tile; pre-cast so no per-step weight/input casts remain.
    x_pad = jnp.zeros((B, P), mxu_dtype).at[:, :dim_in].set(x.astype(mxu_dtype))

    vmem_cap, num_tc = _tpu_info()
    vmem_budget = int(0.8 * vmem_cap)          # generation-aware headroom

    # Batch tile: single grid step on single-TC chips (v5e/v6e); >= num_tc
    # "parallel" blocks on v7x so both TensorCores get work.
    if batch_tile is None:
        batch_tile = B if num_tc == 1 else _round_up(pl.cdiv(B, num_tc), 8)
    batch_tile = min(batch_tile, B)
    if batch_tile < B:
        batch_tile = max(8, _round_up(batch_tile, 8))

    w_isz = jnp.dtype(mxu_dtype).itemsize
    o_isz = jnp.dtype(x.dtype).itemsize
    resident = num_layers * P * P * w_isz + num_layers * P * 4
    if not single_buffer_weights:
        resident *= 2

    def _vmem_need(bt):
        x_tile = 2 * bt * P * w_isz            # double-buffered input tile
        o_tile = 2 * bt * P * o_isz            # double-buffered output tile
        act = 4 * bt * P * 4                   # activation working set + slack
        return x_tile + o_tile + act + resident

    # Shrink the batch tile only if the estimate would not fit the budget.
    while _vmem_need(batch_tile) > vmem_budget and batch_tile > 8:
        batch_tile = max(8, _round_up(batch_tile // 2, 8))

    if vmem_limit_bytes is None:
        vmem_limit_bytes = int(min(vmem_budget,
                                   max(2 * _vmem_need(batch_tile),
                                       32 * 1024 * 1024)))

    in_specs = [
        pl.BlockSpec((batch_tile, P), lambda i: (i, 0)),
        _resident_spec((num_layers, P, P), single_buffer_weights),
        _resident_spec((num_layers, P), single_buffer_weights),
    ]

    kernel = functools.partial(_mlp_kernel, num_layers, addLast)
    out_pad = pl.pallas_call(
        kernel,
        out_shape=jax.ShapeDtypeStruct((B, P), x.dtype),
        grid_spec=pltpu.PrefetchScalarGridSpec(
            num_scalar_prefetch=0,
            grid=(pl.cdiv(B, batch_tile),),
            in_specs=in_specs,
            out_specs=pl.BlockSpec((batch_tile, P), lambda i: (i, 0)),
        ),
        compiler_params=pltpu.CompilerParams(
            dimension_semantics=("parallel",),
            vmem_limit_bytes=vmem_limit_bytes,
        ),
    )(x_pad, w_pack, b_pack)

    # Lane-dense kernel output -> logical output.
    return out_pad[:, :dim_out]


# --------------------------------------------------------------------------- #
# Parameter init (matches nn.init in the module) + pure-JAX reference
# --------------------------------------------------------------------------- #
def init_mlp_params(key, dim_in, dim_out, dim_hidden=64, num_hidden=0):
    if num_hidden == 0:
        shapes = [(dim_in, dim_out)]
    else:
        shapes = [(dim_in, dim_hidden)]
        shapes += [(dim_hidden, dim_hidden) for _ in range(num_hidden - 1)]
        shapes += [(dim_hidden, dim_out)]
    params = []
    for (fan_in, fan_out) in shapes:
        key, sub = jax.random.split(key)
        limit = jnp.sqrt(6.0 / (fan_in + fan_out))
        w = jax.random.uniform(sub, (fan_in, fan_out), jnp.float32,
                               minval=-limit, maxval=limit)
        b = jnp.zeros((fan_out,), jnp.float32)
        params.append((w, b))
    return params


def mlp_reference(x, params, *, addLast=False):
    for (w, b) in params[:-1]:
        x = jnp.tanh(x @ w + b)
    w, b = params[-1]
    y = x @ w + b
    if addLast:
        y = jnp.logaddexp(y, 0.0)
    return y


# --------------------------------------------------------------------------- #
# Demo / self-check
# --------------------------------------------------------------------------- #
if __name__ == "__main__":
    key = jax.random.PRNGKey(0)

    # Config 1: hidden MLP with Softplus head (module defaults-ish).
    batch, dim_in, dim_hidden, dim_out = 512, 4, 64, 3
    num_hidden, addLast = 2, True

    k_x, k_p, k_x2, k_p2 = jax.random.split(key, 4)
    x = jax.random.normal(k_x, (batch, dim_in), jnp.float32)
    params = init_mlp_params(k_p, dim_in, dim_out,
                             dim_hidden=dim_hidden, num_hidden=num_hidden)
    ref = mlp_reference(x, params, addLast=addLast)

    # f32 MXU operands: tight match vs the pure-JAX reference.
    out = jax.block_until_ready(mlp_forward(x, params, addLast=addLast))
    assert out.shape == (batch, dim_out)
    assert jnp.allclose(out, ref, atol=1e-5, rtol=1e-5), "f32 mismatch vs reference"

    # bf16 MXU operands (f32 accumulation): halves resident-weight DMA traffic.
    out_bf16 = jax.block_until_ready(
        mlp_forward(x, params, addLast=addLast, mxu_dtype=jnp.bfloat16))
    assert out_bf16.shape == (batch, dim_out)
    assert jnp.allclose(out_bf16, ref, atol=5e-2, rtol=5e-2), "bf16 path mismatch"

    # Config 2: num_hidden=0 branch (single Linear, no Softplus).
    x2 = jax.random.normal(k_x2, (64, dim_in), jnp.float32)
    params2 = init_mlp_params(k_p2, dim_in, dim_out, num_hidden=0)
    ref2 = mlp_reference(x2, params2, addLast=False)
    out2 = jax.block_until_ready(mlp_forward(x2, params2, addLast=False))
    assert out2.shape == (64, dim_out)
    assert jnp.allclose(out2, ref2, atol=1e-5, rtol=1e-5), "num_hidden=0 mismatch"

    print("KERNEL_OK")
</pallas_src>

<mosaic_0001>
module attributes {stable_mosaic.version = 11 : i64} {
  func.func @_mlp_kernel(%arg0: i32, %arg1: memref<512x128xf32, #tpu.memory_space<vmem>>, %arg2: memref<3x128x128xf32, #tpu.memory_space<vmem>>, %arg3: memref<3x128xf32, #tpu.memory_space<vmem>>, %arg4: memref<512x128xf32, #tpu.memory_space<vmem>>) attributes {dimension_semantics = [#tpu.dimension_semantics<parallel>], iteration_bounds = array<i64: 1>, scalar_prefetch = 0 : i64, scratch_operands = 0 : i64, tpu.core_type = #tpu.core_type<tc>, window_params = [{transform_indices = @transform_0, window_bounds = array<i64: 512, 128>}, {pipeline_mode = #tpu.pipeline_mode<synchronous>, transform_indices = @transform_1, window_bounds = array<i64: 3, 128, 128>}, {pipeline_mode = #tpu.pipeline_mode<synchronous>, transform_indices = @transform_2, window_bounds = array<i64: 3, 128>}, {transform_indices = @transform_3, window_bounds = array<i64: 512, 128>}]} {
    %c0 = arith.constant 0 : index
    %c0_0 = arith.constant 0 : index
    %0 = vector.load %arg1[%c0, %c0_0] : memref<512x128xf32, #tpu.memory_space<vmem>>, vector<512x128xf32>
    %c0_1 = arith.constant 0 : index
    %c0_2 = arith.constant 0 : index
    %1 = vector.load %arg3[%c0_1, %c0_2] : memref<3x128xf32, #tpu.memory_space<vmem>>, vector<3x128xf32>
    %c0_3 = arith.constant 0 : index
    %c0_4 = arith.constant 0 : index
    %c0_5 = arith.constant 0 : index
    %2 = vector.load %arg2[%c0_3, %c0_4, %c0_5] : memref<3x128x128xf32, #tpu.memory_space<vmem>>, vector<1x128x128xf32>
    %3 = vector.shape_cast %2 : vector<1x128x128xf32> to vector<128x128xf32>
    %cst = arith.constant dense<0.000000e+00> : vector<512x128xf32>
    %4 = tpu.matmul %0, %3, %cst {dimension_numbers = #tpu.dot_dimension_numbers<[1], [0], [0], [1], [0, 0, 1, 1], [], []>} : vector<512x128xf32>, vector<128x128xf32>, vector<512x128xf32> -> vector<512x128xf32>
    %5 = vector.extract_strided_slice %1 {offsets = [0, 0], sizes = [1, 128], strides = [1, 1]} : vector<3x128xf32> to vector<1x128xf32>
    %6 = vector.shape_cast %5 : vector<1x128xf32> to vector<128xf32>
    %7 = vector.shape_cast %6 : vector<128xf32> to vector<1x128xf32>
    %8 = vector.broadcast %7 : vector<1x128xf32> to vector<512x128xf32>
    %9 = arith.addf %4, %8 : vector<512x128xf32>
    %10 = math.tanh %9 : vector<512x128xf32>
    %c1 = arith.constant 1 : index
    %c0_6 = arith.constant 0 : index
    %c0_7 = arith.constant 0 : index
    %11 = vector.load %arg2[%c1, %c0_6, %c0_7] : memref<3x128x128xf32, #tpu.memory_space<vmem>>, vector<1x128x128xf32>
    %12 = vector.shape_cast %11 : vector<1x128x128xf32> to vector<128x128xf32>
    %cst_8 = arith.constant dense<0.000000e+00> : vector<512x128xf32>
    %13 = tpu.matmul %10, %12, %cst_8 {dimension_numbers = #tpu.dot_dimension_numbers<[1], [0], [0], [1], [0, 0, 1, 1], [], []>} : vector<512x128xf32>, vector<128x128xf32>, vector<512x128xf32> -> vector<512x128xf32>
    %14 = vector.extract_strided_slice %1 {offsets = [1, 0], sizes = [1, 128], strides = [1, 1]} : vector<3x128xf32> to vector<1x128xf32>
    %15 = vector.shape_cast %14 : vector<1x128xf32> to vector<128xf32>
    %16 = vector.shape_cast %15 : vector<128xf32> to vector<1x128xf32>
    %17 = vector.broadcast %16 : vector<1x128xf32> to vector<512x128xf32>
    %18 = arith.addf %13, %17 : vector<512x128xf32>
    %19 = math.tanh %18 : vector<512x128xf32>
    %c2 = arith.constant 2 : index
    %c0_9 = arith.constant 0 : index
    %c0_10 = arith.constant 0 : index
    %20 = vector.load %arg2[%c2, %c0_9, %c0_10] : memref<3x128x128xf32, #tpu.memory_space<vmem>>, vector<1x128x128xf32>
    %21 = vector.shape_cast %20 : vector<1x128x128xf32> to vector<128x128xf32>
    %cst_11 = arith.constant dense<0.000000e+00> : vector<512x128xf32>
    %22 = tpu.matmul %19, %21, %cst_11 {dimension_numbers = #tpu.dot_dimension_numbers<[1], [0], [0], [1], [0, 0, 1, 1], [], []>} : vector<512x128xf32>, vector<128x128xf32>, vector<512x128xf32> -> vector<512x128xf32>
    %23 = vector.extract_strided_slice %1 {offsets = [2, 0], sizes = [1, 128], strides = [1, 1]} : vector<3x128xf32> to vector<1x128xf32>
    %24 = vector.shape_cast %23 : vector<1x128xf32> to vector<128xf32>
    %25 = vector.shape_cast %24 : vector<128xf32> to vector<1x128xf32>
    %26 = vector.broadcast %25 : vector<1x128xf32> to vector<512x128xf32>
    %27 = arith.addf %22, %26 : vector<512x128xf32>
    %cst_12 = arith.constant 0.000000e+00 : f32
    %28 = vector.broadcast %cst_12 : f32 to vector<512x128xf32>
    %29 = arith.maximumf %27, %28 : vector<512x128xf32>
    %30 = vector.broadcast %cst_12 : f32 to vector<512x128xf32>
    %31 = arith.subf %27, %30 : vector<512x128xf32>
    %32 = arith.cmpf one, %31, %31 : vector<512x128xf32>
    %33 = vector.broadcast %cst_12 : f32 to vector<512x128xf32>
    %34 = arith.addf %27, %33 : vector<512x128xf32>
    %35 = math.absf %31 : vector<512x128xf32>
    %cst_13 = arith.constant 0.000000e+00 : f32
    %36 = vector.broadcast %cst_13 : f32 to vector<512x128xf32>
    %37 = arith.subf %36, %35 : vector<512x128xf32>
    %38 = math.exp %37 : vector<512x128xf32>
    %39 = math.log1p %38 : vector<512x128xf32>
    %40 = arith.addf %29, %39 : vector<512x128xf32>
    %41 = arith.select %32, %34, %40 : vector<512x128xi1>, vector<512x128xf32>
    %c0_14 = arith.constant 0 : index
    %c0_15 = arith.constant 0 : index
    %42 = vector.load %arg4[%c0_14, %c0_15] : memref<512x128xf32, #tpu.memory_space<vmem>>, vector<512x128xf32>
    tpu.vector_store %arg4[%c0_14, %c0_15], %41 {strides = array<i32>} : memref<512x128xf32, #tpu.memory_space<vmem>>, vector<512x128xf32>,
    return
  }
  func.func @transform_0(%arg0: i32) -> (i32, i32) {
    %c0_i32 = arith.constant 0 : i32
    %c0_i32_0 = arith.constant 0 : i32
    return %arg0, %c0_i32 : i32, i32
  }
  func.func @transform_1(%arg0: i32) -> (i32, i32, i32) {
    %c0_i32 = arith.constant 0 : i32
    %c0_i32_0 = arith.constant 0 : i32
    %c0_i32_1 = arith.constant 0 : i32
    %c0_i32_2 = arith.constant 0 : i32
    return %c0_i32, %c0_i32_0, %c0_i32_1 : i32, i32, i32
  }
  func.func @transform_2(%arg0: i32) -> (i32, i32) {
    %c0_i32 = arith.constant 0 : i32
    %c0_i32_0 = arith.constant 0 : i32
    %c0_i32_1 = arith.constant 0 : i32
    return %c0_i32, %c0_i32_0 : i32, i32
  }
  func.func @transform_3(%arg0: i32) -> (i32, i32) {
    %c0_i32 = arith.constant 0 : i32
    %c0_i32_0 = arith.constant 0 : i32
    return %arg0, %c0_i32 : i32, i32
  }
}

</mosaic_0001>

<bundles_post_ra>
// kernel: tpu_custom_call.1
= control target key start
LH: loop header
LB: loop body
LE: loop exit
PB: predicated region body
PF: predicated region fallthrough
CT: control target
= control target key end

     0   :  { %8 = vsyncpa [#allocation3], 0  ;;  %s3715_s0 = inlined_call_operand.hbm [shape: f32[512,128], index: 0, kind: input, shape index: {}]   ;;  %s3716_s1 = inlined_call_operand.hbm [shape: f32[3,128,128], index: 1, kind: input, shape index: {}]   ;;  %s3717_s2 = inlined_call_operand.hbm [shape: f32[3,128], index: 2, kind: input, shape index: {}]   ;;  %s3718_s3 = inlined_call_operand.hbm [shape: f32[512,128], index: 3, kind: output, shape index: {}]  }
   0x1   :  { %9 = vsyncpa [#allocation6], 0 }
   0x2   :  { %10 = vsyncpa [#allocation4], 0  ;;  %s28_s14 = sshll.u32 %s3716_s1, 4  ;;  %s2837_s15 = smov [#allocation5]   ;;  %s29_s14 = int_to_ptr.hbm [resolvable:$true] %s28_s14 }
   0x3   :  { %s30_s16 = sshll.u32 %s2837_s15, 4  ;;  %s15_s19 = sshll.u32 %s3715_s0, 4  ;;  %s31_s16 = int_to_ptr.vmem [resolvable:$true] %s30_s16  ;;  %s16_s19 = int_to_ptr.hbm [resolvable:$true] %s15_s19 }
   0x4   :  { %s2838_s20 = smov 128   ;;  %s2839_s21 = smov 8  }
   0x5   :  { %36 = dma.hbm_to_vmem [thread:$0]  %s29_s14, 6144, %s31_s16, [#allocation6], %s2838_s20, %s2838_s20, %s2839_s21  }
   0x6   :  { %s2840_s22 = smov [#allocation2]   ;;  %s42_s1 = sshll.u32 %s3717_s2, 4  ;;  %s43_s1 = int_to_ptr.hbm [resolvable:$true] %s42_s1 }
   0x7   :  { %s17_s23 = sshll.u32 %s2840_s22, 4  ;;  %s2841_s0 = smov [#allocation7]   ;;  %s18_s23 = int_to_ptr.vmem [resolvable:$true] %s17_s23 }
   0x8   :  { %23 = dma.hbm_to_vmem [thread:$0]  %s16_s19, 8192, %s18_s23, [#allocation3], %s2838_s20, %s2838_s20, %s2839_s21  }
   0x9   :  { %s44_s26 = sshll.u32 %s2841_s0, 4  ;;  %s45_s26 = int_to_ptr.vmem [resolvable:$true] %s44_s26 }
   0xa   :  { %47 = dma.hbm_to_vmem [thread:$0]  %s43_s1, 64, %s45_s26, [#allocation6]  }
   0xb   :  { %2831 = dma.done.wait [#allocation3], 8192  }
   0xc   :  { %2832 = vsyncadd [#allocation3], 4294959104 }
   0xd   :  { %2833 = dma.done.wait [#allocation6], 6208  }
   0xe   :  { %2834 = vsyncadd [#allocation6], 4294961088  ;;  %v140_v0 = vld [vmem:[#allocation5 + $0x78] sm:$0xff]  ;;  %v139_v1 = vld [vmem:[#allocation5 + $0x70] sm:$0xff]  ;;  %s2842_s2 = smov [#allocation8]   ;;  %s2155_s30 = sshll.u32 %s3718_s3, 4  ;;  %s2156_s30 = int_to_ptr.hbm [resolvable:$true] %s2155_s30 }
   0xf   :  { %142 = vmatpush.msra.mxu0 %v140_v0  ;;  %2169 = vmatpush.msra.mxu3 %v140_v0  ;;  %v138_v2 = vld [vmem:[#allocation5 + $0x68] sm:$0xff]  ;;  %v137_v3 = vld [vmem:[#allocation5 + $0x60] sm:$0xff]  ;;  %v136_v4 = vld [vmem:[#allocation5 + $0x58] sm:$0xff]  ;;  %s2153_s27 = sshll.u32 %s2842_s2, 4  ;;  %s2154_s27 = int_to_ptr.vmem [resolvable:$true] %s2153_s27 }
  0x10   :  { %v135_v5 = vld [vmem:[#allocation5 + $0x50] sm:$0xff]  ;;  %v134_v6 = vld [vmem:[#allocation5 + $0x48] sm:$0xff]  ;;  %v133_v7 = vld [vmem:[#allocation5 + $0x40] sm:$0xff] }
  0x11   :  { %143 = vmatpush.msra.mxu0 %v139_v1  ;;  %2170 = vmatpush.msra.mxu3 %v139_v1  ;;  %v132_v8 = vld [vmem:[#allocation5 + $0x38] sm:$0xff]  ;;  %v131_v9 = vld [vmem:[#allocation5 + $0x30] sm:$0xff]  ;;  %v130_v10 = vld [vmem:[#allocation5 + $0x28] sm:$0xff] }
  0x12   :  { %v129_v11 = vld [vmem:[#allocation5 + $0x20] sm:$0xff]  ;;  %v128_v12 = vld [vmem:[#allocation5 + $0x18] sm:$0xff]  ;;  %v127_v13 = vld [vmem:[#allocation5 + $0x10] sm:$0xff] }
  0x13   :  { %144 = vmatpush.msra.mxu0 %v138_v2  ;;  %2171 = vmatpush.msra.mxu3 %v138_v2  ;;  %v126_v14 = vld [vmem:[#allocation5 + $0x8] sm:$0xff]  ;;  %v125_v15 = vld [vmem:[#allocation5] sm:$0xff]  ;;  %v62_v18 = vld [vmem:[#allocation2 + $0x10] sm:$0xff] }
  0x14   :  { %v60_v16 = vld [vmem:[#allocation2] sm:$0xff]  ;;  %v61_v17 = vld [vmem:[#allocation2 + $0x8] sm:$0xff]  ;;  %v63_v19 = vld [vmem:[#allocation2 + $0x18] sm:$0xff] }
  0x15   :  { %145 = vmatpush.msra.mxu0 %v137_v3  ;;  %2172 = vmatpush.msra.mxu3 %v137_v3  ;;  %v64_v20 = vld [vmem:[#allocation2 + $0x20] sm:$0xff]  ;;  %v65_v21 = vld [vmem:[#allocation2 + $0x28] sm:$0xff]  ;;  %v66_v22 = vld [vmem:[#allocation2 + $0x30] sm:$0xff] }
  0x16   :  { %v67_v23 = vld [vmem:[#allocation2 + $0x38] sm:$0xff]  ;;  %v68_v24 = vld [vmem:[#allocation2 + $0x40] sm:$0xff]  ;;  %v69_v25 = vld [vmem:[#allocation2 + $0x48] sm:$0xff] }
  0x17   :  { %146 = vmatpush.msra.mxu0 %v136_v4  ;;  %2173 = vmatpush.msra.mxu3 %v136_v4  ;;  %v431_v26 = vld [vmem:[#allocation5 + $0xf8] sm:$0xff]  ;;  %v430_v27 = vld [vmem:[#allocation5 + $0xf0] sm:$0xff]  ;;  %v429_v28 = vld [vmem:[#allocation5 + $0xe8] sm:$0xff] }
  0x18   :  { %433 = vmatpush.msra.mxu1 %v431_v26  ;;  %v428_v29 = vld [vmem:[#allocation5 + $0xe0] sm:$0xff]  ;;  %v70_v30 = vld [vmem:[#allocation2 + $0x50] sm:$0xff]  ;;  %v427_v31 = vld [vmem:[#allocation5 + $0xd8] sm:$0xff] }
  0x19   :  { %147 = vmatpush.msra.mxu0 %v135_v5  ;;  %2174 = vmatpush.msra.mxu3 %v135_v5  ;;  %v426_v32 = vld [vmem:[#allocation5 + $0xd0] sm:$0xff]  ;;  %v425_v33 = vld [vmem:[#allocation5 + $0xc8] sm:$0xff]  ;;  %v424_v34 = vld [vmem:[#allocation5 + $0xc0] sm:$0xff] }
  0x1a   :  { %434 = vmatpush.msra.mxu1 %v430_v27  ;;  %v71_v35 = vld [vmem:[#allocation2 + $0x58] sm:$0xff]  ;;  %v422_v37 = vld [vmem:[#allocation5 + $0xb0] sm:$0xff]  ;;  %v421_v38 = vld [vmem:[#allocation5 + $0xa8] sm:$0xff] }
  0x1b   :  { %148 = vmatpush.msra.mxu0 %v134_v6  ;;  %2175 = vmatpush.msra.mxu3 %v134_v6  ;;  %v423_v36 = vld [vmem:[#allocation5 + $0xb8] sm:$0xff]  ;;  %v72_v39 = vld [vmem:[#allocation2 + $0x60] sm:$0xff]  ;;  %v418_v42 = vld [vmem:[#allocation5 + $0x90] sm:$0xff] }
  0x1c   :  { %435 = vmatpush.msra.mxu1 %v429_v28  ;;  %v420_v40 = vld [vmem:[#allocation5 + $0xa0] sm:$0xff]  ;;  %v419_v41 = vld [vmem:[#allocation5 + $0x98] sm:$0xff]  ;;  %v417_v43 = vld [vmem:[#allocation5 + $0x88] sm:$0xff] }
  0x1d   :  { %149 = vmatpush.msra.mxu0 %v133_v7  ;;  %2176 = vmatpush.msra.mxu3 %v133_v7  ;;  %v73_v44 = vld [vmem:[#allocation2 + $0x68] sm:$0xff]  ;;  %v416_v45 = vld [vmem:[#allocation5 + $0x80] sm:$0xff]  ;;  %v74_v46 = vld [vmem:[#allocation2 + $0x70] sm:$0xff] }
  0x1e   :  { %436 = vmatpush.msra.mxu1 %v428_v29  ;;  %v75_v47 = vld [vmem:[#allocation2 + $0x78] sm:$0xff]  ;;  %v2878_v48 = vld [vmem:[#allocation7] sm:$0x7]  ;;  %v77_v54 = vld [vmem:[#allocation2 + $0x88] sm:$0xff] }
  0x1f   :  { %150 = vmatpush.msra.mxu0 %v132_v8  ;;  %2177 = vmatpush.msra.mxu3 %v132_v8  ;;  %v2881_v49 = vperm.slane %v2878_v48, 0  ;;  %v76_v51 = vld [vmem:[#allocation2 + $0x80] sm:$0xff]  ;;  %v78_v58 = vld [vmem:[#allocation2 + $0x90] sm:$0xff]  ;;  %v79_v62 = vld [vmem:[#allocation2 + $0x98] sm:$0xff] }
  0x20   :  { %437 = vmatpush.msra.mxu1 %v427_v31  ;;  %v80_v2 = vld [vmem:[#allocation2 + $0xa0] sm:$0xff]  ;;  %v81_v6 = vld [vmem:[#allocation2 + $0xa8] sm:$0xff] }
  0x21   :  { %151 = vmatpush.msra.mxu0 %v131_v9  ;;  %2178 = vmatpush.msra.mxu3 %v131_v9 }
  0x22   :  { %438 = vmatpush.msra.mxu1 %v426_v32 }
  0x23   :  { %152 = vmatpush.msra.mxu0 %v130_v10  ;;  %2179 = vmatpush.msra.mxu3 %v130_v10  ;;  %v82_v10 = vld [vmem:[#allocation2 + $0xb0] sm:$0xff] }
  0x24   :  { %439 = vmatpush.msra.mxu1 %v425_v33 }
  0x25   :  { %153 = vmatpush.msra.mxu0 %v129_v11  ;;  %2180 = vmatpush.msra.mxu3 %v129_v11 }
  0x26   :  { %440 = vmatpush.msra.mxu1 %v424_v34 }
  0x27   :  { %154 = vmatpush.msra.mxu0 %v128_v12  ;;  %2181 = vmatpush.msra.mxu3 %v128_v12 }
  0x28   :  { %441 = vmatpush.msra.mxu1 %v423_v36 }
  0x29   :  { %155 = vmatpush.msra.mxu0 %v127_v13  ;;  %2182 = vmatpush.msra.mxu3 %v127_v13 }
  0x2a   :  { %442 = vmatpush.msra.mxu1 %v422_v37 }
  0x2b   :  { %156 = vmatpush.msra.mxu0 %v126_v14  ;;  %2183 = vmatpush.msra.mxu3 %v126_v14  ;;  %v83_v14 = vld [vmem:[#allocation2 + $0xb8] sm:$0xff] }
  0x2c   :  { %443 = vmatpush.msra.mxu1 %v421_v38 }
  0x2d   :  { %157 = vmatpush.msra.mxu0 %v125_v15  ;;  %2184 = vmatpush.msra.mxu3 %v125_v15 }
  0x2e   :  { %158 = vmatmul.f32.vlgmr.msra.gmra.mxu0 %v60_v16  ;;  %444 = vmatpush.msra.mxu1 %v420_v40 }
  0x2f   :  { %2185 = vmatpush.msrb.mxu3 %v431_v26 }
  0x30   :  { %445 = vmatpush.msra.mxu1 %v419_v41 }
  0x31   :  { %2186 = vmatpush.msrb.mxu3 %v430_v27  ;;  %v110_v27 = vld [vmem:[#allocation2 + $0x190] sm:$0xff] }
  0x32   :  { %446 = vmatpush.msra.mxu1 %v418_v42 }
  0x33   :  { %2187 = vmatpush.msrb.mxu3 %v429_v28 }
  0x34   :  { %447 = vmatpush.msra.mxu1 %v417_v43 }
  0x35   :  { %2188 = vmatpush.msrb.mxu3 %v428_v29  ;;  %v86_v29 = vld [vmem:[#allocation2 + $0xd0] sm:$0xff] }
  0x36   :  { %161 = vmatmul.f32.gmra.mxu0 %v61_v17  ;;  %448 = vmatpush.msra.mxu1 %v416_v45  ;;  %v108_v17 = vld [vmem:[#allocation2 + $0x180] sm:$0xff] }
  0x37   :  { %2189 = vmatpush.msrb.mxu3 %v427_v31 }
  0x38   :  { %302 = vmatmul.f32.vlgmr.msra.gmra.mxu3 %v108_v17  ;;  %v2901_v17 = vperm.slane %v2878_v48, 1 }
  0x39   :  { %2190 = vmatpush.msrb.mxu3 %v426_v32  ;;  %v722_v32 = vld [vmem:[#allocation5 + $0x178] sm:$0xff] }
  0x3a   :  { %724 = vmatpush.msra.mxu2 %v722_v32 }
  0x3b   :  { %2191 = vmatpush.msrb.mxu3 %v425_v33  ;;  %v111_v33 = vld [vmem:[#allocation2 + $0x198] sm:$0xff] }
  0x3d   :  { %2192 = vmatpush.msrb.mxu3 %v424_v34  ;;  %v721_v34 = vld [vmem:[#allocation5 + $0x170] sm:$0xff] }
  0x3e   :  { %164 = vmatmul.f32.gmra.mxu0 %v62_v18  ;;  %725 = vmatpush.msra.mxu2 %v721_v34 }
  0x3f   :  { %2193 = vmatpush.msrb.mxu3 %v423_v36  ;;  %v719_v36 = vld [vmem:[#allocation5 + $0x160] sm:$0xff] }
  0x41   :  { %2194 = vmatpush.msrb.mxu3 %v422_v37 }
  0x43   :  { %2195 = vmatpush.msrb.mxu3 %v421_v38  ;;  %v87_v38 = vld [vmem:[#allocation2 + $0xd8] sm:$0xff] }
  0x45   :  { %2196 = vmatpush.msrb.mxu3 %v420_v40 }
  0x46   :  { %167 = vmatmul.f32.gmra.mxu0 %v63_v19  ;;  %v84_v19 = vld [vmem:[#allocation2 + $0xc0] sm:$0xff] }
  0x47   :  { %2197 = vmatpush.msrb.mxu3 %v419_v41  ;;  %v718_v41 = vld [vmem:[#allocation5 + $0x158] sm:$0xff] }
  0x49   :  { %2198 = vmatpush.msrb.mxu3 %v418_v42  ;;  %v112_v42 = vld [vmem:[#allocation2 + $0x1a0] sm:$0xff] }
  0x4b   :  { %2199 = vmatpush.msrb.mxu3 %v417_v43  ;;  %v717_v43 = vld [vmem:[#allocation5 + $0x150] sm:$0xff] }
  0x4d   :  { %2200 = vmatpush.msrb.mxu3 %v416_v45  ;;  %v715_v45 = vld [vmem:[#allocation5 + $0x140] sm:$0xff] }
  0x4e   :  { %170 = vmatmul.f32.gmra.mxu0 %v64_v20 }
  0x4f   :  { %2201 = vmatpush.msra.mxu3 %v722_v32  ;;  %v119_v32 = vld [vmem:[#allocation2 + $0x1d8] sm:$0xff] }
  0x51   :  { %2202 = vmatpush.msra.mxu3 %v721_v34 }
  0x56   :  { %173 = vmatmul.f32.gmra.mxu0 %v65_v21 }
  0x5e   :  { %176 = vmatmul.f32.gmra.mxu0 %v66_v22  ;;  %v109_v22 = vld [vmem:[#allocation2 + $0x188] sm:$0xff] }
  0x5f   :  { %305 = vmatmul.f32.gmra.mxu3 %v109_v22 }
  0x66   :  { %179 = vmatmul.f32.gmra.mxu0 %v67_v23 }
  0x67   :  { %308 = vmatmul.f32.gmra.mxu3 %v110_v27 }
  0x6e   :  { %182 = vmatmul.f32.gmra.mxu0 %v68_v24  ;;  %v85_v24 = vld [vmem:[#allocation2 + $0xc8] sm:$0xff] }
  0x6f   :  { %311 = vmatmul.f32.gmra.mxu3 %v111_v33 }
  0x76   :  { %185 = vmatmul.f32.gmra.mxu0 %v69_v25 }
  0x77   :  { %314 = vmatmul.f32.gmra.mxu3 %v112_v42 }
  0x7e   :  { %188 = vmatmul.f32.gmra.mxu0 %v70_v30 }
  0x86   :  { %191 = vmatmul.f32.gmra.mxu0 %v71_v35  ;;  %v720_v35 = vld [vmem:[#allocation5 + $0x168] sm:$0xff] }
  0x87   :  { %726 = vmatpush.msra.mxu2 %v720_v35  ;;  %2203 = vmatpush.msra.mxu3 %v720_v35 }
  0x89   :  { %727 = vmatpush.msra.mxu2 %v719_v36  ;;  %2204 = vmatpush.msra.mxu3 %v719_v36 }
  0x8b   :  { %728 = vmatpush.msra.mxu2 %v718_v41  ;;  %2205 = vmatpush.msra.mxu3 %v718_v41 }
  0x8d   :  { %729 = vmatpush.msra.mxu2 %v717_v43  ;;  %2206 = vmatpush.msra.mxu3 %v717_v43 }
  0x8e   :  { %194 = vmatmul.f32.gmra.mxu0 %v72_v39 }
  0x96   :  { %197 = vmatmul.f32.gmra.mxu0 %v73_v44  ;;  %v716_v44 = vld [vmem:[#allocation5 + $0x148] sm:$0xff] }
  0x97   :  { %730 = vmatpush.msra.mxu2 %v716_v44  ;;  %2207 = vmatpush.msra.mxu3 %v716_v44 }
  0x99   :  { %731 = vmatpush.msra.mxu2 %v715_v45  ;;  %2208 = vmatpush.msra.mxu3 %v715_v45  ;;  %v96_v45 = vld [vmem:[#allocation2 + $0x120] sm:$0xff] }
  0x9e   :  { %200 = vmatmul.f32.gmra.mxu0 %v74_v46 }
  0xa6   :  { %203 = vmatmul.f32.gmra.mxu0 %v75_v47  ;;  %v88_v47 = vld [vmem:[#allocation2 + $0xe0] sm:$0xff] }
  0xab   :  { %v159_v50 = vpop.f32.mrf.mxu0 }
  0xac   :  { %v160_v52 = vadd.f32 %v159_v50, %v2881_v49 }
  0xae   :  { %2223 = vtanh.f32 %v160_v52  ;;  %206 = vmatmul.f32.gmra.mxu0 %v76_v51  ;;  %v714_v52 = vld [vmem:[#allocation5 + $0x138] sm:$0xff] }
  0xaf   :  { %732 = vmatpush.msra.mxu2 %v714_v52  ;;  %2209 = vmatpush.msra.mxu3 %v714_v52 }
  0xb3   :  { %v162_v53 = vpop.f32.mrf.mxu0 }
  0xb4   :  { %v2224_v55 = vpop.eup %2223  ;;  %v163_v56 = vadd.f32 %v162_v53, %v2881_v49  ;;  %v113_v53 = vld [vmem:[#allocation2 + $0x1a8] sm:$0xff] }
  0xb5   :  { %449 = vmatmul.f32.vlgmr.msra.gmra.mxu1 %v2224_v55  ;;  %v712_v55 = vld [vmem:[#allocation5 + $0x128] sm:$0xff]  ;;  %317 = vmatmul.f32.gmra.mxu3 %v113_v53 }
  0xb6   :  { %2225 = vtanh.f32 %v163_v56  ;;  %209 = vmatmul.f32.gmra.mxu0 %v77_v54  ;;  %v713_v54 = vld [vmem:[#allocation5 + $0x130] sm:$0xff]  ;;  %v711_v56 = vld [vmem:[#allocation5 + $0x120] sm:$0xff] }
  0xb7   :  { %733 = vmatpush.msra.mxu2 %v713_v54  ;;  %2210 = vmatpush.msra.mxu3 %v713_v54 }
  0xb9   :  { %734 = vmatpush.msra.mxu2 %v712_v55  ;;  %2211 = vmatpush.msra.mxu3 %v712_v55  ;;  %v97_v55 = vld [vmem:[#allocation2 + $0x128] sm:$0xff] }
  0xbb   :  { %v165_v57 = vpop.f32.mrf.mxu0  ;;  %735 = vmatpush.msra.mxu2 %v711_v56  ;;  %2212 = vmatpush.msra.mxu3 %v711_v56 }
  0xbc   :  { %v2226_v59 = vpop.eup %2225  ;;  %v166_v60 = vadd.f32 %v165_v57, %v2881_v49 }
  0xbd   :  { %452 = vmatmul.f32.gmra.mxu1 %v2226_v59 }
  0xbe   :  { %2227 = vtanh.f32 %v166_v60  ;;  %212 = vmatmul.f32.gmra.mxu0 %v78_v58  ;;  %v89_v58 = vld [vmem:[#allocation2 + $0xe8] sm:$0xff] }
  0xc3   :  { %v168_v61 = vpop.f32.mrf.mxu0 }
  0xc4   :  { %v2228_v63 = vpop.eup %2227  ;;  %v169_v0 = vadd.f32 %v168_v61, %v2881_v49  ;;  %v710_v61 = vld [vmem:[#allocation5 + $0x118] sm:$0xff] }
  0xc5   :  { %455 = vmatmul.f32.gmra.mxu1 %v2228_v63  ;;  %736 = vmatpush.msra.mxu2 %v710_v61  ;;  %v709_v63 = vld [vmem:[#allocation5 + $0x110] sm:$0xff] }
  0xc6   :  { %2229 = vtanh.f32 %v169_v0  ;;  %215 = vmatmul.f32.gmra.mxu0 %v79_v62  ;;  %v114_v62 = vld [vmem:[#allocation2 + $0x1b0] sm:$0xff]  ;;  %v708_v0 = vld [vmem:[#allocation5 + $0x108] sm:$0xff]  ;;  %2213 = vmatpush.msra.mxu3 %v710_v61 }
  0xc7   :  { %320 = vmatmul.f32.gmra.mxu3 %v114_v62  ;;  %737 = vmatpush.msra.mxu2 %v709_v63 }
  0xc8   :  { %2214 = vmatpush.msra.mxu3 %v709_v63  ;;  %v98_v63 = vld [vmem:[#allocation2 + $0x130] sm:$0xff] }
  0xc9   :  { %738 = vmatpush.msra.mxu2 %v708_v0 }
  0xca   :  { %2215 = vmatpush.msra.mxu3 %v708_v0 }
  0xcb   :  { %v171_v1 = vpop.f32.mrf.mxu0 }
  0xcc   :  { %v2230_v3 = vpop.eup %2229  ;;  %v172_v4 = vadd.f32 %v171_v1, %v2881_v49  ;;  %v707_v1 = vld [vmem:[#allocation5 + $0x100] sm:$0xff] }
  0xcd   :  { %458 = vmatmul.f32.gmra.mxu1 %v2230_v3  ;;  %v90_v3 = vld [vmem:[#allocation2 + $0xf0] sm:$0xff]  ;;  %739 = vmatpush.msra.mxu2 %v707_v1 }
  0xce   :  { %2231 = vtanh.f32 %v172_v4  ;;  %218 = vmatmul.f32.gmra.mxu0 %v80_v2  ;;  %2216 = vmatpush.msra.mxu3 %v707_v1 }
  0xd3   :  { %v174_v5 = vpop.f32.mrf.mxu0 }
  0xd4   :  { %v2232_v7 = vpop.eup %2231  ;;  %v175_v8 = vadd.f32 %v174_v5, %v2881_v49 }
  0xd5   :  { %461 = vmatmul.f32.gmra.mxu1 %v2232_v7 }
  0xd6   :  { %2233 = vtanh.f32 %v175_v8  ;;  %221 = vmatmul.f32.gmra.mxu0 %v81_v6  ;;  %v115_v6 = vld [vmem:[#allocation2 + $0x1b8] sm:$0xff] }
  0xd7   :  { %323 = vmatmul.f32.gmra.mxu3 %v115_v6  ;;  %v91_v8 = vld [vmem:[#allocation2 + $0xf8] sm:$0xff] }
  0xdb   :  { %v177_v9 = vpop.f32.mrf.mxu0 }
  0xdc   :  { %v2234_v11 = vpop.eup %2233  ;;  %v178_v12 = vadd.f32 %v177_v9, %v2881_v49 }
  0xdd   :  { %464 = vmatmul.f32.gmra.mxu1 %v2234_v11  ;;  %v116_v11 = vld [vmem:[#allocation2 + $0x1c0] sm:$0xff] }
  0xde   :  { %2235 = vtanh.f32 %v178_v12  ;;  %224 = vmatmul.f32.gmra.mxu0 %v82_v10 }
  0xdf   :  { %326 = vmatmul.f32.gmra.mxu3 %v116_v11  ;;  %v303_v11 = vpop.f32.mrf.mxu3 }
  0xe3   :  { %v180_v13 = vpop.f32.mrf.mxu0 }
  0xe4   :  { %v2236_v15 = vpop.eup %2235  ;;  %v181_v16 = vadd.f32 %v180_v13, %v2881_v49  ;;  %v92_v13 = vld [vmem:[#allocation2 + $0x100] sm:$0xff] }
  0xe5   :  { %467 = vmatmul.f32.gmra.mxu1 %v2236_v15 }
  0xe6   :  { %2237 = vtanh.f32 %v181_v16  ;;  %227 = vmatmul.f32.gmra.mxu0 %v83_v14  ;;  %v117_v16 = vld [vmem:[#allocation2 + $0x1c8] sm:$0xff] }
  0xe7   :  { %329 = vmatmul.f32.gmra.mxu3 %v117_v16  ;;  %v304_v16 = vadd.f32 %v303_v11, %v2881_v49 }
  0xeb   :  { %v183_v18 = vpop.f32.mrf.mxu0 }
  0xec   :  { %v2238_v20 = vpop.eup %2237  ;;  %v184_v21 = vadd.f32 %v183_v18, %v2881_v49 }
  0xed   :  { %470 = vmatmul.f32.gmra.mxu1 %v2238_v20 }
  0xee   :  { %2239 = vtanh.f32 %v184_v21  ;;  %230 = vmatmul.f32.gmra.mxu0 %v84_v19  ;;  %v93_v21 = vld [vmem:[#allocation2 + $0x108] sm:$0xff] }
  0xf3   :  { %v186_v23 = vpop.f32.mrf.mxu0 }
  0xf4   :  { %v2240_v25 = vpop.eup %2239  ;;  %v187_v26 = vadd.f32 %v186_v23, %v2881_v49 }
  0xf5   :  { %473 = vmatmul.f32.gmra.mxu1 %v2240_v25 }
  0xf6   :  { %2241 = vtanh.f32 %v187_v26  ;;  %233 = vmatmul.f32.gmra.mxu0 %v85_v24  ;;  %v118_v24 = vld [vmem:[#allocation2 + $0x1d0] sm:$0xff] }
  0xf7   :  { %332 = vmatmul.f32.gmra.mxu3 %v118_v24 }
  0xfb   :  { %v189_v28 = vpop.f32.mrf.mxu0 }
  0xfc   :  { %v2242_v30 = vpop.eup %2241  ;;  %v190_v31 = vadd.f32 %v189_v28, %v2881_v49 }
  0xfd   :  { %476 = vmatmul.f32.gmra.mxu1 %v2242_v30 }
  0xfe   :  { %2243 = vtanh.f32 %v190_v31  ;;  %236 = vmatmul.f32.gmra.mxu0 %v86_v29  ;;  %v94_v29 = vld [vmem:[#allocation2 + $0x110] sm:$0xff] }
  0xff   :  { %335 = vmatmul.f32.gmra.mxu3 %v119_v32 }
 0x103   :  { %v192_v37 = vpop.f32.mrf.mxu0 }
 0x104   :  { %v2244_v39 = vpop.eup %2243  ;;  %v193_v40 = vadd.f32 %v192_v37, %v2881_v49  ;;  %v95_v37 = vld [vmem:[#allocation2 + $0x118] sm:$0xff] }
 0x105   :  { %479 = vmatmul.f32.gmra.mxu1 %v2244_v39 }
 0x106   :  { %2245 = vtanh.f32 %v193_v40  ;;  %239 = vmatmul.f32.gmra.mxu0 %v87_v38  ;;  %v120_v40 = vld [vmem:[#allocation2 + $0x1e0] sm:$0xff] }
 0x107   :  { %338 = vmatmul.f32.gmra.mxu3 %v120_v40 }
 0x10b   :  { %v195_v46 = vpop.f32.mrf.mxu0 }
 0x10c   :  { %v2246_v50 = vpop.eup %2245  ;;  %v196_v51 = vadd.f32 %v195_v46, %v2881_v49 }
 0x10d   :  { %482 = vmatmul.f32.gmra.mxu1 %v2246_v50  ;;  %v121_v50 = vld [vmem:[#allocation2 + $0x1e8] sm:$0xff] }
 0x10e   :  { %2247 = vtanh.f32 %v196_v51  ;;  %242 = vmatmul.f32.gmra.mxu0 %v88_v47 }
 0x10f   :  { %341 = vmatmul.f32.gmra.mxu3 %v121_v50 }
 0x113   :  { %v198_v57 = vpop.f32.mrf.mxu0 }
 0x114   :  { %v2248_v59 = vpop.eup %2247  ;;  %v199_v60 = vadd.f32 %v198_v57, %v2881_v49 }
 0x115   :  { %485 = vmatmul.f32.gmra.mxu1 %v2248_v59 }
 0x116   :  { %2249 = vtanh.f32 %v199_v60  ;;  %245 = vmatmul.f32.gmra.mxu0 %v89_v58  ;;  %v122_v58 = vld [vmem:[#allocation2 + $0x1f0] sm:$0xff] }
 0x117   :  { %344 = vmatmul.f32.gmra.mxu3 %v122_v58 }
 0x11b   :  { %v201_v2 = vpop.f32.mrf.mxu0 }
 0x11c   :  { %v2250_v4 = vpop.eup %2249  ;;  %v202_v5 = vadd.f32 %v201_v2, %v2881_v49  ;;  %v123_v2 = vld [vmem:[#allocation2 + $0x1f8] sm:$0xff] }
 0x11d   :  { %488 = vmatmul.f32.gmra.mxu1 %v2250_v4 }
 0x11e   :  { %2251 = vtanh.f32 %v202_v5  ;;  %248 = vmatmul.f32.gmra.mxu0 %v90_v3 }
 0x11f   :  { %347 = vmatmul.f32.gmra.mxu3 %v123_v2 }
 0x123   :  { %v204_v7 = vpop.f32.mrf.mxu0 }
 0x124   :  { %v2252_v9 = vpop.eup %2251  ;;  %v205_v10 = vadd.f32 %v204_v7, %v2881_v49  ;;  %v99_v7 = vld [vmem:[#allocation2 + $0x138] sm:$0xff] }
 0x125   :  { %491 = vmatmul.f32.gmra.mxu1 %v2252_v9 }
 0x126   :  { %2253 = vtanh.f32 %v205_v10  ;;  %251 = vmatmul.f32.gmra.mxu0 %v91_v8 }
 0x12b   :  { %v207_v12 = vpop.f32.mrf.mxu0 }
 0x12c   :  { %v2254_v14 = vpop.eup %2253  ;;  %v208_v15 = vadd.f32 %v207_v12, %v2881_v49 }
 0x12d   :  { %494 = vmatmul.f32.gmra.mxu1 %v2254_v14 }
 0x12e   :  { %2255 = vtanh.f32 %v208_v15  ;;  %254 = vmatmul.f32.gmra.mxu0 %v92_v13  ;;  %v100_v15 = vld [vmem:[#allocation2 + $0x140] sm:$0xff] }
 0x132   :  { %v450_v18 = vpop.f32.mrf.mxu1 }
 0x133   :  { %v451_v19 = vadd.f32 %v450_v18, %v2901_v17  ;;  %v210_v20 = vpop.f32.mrf.mxu0 }
 0x134   :  { %v2256_v22 = vpop.eup %2255  ;;  %v211_v23 = vadd.f32 %v210_v20, %v2881_v49 }
 0x135   :  { %2257 = vtanh.f32 %v451_v19  ;;  %497 = vmatmul.f32.gmra.mxu1 %v2256_v22 }
 0x136   :  { %2259 = vtanh.f32 %v211_v23  ;;  %257 = vmatmul.f32.gmra.mxu0 %v93_v21  ;;  %v306_v21 = vpop.f32.mrf.mxu3 }
 0x13a   :  { %v453_v25 = vpop.f32.mrf.mxu1 }
 0x13b   :  { %v2258_v26 = vpop.eup %2257  ;;  %v454_v27 = vadd.f32 %v453_v25, %v2901_v17  ;;  %v213_v28 = vpop.f32.mrf.mxu0  ;;  %v101_v25 = vld [vmem:[#allocation2 + $0x148] sm:$0xff] }
 0x13c   :  { %v2260_v30 = vpop.eup %2259  ;;  %v214_v31 = vadd.f32 %v213_v28, %v2881_v49  ;;  %740 = vmatmul.f32.vlgmr.msra.gmra.mxu2 %v2258_v26  ;;  %v307_v26 = vadd.f32 %v306_v21, %v2881_v49 }
 0x13d   :  { %2261 = vtanh.f32 %v454_v27  ;;  %500 = vmatmul.f32.gmra.mxu1 %v2260_v30 }
 0x13e   :  { %2263 = vtanh.f32 %v214_v31  ;;  %260 = vmatmul.f32.gmra.mxu0 %v94_v29  ;;  %v309_v31 = vpop.f32.mrf.mxu3 }
 0x142   :  { %v456_v33 = vpop.f32.mrf.mxu1 }
 0x143   :  { %v2262_v34 = vpop.eup %2261  ;;  %v457_v35 = vadd.f32 %v456_v33, %v2901_v17  ;;  %v216_v36 = vpop.f32.mrf.mxu0 }
 0x144   :  { %v2264_v38 = vpop.eup %2263  ;;  %v217_v39 = vadd.f32 %v216_v36, %v2881_v49  ;;  %743 = vmatmul.f32.gmra.mxu2 %v2262_v34  ;;  %v310_v36 = vadd.f32 %v309_v31, %v2881_v49 }
 0x145   :  { %2265 = vtanh.f32 %v457_v35  ;;  %503 = vmatmul.f32.gmra.mxu1 %v2264_v38  ;;  %v102_v35 = vld [vmem:[#allocation2 + $0x150] sm:$0xff] }
 0x146   :  { %2267 = vtanh.f32 %v217_v39  ;;  %263 = vmatmul.f32.gmra.mxu0 %v95_v37 }
 0x14a   :  { %v459_v41 = vpop.f32.mrf.mxu1 }
 0x14b   :  { %v2266_v42 = vpop.eup %2265  ;;  %v460_v43 = vadd.f32 %v459_v41, %v2901_v17  ;;  %v219_v44 = vpop.f32.mrf.mxu0 }
 0x14c   :  { %v2268_v46 = vpop.eup %2267  ;;  %v220_v47 = vadd.f32 %v219_v44, %v2881_v49  ;;  %746 = vmatmul.f32.gmra.mxu2 %v2266_v42  ;;  %v312_v41 = vpop.f32.mrf.mxu3 }
 0x14d   :  { %2269 = vtanh.f32 %v460_v43  ;;  %506 = vmatmul.f32.gmra.mxu1 %v2268_v46  ;;  %v313_v46 = vadd.f32 %v312_v41, %v2881_v49 }
 0x14e   :  { %2271 = vtanh.f32 %v220_v47  ;;  %266 = vmatmul.f32.gmra.mxu0 %v96_v45  ;;  %v103_v45 = vld [vmem:[#allocation2 + $0x158] sm:$0xff] }
 0x152   :  { %v462_v51 = vpop.f32.mrf.mxu1 }
 0x153   :  { %v2270_v52 = vpop.eup %2269  ;;  %v463_v53 = vadd.f32 %v462_v51, %v2901_v17  ;;  %v222_v54 = vpop.f32.mrf.mxu0 }
 0x154   :  { %v2272_v56 = vpop.eup %2271  ;;  %v223_v57 = vadd.f32 %v222_v54, %v2881_v49  ;;  %749 = vmatmul.f32.gmra.mxu2 %v2270_v52 }
 0x155   :  { %2273 = vtanh.f32 %v463_v53  ;;  %509 = vmatmul.f32.gmra.mxu1 %v2272_v56  ;;  %v315_v53 = vpop.f32.mrf.mxu3 }
 0x156   :  { %2275 = vtanh.f32 %v223_v57  ;;  %269 = vmatmul.f32.gmra.mxu0 %v97_v55  ;;  %v104_v57 = vld [vmem:[#allocation2 + $0x160] sm:$0xff]  ;;  %v316_v58 = vadd.f32 %v315_v53, %v2881_v49 }
 0x15a   :  { %v465_v59 = vpop.f32.mrf.mxu1 }
 0x15b   :  { %v2274_v60 = vpop.eup %2273  ;;  %v466_v61 = vadd.f32 %v465_v59, %v2901_v17  ;;  %v225_v62 = vpop.f32.mrf.mxu0 }
 0x15c   :  { %v2276_v0 = vpop.eup %2275  ;;  %v226_v1 = vadd.f32 %v225_v62, %v2881_v49  ;;  %752 = vmatmul.f32.gmra.mxu2 %v2274_v60 }
 0x15d   :  { %2277 = vtanh.f32 %v466_v61  ;;  %512 = vmatmul.f32.gmra.mxu1 %v2276_v0 }
 0x15e   :  { %2279 = vtanh.f32 %v226_v1  ;;  %272 = vmatmul.f32.gmra.mxu0 %v98_v63  ;;  %v318_v63 = vpop.f32.mrf.mxu3 }
 0x162   :  { %v468_v3 = vpop.f32.mrf.mxu1 }
 0x163   :  { %v2278_v4 = vpop.eup %2277  ;;  %v469_v5 = vadd.f32 %v468_v3, %v2901_v17  ;;  %v228_v6 = vpop.f32.mrf.mxu0  ;;  %v105_v3 = vld [vmem:[#allocation2 + $0x168] sm:$0xff] }
 0x164   :  { %v2280_v8 = vpop.eup %2279  ;;  %v229_v9 = vadd.f32 %v228_v6, %v2881_v49  ;;  %755 = vmatmul.f32.gmra.mxu2 %v2278_v4  ;;  %v319_v4 = vadd.f32 %v318_v63, %v2881_v49 }
 0x165   :  { %2281 = vtanh.f32 %v469_v5  ;;  %515 = vmatmul.f32.gmra.mxu1 %v2280_v8 }
 0x166   :  { %2283 = vtanh.f32 %v229_v9  ;;  %275 = vmatmul.f32.gmra.mxu0 %v99_v7  ;;  %v321_v9 = vpop.f32.mrf.mxu3 }
 0x16a   :  { %v471_v10 = vpop.f32.mrf.mxu1 }
 0x16b   :  { %v2282_v12 = vpop.eup %2281  ;;  %v472_v13 = vadd.f32 %v471_v10, %v2901_v17  ;;  %v231_v14 = vpop.f32.mrf.mxu0 }
 0x16c   :  { %v2284_v18 = vpop.eup %2283  ;;  %v232_v19 = vadd.f32 %v231_v14, %v2881_v49  ;;  %758 = vmatmul.f32.gmra.mxu2 %v2282_v12  ;;  %v322_v14 = vadd.f32 %v321_v9, %v2881_v49 }
 0x16d   :  { %2285 = vtanh.f32 %v472_v13  ;;  %518 = vmatmul.f32.gmra.mxu1 %v2284_v18  ;;  %v106_v13 = vld [vmem:[#allocation2 + $0x170] sm:$0xff] }
 0x16e   :  { %2287 = vtanh.f32 %v232_v19  ;;  %278 = vmatmul.f32.gmra.mxu0 %v100_v15 }
 0x16f   :  { %2289 = vtanh.f32 %v304_v16 }
 0x172   :  { %v474_v20 = vpop.f32.mrf.mxu1 }
 0x173   :  { %v2286_v22 = vpop.eup %2285  ;;  %v475_v23 = vadd.f32 %v474_v20, %v2901_v17  ;;  %v234_v24 = vpop.f32.mrf.mxu0 }
 0x174   :  { %v2288_v27 = vpop.eup %2287  ;;  %v235_v28 = vadd.f32 %v234_v24, %v2881_v49  ;;  %761 = vmatmul.f32.gmra.mxu2 %v2286_v22  ;;  %v324_v20 = vpop.f32.mrf.mxu3  ;;  %v107_v24 = vld [vmem:[#allocation2 + $0x178] sm:$0xff] }
 0x175   :  { %v2290_v29 = vpop.eup %2289  ;;  %2291 = vtanh.f32 %v475_v23  ;;  %521 = vmatmul.f32.gmra.mxu1 %v2288_v27 }
 0x176   :  { %2293 = vtanh.f32 %v235_v28  ;;  %281 = vmatmul.f32.gmra.mxu0 %v101_v25  ;;  %593 = vmatmul.f32.vlgmr.msrb.gmra.mxu3 %v2290_v29  ;;  %v325_v25 = vadd.f32 %v324_v20, %v2881_v49 }
 0x177   :  { %2295 = vtanh.f32 %v307_v26 }
 0x17a   :  { %v477_v30 = vpop.f32.mrf.mxu1 }
 0x17b   :  { %v2292_v32 = vpop.eup %2291  ;;  %v478_v33 = vadd.f32 %v477_v30, %v2901_v17  ;;  %v237_v34 = vpop.f32.mrf.mxu0 }
 0x17c   :  { %v2294_v37 = vpop.eup %2293  ;;  %v238_v38 = vadd.f32 %v237_v34, %v2881_v49  ;;  %764 = vmatmul.f32.gmra.mxu2 %v2292_v32  ;;  %v327_v30 = vpop.f32.mrf.mxu3 }
 0x17d   :  { %v2296_v39 = vpop.eup %2295  ;;  %2297 = vtanh.f32 %v478_v33  ;;  %524 = vmatmul.f32.gmra.mxu1 %v2294_v37  ;;  %v328_v34 = vadd.f32 %v327_v30, %v2881_v49 }
 0x17e   :  { %2299 = vtanh.f32 %v238_v38  ;;  %284 = vmatmul.f32.gmra.mxu0 %v102_v35  ;;  %596 = vmatmul.f32.gmra.mxu3 %v2296_v39 }
 0x17f   :  { %2301 = vtanh.f32 %v310_v36 }
 0x182   :  { %v480_v40 = vpop.f32.mrf.mxu1 }
 0x183   :  { %v2298_v42 = vpop.eup %2297  ;;  %v481_v43 = vadd.f32 %v480_v40, %v2901_v17  ;;  %v240_v44 = vpop.f32.mrf.mxu0 }
 0x184   :  { %v2300_v47 = vpop.eup %2299  ;;  %v241_v50 = vadd.f32 %v240_v44, %v2881_v49  ;;  %767 = vmatmul.f32.gmra.mxu2 %v2298_v42  ;;  %v330_v39 = vpop.f32.mrf.mxu3 }
 0x185   :  { %v2302_v51 = vpop.eup %2301  ;;  %2303 = vtanh.f32 %v481_v43  ;;  %527 = vmatmul.f32.gmra.mxu1 %v2300_v47  ;;  %v331_v43 = vadd.f32 %v330_v39, %v2881_v49 }
 0x186   :  { %2305 = vtanh.f32 %v241_v50  ;;  %287 = vmatmul.f32.gmra.mxu0 %v103_v45  ;;  %599 = vmatmul.f32.gmra.mxu3 %v2302_v51 }
 0x187   :  { %2307 = vtanh.f32 %v313_v46 }
 0x18a   :  { %v483_v52 = vpop.f32.mrf.mxu1 }
 0x18b   :  { %v2304_v54 = vpop.eup %2303  ;;  %v484_v55 = vadd.f32 %v483_v52, %v2901_v17  ;;  %v243_v56 = vpop.f32.mrf.mxu0 }
 0x18c   :  { %v2306_v59 = vpop.eup %2305  ;;  %v244_v60 = vadd.f32 %v243_v56, %v2881_v49  ;;  %770 = vmatmul.f32.gmra.mxu2 %v2304_v54  ;;  %v333_v50 = vpop.f32.mrf.mxu3 }
 0x18d   :  { %v2308_v61 = vpop.eup %2307  ;;  %2309 = vtanh.f32 %v484_v55  ;;  %530 = vmatmul.f32.gmra.mxu1 %v2306_v59  ;;  %v334_v54 = vadd.f32 %v333_v50, %v2881_v49 }
 0x18e   :  { %2311 = vtanh.f32 %v244_v60  ;;  %290 = vmatmul.f32.gmra.mxu0 %v104_v57  ;;  %602 = vmatmul.f32.gmra.mxu3 %v2308_v61  ;;  %v2951_v57 = vperm.slane %v2878_v48, 2 }
 0x18f   :  { %2313 = vtanh.f32 %v316_v58 }
 0x192   :  { %v486_v62 = vpop.f32.mrf.mxu1 }
 0x193   :  { %v2310_v0 = vpop.eup %2309  ;;  %v487_v1 = vadd.f32 %v486_v62, %v2901_v17  ;;  %v246_v2 = vpop.f32.mrf.mxu0 }
 0x194   :  { %v2312_v5 = vpop.eup %2311  ;;  %v247_v6 = vadd.f32 %v246_v2, %v2881_v49  ;;  %773 = vmatmul.f32.gmra.mxu2 %v2310_v0  ;;  %v336_v63 = vpop.f32.mrf.mxu3 }
 0x195   :  { %v2314_v7 = vpop.eup %2313  ;;  %2315 = vtanh.f32 %v487_v1  ;;  %533 = vmatmul.f32.gmra.mxu1 %v2312_v5  ;;  %v337_v48 = vadd.f32 %v336_v63, %v2881_v49 }
 0x196   :  { %2317 = vtanh.f32 %v247_v6  ;;  %293 = vmatmul.f32.gmra.mxu0 %v105_v3  ;;  %605 = vmatmul.f32.gmra.mxu3 %v2314_v7 }
 0x197   :  { %2319 = vtanh.f32 %v319_v4 }
 0x19a   :  { %v489_v8 = vpop.f32.mrf.mxu1 }
 0x19b   :  { %v2316_v10 = vpop.eup %2315  ;;  %v490_v11 = vadd.f32 %v489_v8, %v2901_v17  ;;  %v249_v12 = vpop.f32.mrf.mxu0 }
 0x19c   :  { %v2318_v15 = vpop.eup %2317  ;;  %v250_v16 = vadd.f32 %v249_v12, %v2881_v49  ;;  %776 = vmatmul.f32.gmra.mxu2 %v2316_v10  ;;  %v339_v12 = vpop.f32.mrf.mxu3 }
 0x19d   :  { %v2320_v18 = vpop.eup %2319  ;;  %2321 = vtanh.f32 %v490_v11  ;;  %536 = vmatmul.f32.gmra.mxu1 %v2318_v15 }
 0x19e   :  { %2323 = vtanh.f32 %v250_v16  ;;  %296 = vmatmul.f32.gmra.mxu0 %v106_v13  ;;  %608 = vmatmul.f32.gmra.mxu3 %v2320_v18  ;;  %v340_v16 = vadd.f32 %v339_v12, %v2881_v49 }
 0x19f   :  { %2325 = vtanh.f32 %v322_v14 }
 0x1a2   :  { %v492_v19 = vpop.f32.mrf.mxu1 }
 0x1a3   :  { %v2322_v21 = vpop.eup %2321  ;;  %v493_v22 = vadd.f32 %v492_v19, %v2901_v17  ;;  %v252_v23 = vpop.f32.mrf.mxu0 }
 0x1a4   :  { %v2324_v26 = vpop.eup %2323  ;;  %v253_v27 = vadd.f32 %v252_v23, %v2881_v49  ;;  %779 = vmatmul.f32.gmra.mxu2 %v2322_v21  ;;  %v342_v30 = vpop.f32.mrf.mxu3 }
 0x1a5   :  { %v2326_v28 = vpop.eup %2325  ;;  %2327 = vtanh.f32 %v493_v22  ;;  %539 = vmatmul.f32.gmra.mxu1 %v2324_v26 }
 0x1a6   :  { %2329 = vtanh.f32 %v253_v27  ;;  %299 = vmatmul.f32.gmra.mxu0 %v107_v24  ;;  %611 = vmatmul.f32.gmra.mxu3 %v2326_v28 }
 0x1a7   :  { %2331 = vtanh.f32 %v325_v25 }
 0x1aa   :  { %v495_v29 = vpop.f32.mrf.mxu1 }
 0x1ab   :  { %v2328_v31 = vpop.eup %2327  ;;  %v496_v32 = vadd.f32 %v495_v29, %v2901_v17  ;;  %v255_v33 = vpop.f32.mrf.mxu0 }
 0x1ac   :  { %v2330_v35 = vpop.eup %2329  ;;  %v256_v36 = vadd.f32 %v255_v33, %v2881_v49  ;;  %782 = vmatmul.f32.gmra.mxu2 %v2328_v31 }
 0x1ad   :  { %v2332_v37 = vpop.eup %2331  ;;  %2333 = vtanh.f32 %v496_v32  ;;  %542 = vmatmul.f32.gmra.mxu1 %v2330_v35 }
 0x1ae   :  { %2335 = vtanh.f32 %v256_v36  ;;  %614 = vmatmul.f32.gmra.mxu3 %v2332_v37 }
 0x1af   :  { %2337 = vtanh.f32 %v328_v34  ;;  %v343_v34 = vadd.f32 %v342_v30, %v2881_v49 }
 0x1b2   :  { %v498_v38 = vpop.f32.mrf.mxu1 }
 0x1b3   :  { %v2334_v40 = vpop.eup %2333  ;;  %v499_v41 = vadd.f32 %v498_v38, %v2901_v17  ;;  %v258_v42 = vpop.f32.mrf.mxu0 }
 0x1b4   :  { %v2336_v44 = vpop.eup %2335  ;;  %v259_v45 = vadd.f32 %v258_v42, %v2881_v49  ;;  %785 = vmatmul.f32.gmra.mxu2 %v2334_v40 }
 0x1b5   :  { %v2338_v46 = vpop.eup %2337  ;;  %2339 = vtanh.f32 %v499_v41  ;;  %545 = vmatmul.f32.gmra.mxu1 %v2336_v44 }
 0x1b6   :  { %2341 = vtanh.f32 %v259_v45  ;;  %617 = vmatmul.f32.gmra.mxu3 %v2338_v46 }
 0x1b7   :  { %2343 = vtanh.f32 %v331_v43 }
 0x1ba   :  { %v501_v47 = vpop.f32.mrf.mxu1 }
 0x1bb   :  { %v2340_v51 = vpop.eup %2339  ;;  %v502_v52 = vadd.f32 %v501_v47, %v2901_v17  ;;  %v261_v53 = vpop.f32.mrf.mxu0 }
 0x1bc   :  { %v2342_v55 = vpop.eup %2341  ;;  %v262_v56 = vadd.f32 %v261_v53, %v2881_v49  ;;  %788 = vmatmul.f32.gmra.mxu2 %v2340_v51 }
 0x1bd   :  { %v2344_v58 = vpop.eup %2343  ;;  %2345 = vtanh.f32 %v502_v52  ;;  %548 = vmatmul.f32.gmra.mxu1 %v2342_v55 }
 0x1be   :  { %2347 = vtanh.f32 %v262_v56  ;;  %620 = vmatmul.f32.gmra.mxu3 %v2344_v58  ;;  %v345_v56 = vpop.f32.mrf.mxu3 }
 0x1bf   :  { %v741_v59 = vpop.f32.mrf.mxu2  ;;  %2349 = vtanh.f32 %v334_v54 }
 0x1c0   :  { %v2954_v60 = vadd.f32 %v741_v59, %v2951_v57 }
 0x1c2   :  { %v1125_v61 = vand.u32 2147483647, %v2954_v60  ;;  %v504_v62 = vpop.f32.mrf.mxu1  ;;  %v933_v52 = vmax.f32 %v2954_v60, 0.0  ;;  %vm997_vm1 = vcmp.ne.f32.partialorder %v2954_v60, %v2954_v60 }
 0x1c3   :  { %v2346_v0 = vpop.eup %2345  ;;  %v505_v1 = vadd.f32 %v504_v62, %v2901_v17  ;;  %v264_v2 = vpop.f32.mrf.mxu0 }
 0x1c4   :  { %v2348_v3 = vpop.eup %2347  ;;  %v1189_v4 = vsub.f32 0.0, %v1125_v61  ;;  %v265_v5 = vadd.f32 %v264_v2, %v2881_v49  ;;  %791 = vmatmul.f32.gmra.mxu2 %v2346_v0  ;;  %v346_v0 = vadd.f32 %v345_v56, %v2881_v49 }
 0x1c5   :  { %v2350_v6 = vpop.eup %2349  ;;  %2351 = vtanh.f32 %v505_v1  ;;  %551 = vmatmul.f32.gmra.mxu1 %v2348_v3 }
 0x1c6   :  { %v1253_v7 = vmul.f32 1.442695, %v1189_v4  ;;  %2353 = vtanh.f32 %v265_v5  ;;  %623 = vmatmul.f32.gmra.mxu3 %v2350_v6 }
 0x1c7   :  { %v744_v8 = vpop.f32.mrf.mxu2  ;;  %2355 = vtanh.f32 %v337_v48 }
 0x1c8   :  { %2357 = vpow2.f32 %v1253_v7  ;;  %v2961_v9 = vadd.f32 %v744_v8, %v2951_v57 }
 0x1ca   :  { %v1126_v10 = vand.u32 2147483647, %v2961_v9  ;;  %v507_v11 = vpop.f32.mrf.mxu1  ;;  %vm998_vm3 = vcmp.ne.f32.partialorder %v2961_v9, %v2961_v9 }
 0x1cb   :  { %v2352_v13 = vpop.eup %2351  ;;  %v508_v14 = vadd.f32 %v507_v11, %v2901_v17  ;;  %v267_v15 = vpop.f32.mrf.mxu0 }
 0x1cc   :  { %v2354_v18 = vpop.eup %2353  ;;  %v1190_v19 = vsub.f32 0.0, %v1126_v10  ;;  %v268_v20 = vadd.f32 %v267_v15, %v2881_v49  ;;  %794 = vmatmul.f32.gmra.mxu2 %v2352_v13 }
 0x1cd   :  { %v2356_v21 = vpop.eup %2355  ;;  %2359 = vtanh.f32 %v508_v14  ;;  %554 = vmatmul.f32.gmra.mxu1 %v2354_v18 }
 0x1ce   :  { %v2358_v22 = vpop.eup %2357  ;;  %v1255_v23 = vmul.f32 1.442695, %v1190_v19  ;;  %2361 = vtanh.f32 %v268_v20  ;;  %626 = vmatmul.f32.gmra.mxu3 %v2356_v21  ;;  %v348_v20 = vpop.f32.mrf.mxu3 }
 0x1cf   :  { %v1381_v24 = vadd.f32 1.0, %v2358_v22  ;;  %v747_v25 = vpop.f32.mrf.mxu2  ;;  %2363 = vtanh.f32 %v340_v16  ;;  %v1384_v26 = vmul.f32 -0.5, %v2358_v22  ;;  %v1387_v40 = vand.u32 2147483647, %v2358_v22 }
 0x1d0   :  { %2365 = vpow2.f32 %v1255_v23  ;;  %v2968_v27 = vadd.f32 %v747_v25, %v2951_v57  ;;  %v349_v25 = vadd.f32 %v348_v20, %v2881_v49 }
 0x1d1   :  { %2367 = vlog2.f32 %v1381_v24  ;;  %v1385_v36 = vadd.f32 1.0, %v1384_v26  ;;  %vm1388_vm0 = vcmp.lt.f32.partialorder %v1387_v40, 0.0004427343 }
 0x1d2   :  { %v1127_v28 = vand.u32 2147483647, %v2968_v27  ;;  %v510_v29 = vpop.f32.mrf.mxu1  ;;  %vm999_vm5 = vcmp.ne.f32.partialorder %v2968_v27, %v2968_v27 }
 0x1d3   :  { %v2360_v31 = vpop.eup %2359  ;;  %v511_v32 = vadd.f32 %v510_v29, %v2901_v17  ;;  %v270_v33 = vpop.f32.mrf.mxu0  ;;  %v1386_v50 = vmul.f32 %v2358_v22, %v1385_v36 }
 0x1d4   :  { %v2362_v35 = vpop.eup %2361  ;;  %v1191_v37 = vsub.f32 0.0, %v1127_v28  ;;  %v271_v38 = vadd.f32 %v270_v33, %v2881_v49  ;;  %797 = vmatmul.f32.gmra.mxu2 %v2360_v31 }
 0x1d5   :  { %v2364_v39 = vpop.eup %2363  ;;  %2369 = vtanh.f32 %v511_v32  ;;  %557 = vmatmul.f32.gmra.mxu1 %v2362_v35 }
 0x1d6   :  { %v2366_v41 = vpop.eup %2365  ;;  %v1257_v42 = vmul.f32 1.442695, %v1191_v37  ;;  %2371 = vtanh.f32 %v271_v38  ;;  %629 = vmatmul.f32.gmra.mxu3 %v2364_v39 }
 0x1d7   :  { %v2368_v43 = vpop.eup %2367  ;;  %v1390_v44 = vadd.f32 1.0, %v2366_v41  ;;  %v1393_v45 = vmul.f32 -0.5, %v2366_v41  ;;  %v750_v46 = vpop.f32.mrf.mxu2  ;;  %2373 = vtanh.f32 %v343_v34  ;;  %v1396_v5 = vand.u32 2147483647, %v2366_v41 }
 0x1d8   :  { %v1383_v47 = vmul.f32 0.6931472, %v2368_v43  ;;  %2375 = vpow2.f32 %v1257_v42  ;;  %v2975_v51 = vadd.f32 %v750_v46, %v2951_v57 }
 0x1d9   :  { %2377 = vlog2.f32 %v1390_v44  ;;  %v1394_v61 = vadd.f32 1.0, %v1393_v45  ;;  %vm1397_vm2 = vcmp.lt.f32.partialorder %v1396_v5, 0.0004427343 }
 0x1da   :  { %v1389_v53 = vsel %vm1388_vm0, %v1386_v50, %v1383_v47  ;;  %v1128_v54 = vand.u32 2147483647, %v2975_v51  ;;  %v513_v55 = vpop.f32.mrf.mxu1  ;;  %vm1000_vm7 = vcmp.ne.f32.partialorder %v2975_v51, %v2975_v51 }
 0x1db   :  { %v2370_v58 = vpop.eup %2369  ;;  %v1957_v59 = vadd.f32 %v1389_v53, %v933_v52  ;;  %v514_v62 = vadd.f32 %v513_v55, %v2901_v17  ;;  %v273_v63 = vpop.f32.mrf.mxu0  ;;  %v1395_v10 = vmul.f32 %v2366_v41, %v1394_v61 }
 0x1dc   :  { %v2372_v1 = vpop.eup %2371  ;;  %v1192_v2 = vsub.f32 0.0, %v1128_v54  ;;  %v274_v48 = vadd.f32 %v273_v63, %v2881_v49  ;;  %800 = vmatmul.f32.gmra.mxu2 %v2370_v58 }
 0x1dd   :  { %v2374_v3 = vpop.eup %2373  ;;  %v2021_v4 = vsel %vm997_vm1, %v2954_v60, %v1957_v59  ;;  %2379 = vtanh.f32 %v514_v62  ;;  %560 = vmatmul.f32.gmra.mxu1 %v2372_v1  ;;  %v934_v60 = vmax.f32 %v2961_v9, 0.0 }
 0x1de   :  { %v2376_v6 = vpop.eup %2375  ;;  %2085 = vst [vmem:[#allocation8] sm:$0xff] %v2021_v4  ;;  %v1259_v7 = vmul.f32 1.442695, %v1192_v2  ;;  %2381 = vtanh.f32 %v274_v48  ;;  %632 = vmatmul.f32.gmra.mxu3 %v2374_v3 }
 0x1df   :  { %v2378_v8 = vpop.eup %2377  ;;  %v1399_v11 = vadd.f32 1.0, %v2376_v6  ;;  %v753_v12 = vpop.f32.mrf.mxu2  ;;  %2383 = vtanh.f32 %v346_v0  ;;  %v1402_v14 = vmul.f32 -0.5, %v2376_v6  ;;  %v1405_v33 = vand.u32 2147483647, %v2376_v6 }
 0x1e0   :  { %v1392_v13 = vmul.f32 0.6931472, %v2378_v8  ;;  %2385 = vpow2.f32 %v1259_v7  ;;  %v2986_v15 = vadd.f32 %v753_v12, %v2951_v57 }
 0x1e1   :  { %2387 = vlog2.f32 %v1399_v11  ;;  %v1403_v28 = vadd.f32 1.0, %v1402_v14  ;;  %vm1406_vm4 = vcmp.lt.f32.partialorder %v1405_v33, 0.0004427343 }
 0x1e2   :  { %v1398_v16 = vsel %vm1397_vm2, %v1395_v10, %v1392_v13  ;;  %v1129_v18 = vand.u32 2147483647, %v2986_v15  ;;  %v516_v19 = vpop.f32.mrf.mxu1  ;;  %vm1001_vm9 = vcmp.ne.f32.partialorder %v2986_v15, %v2986_v15 }
 0x1e3   :  { %v2380_v21 = vpop.eup %2379  ;;  %v1958_v22 = vadd.f32 %v1398_v16, %v934_v60  ;;  %v517_v23 = vadd.f32 %v516_v19, %v2901_v17  ;;  %v276_v24 = vpop.f32.mrf.mxu0  ;;  %v1404_v41 = vmul.f32 %v2376_v6, %v1403_v28 }
 0x1e4   :  { %v2382_v26 = vpop.eup %2381  ;;  %v1193_v29 = vsub.f32 0.0, %v1129_v18  ;;  %v277_v30 = vadd.f32 %v276_v24, %v2881_v49  ;;  %803 = vmatmul.f32.gmra.mxu2 %v2380_v21 }
 0x1e5   :  { %v2384_v31 = vpop.eup %2383  ;;  %v2022_v32 = vsel %vm998_vm3, %v2961_v9, %v1958_v22  ;;  %2389 = vtanh.f32 %v517_v23  ;;  %563 = vmatmul.f32.gmra.mxu1 %v2382_v26  ;;  %v935_v9 = vmax.f32 %v2968_v27, 0.0 }
 0x1e6   :  { %v2386_v34 = vpop.eup %2385  ;;  %2086 = vst [vmem:[#allocation8 + $0x8] sm:$0xff] %v2022_v32  ;;  %v1261_v35 = vmul.f32 1.442695, %v1193_v29  ;;  %2391 = vtanh.f32 %v277_v30  ;;  %635 = vmatmul.f32.gmra.mxu3 %v2384_v31  ;;  %v937_v31 = vmax.f32 %v2986_v15, 0.0 }
 0x1e7   :  { %v2388_v36 = vpop.eup %2387  ;;  %v1408_v37 = vadd.f32 1.0, %v2386_v34  ;;  %v1411_v38 = vmul.f32 -0.5, %v2386_v34  ;;  %v756_v39 = vpop.f32.mrf.mxu2  ;;  %2393 = vtanh.f32 %v349_v25  ;;  %v1414_v61 = vand.u32 2147483647, %v2386_v34 }
 0x1e8   :  { %v1401_v40 = vmul.f32 0.6931472, %v2388_v36  ;;  %2395 = vpow2.f32 %v1261_v35  ;;  %v2997_v42 = vadd.f32 %v756_v39, %v2951_v57 }
 0x1e9   :  { %2397 = vlog2.f32 %v1408_v37  ;;  %v1412_v50 = vadd.f32 1.0, %v1411_v38  ;;  %vm1415_vm6 = vcmp.lt.f32.partialorder %v1414_v61, 0.0004427343 }
 0x1ea   :  { %v1407_v43 = vsel %vm1406_vm4, %v1404_v41, %v1401_v40  ;;  %v1130_v44 = vand.u32 2147483647, %v2997_v42  ;;  %v519_v45 = vpop.f32.mrf.mxu1  ;;  %vm1002_vm11 = vcmp.ne.f32.partialorder %v2997_v42, %v2997_v42 }
 0x1eb   :  { %v2390_v46 = vpop.eup %2389  ;;  %v1959_v47 = vadd.f32 %v1407_v43, %v935_v9  ;;  %v520_v52 = vadd.f32 %v519_v45, %v2901_v17  ;;  %v279_v53 = vpop.f32.mrf.mxu0  ;;  %v1413_v1 = vmul.f32 %v2386_v34, %v1412_v50 }
 0x1ec   :  { %v2392_v54 = vpop.eup %2391  ;;  %v1194_v55 = vsub.f32 0.0, %v1130_v44  ;;  %v280_v56 = vadd.f32 %v279_v53, %v2881_v49  ;;  %806 = vmatmul.f32.gmra.mxu2 %v2390_v46 }
 0x1ed   :  { %v2394_v58 = vpop.eup %2393  ;;  %v2023_v59 = vsel %vm999_vm5, %v2968_v27, %v1959_v47  ;;  %2399 = vtanh.f32 %v520_v52  ;;  %566 = vmatmul.f32.gmra.mxu1 %v2392_v54  ;;  %v936_v27 = vmax.f32 %v2975_v51, 0.0 }
 0x1ee   :  { %v2396_v62 = vpop.eup %2395  ;;  %2087 = vst [vmem:[#allocation8 + $0x10] sm:$0xff] %v2023_v59  ;;  %v1263_v63 = vmul.f32 1.442695, %v1194_v55  ;;  %2401 = vtanh.f32 %v280_v56  ;;  %638 = vmatmul.f32.gmra.mxu3 %v2394_v58 }
 0x1ef   :  { %v2398_v0 = vpop.eup %2397  ;;  %v1417_v2 = vadd.f32 1.0, %v2396_v62  ;;  %v759_v48 = vpop.f32.mrf.mxu2  ;;  %v1420_v4 = vmul.f32 -0.5, %v2396_v62  ;;  %v1423_v20 = vand.u32 2147483647, %v2396_v62 }
 0x1f0   :  { %v1410_v3 = vmul.f32 0.6931472, %v2398_v0  ;;  %2403 = vpow2.f32 %v1263_v63  ;;  %v3007_v5 = vadd.f32 %v759_v48, %v2951_v57 }
 0x1f1   :  { %2405 = vlog2.f32 %v1417_v2  ;;  %v1421_v60 = vadd.f32 1.0, %v1420_v4  ;;  %vm1424_vm8 = vcmp.lt.f32.partialorder %v1423_v20, 0.0004427343 }
 0x1f2   :  { %v1416_v6 = vsel %vm1415_vm6, %v1413_v1, %v1410_v3  ;;  %v1131_v7 = vand.u32 2147483647, %v3007_v5  ;;  %v522_v8 = vpop.f32.mrf.mxu1  ;;  %vm1003_vm13 = vcmp.ne.f32.partialorder %v3007_v5, %v3007_v5 }
 0x1f3   :  { %v2400_v10 = vpop.eup %2399  ;;  %v1960_v11 = vadd.f32 %v1416_v6, %v936_v27  ;;  %v523_v12 = vadd.f32 %v522_v8, %v2901_v17  ;;  %v282_v13 = vpop.f32.mrf.mxu0  ;;  %v1422_v29 = vmul.f32 %v2396_v62, %v1421_v60 }
 0x1f4   :  { %v2402_v14 = vpop.eup %2401  ;;  %v1195_v16 = vsub.f32 0.0, %v1131_v7  ;;  %v283_v18 = vadd.f32 %v282_v13, %v2881_v49  ;;  %809 = vmatmul.f32.gmra.mxu2 %v2400_v10 }
 0x1f5   :  { %v2024_v19 = vsel %vm1000_vm7, %v2975_v51, %v1960_v11  ;;  %2407 = vtanh.f32 %v523_v12  ;;  %569 = vmatmul.f32.gmra.mxu1 %v2402_v14 }
 0x1f6   :  { %v2404_v21 = vpop.eup %2403  ;;  %2088 = vst [vmem:[#allocation8 + $0x18] sm:$0xff] %v2024_v19  ;;  %v1265_v22 = vmul.f32 1.442695, %v1195_v16  ;;  %2409 = vtanh.f32 %v283_v18 }
 0x1f7   :  { %v2406_v23 = vpop.eup %2405  ;;  %v1426_v24 = vadd.f32 1.0, %v2404_v21  ;;  %v1429_v25 = vmul.f32 -0.5, %v2404_v21  ;;  %v762_v26 = vpop.f32.mrf.mxu2  ;;  %v1432_v45 = vand.u32 2147483647, %v2404_v21 }
 0x1f8   :  { %v1419_v28 = vmul.f32 0.6931472, %v2406_v23  ;;  %2411 = vpow2.f32 %v1265_v22  ;;  %v3017_v30 = vadd.f32 %v762_v26, %v2951_v57 }
 0x1f9   :  { %2413 = vlog2.f32 %v1426_v24  ;;  %v594_v51 = vpop.f32.mrf.mxu3  ;;  %v1430_v37 = vadd.f32 1.0, %v1429_v25  ;;  %vm1433_vm10 = vcmp.lt.f32.partialorder %v1432_v45, 0.0004427343 }
 0x1fa   :  { %v1425_v32 = vsel %vm1424_vm8, %v1422_v29, %v1419_v28  ;;  %v1132_v33 = vand.u32 2147483647, %v3017_v30  ;;  %v525_v34 = vpop.f32.mrf.mxu1  ;;  %v595_v40 = vadd.f32 %v594_v51, %v2901_v17  ;;  %vm1004_vm15 = vcmp.ne.f32.partialorder %v3017_v30, %v3017_v30 }
 0x1fb   :  { %v2408_v35 = vpop.eup %2407  ;;  %v1961_v36 = vadd.f32 %v1425_v32, %v937_v31  ;;  %v526_v38 = vadd.f32 %v525_v34, %v2901_v17  ;;  %v285_v39 = vpop.f32.mrf.mxu0  ;;  %v1431_v52 = vmul.f32 %v2404_v21, %v1430_v37 }
 0x1fc   :  { %v2410_v41 = vpop.eup %2409  ;;  %v1196_v9 = vsub.f32 0.0, %v1132_v33  ;;  %v286_v43 = vadd.f32 %v285_v39, %v2881_v49  ;;  %812 = vmatmul.f32.gmra.mxu2 %v2408_v35 }
 0x1fd   :  { %v2025_v44 = vsel %vm1001_vm9, %v2986_v15, %v1961_v36  ;;  %2415 = vtanh.f32 %v526_v38  ;;  %572 = vmatmul.f32.gmra.mxu1 %v2410_v41  ;;  %v938_v15 = vmax.f32 %v2997_v42, 0.0 }
 0x1fe   :  { %v2412_v46 = vpop.eup %2411  ;;  %2089 = vst [vmem:[#allocation8 + $0x20] sm:$0xff] %v2025_v44  ;;  %v1267_v47 = vmul.f32 1.442695, %v1196_v9  ;;  %2417 = vtanh.f32 %v286_v43 }
 0x1ff   :  { %v2414_v50 = vpop.eup %2413  ;;  %v1435_v53 = vadd.f32 1.0, %v2412_v46  ;;  %v765_v54 = vpop.f32.mrf.mxu2  ;;  %2419 = vtanh.f32 %v595_v40  ;;  %v1438_v56 = vmul.f32 -0.5, %v2412_v46  ;;  %v1441_v11 = vand.u32 2147483647, %v2412_v46 }
 0x200   :  { %v1428_v55 = vmul.f32 0.6931472, %v2414_v50  ;;  %2421 = vpow2.f32 %v1267_v47  ;;  %v3028_v58 = vadd.f32 %v765_v54, %v2951_v57 }
 0x201   :  { %2423 = vlog2.f32 %v1435_v53  ;;  %v597_v59 = vpop.f32.mrf.mxu3  ;;  %v1439_v27 = vadd.f32 1.0, %v1438_v56  ;;  %vm1442_vm12 = vcmp.lt.f32.partialorder %v1441_v11, 0.0004427343 }
 0x202   :  { %v1434_v61 = vsel %vm1433_vm10, %v1431_v52, %v1428_v55  ;;  %v1133_v62 = vand.u32 2147483647, %v3028_v58  ;;  %v528_v63 = vpop.f32.mrf.mxu1  ;;  %v598_v3 = vadd.f32 %v597_v59, %v2901_v17  ;;  %vm1005_vm1 = vcmp.ne.f32.partialorder %v3028_v58, %v3028_v58 }
 0x203   :  { %v2416_v0 = vpop.eup %2415  ;;  %v1962_v1 = vadd.f32 %v1434_v61, %v938_v15  ;;  %v529_v2 = vadd.f32 %v528_v63, %v2901_v17  ;;  %v288_v48 = vpop.f32.mrf.mxu0  ;;  %v1440_v20 = vmul.f32 %v2412_v46, %v1439_v27 }
 0x204   :  { %v2418_v4 = vpop.eup %2417  ;;  %v1197_v6 = vsub.f32 0.0, %v1133_v62  ;;  %v289_v7 = vadd.f32 %v288_v48, %v2881_v49  ;;  %815 = vmatmul.f32.gmra.mxu2 %v2416_v0 }
 0x205   :  { %v2420_v8 = vpop.eup %2419  ;;  %v2026_v10 = vsel %vm1002_vm11, %v2997_v42, %v1962_v1  ;;  %2425 = vtanh.f32 %v529_v2  ;;  %575 = vmatmul.f32.gmra.mxu1 %v2418_v4  ;;  %v939_v42 = vmax.f32 %v3007_v5, 0.0 }
 0x206   :  { %v2422_v12 = vpop.eup %2421  ;;  %2090 = vst [vmem:[#allocation8 + $0x28] sm:$0xff] %v2026_v10  ;;  %v1269_v13 = vmul.f32 1.442695, %v1197_v6  ;;  %2427 = vtanh.f32 %v289_v7  ;;  %884 = vmatmul.f32.vlgmr.msra.gmra.mxu3 %v2420_v8 }
 0x207   :  { %v2424_v14 = vpop.eup %2423  ;;  %v1444_v60 = vadd.f32 1.0, %v2422_v12  ;;  %v1447_v16 = vmul.f32 -0.5, %v2422_v12  ;;  %v768_v18 = vpop.f32.mrf.mxu2  ;;  %2429 = vtanh.f32 %v598_v3  ;;  %v1450_v38 = vand.u32 2147483647, %v2422_v12 }
 0x208   :  { %v1437_v19 = vmul.f32 0.6931472, %v2424_v14  ;;  %2431 = vpow2.f32 %v1269_v13  ;;  %v3039_v21 = vadd.f32 %v768_v18, %v2951_v57 }
 0x209   :  { %2433 = vlog2.f32 %v1444_v60  ;;  %v600_v22 = vpop.f32.mrf.mxu3  ;;  %v1448_v29 = vadd.f32 1.0, %v1447_v16  ;;  %vm1451_vm14 = vcmp.lt.f32.partialorder %v1450_v38, 0.0004427343 }
 0x20a   :  { %v1443_v23 = vsel %vm1442_vm12, %v1440_v20, %v1437_v19  ;;  %v1134_v24 = vand.u32 2147483647, %v3039_v21  ;;  %v531_v25 = vpop.f32.mrf.mxu1  ;;  %v601_v32 = vadd.f32 %v600_v22, %v2901_v17  ;;  %vm1006_vm3 = vcmp.ne.f32.partialorder %v3039_v21, %v3039_v21 }
 0x20b   :  { %v2426_v26 = vpop.eup %2425  ;;  %v1963_v28 = vadd.f32 %v1443_v23, %v939_v42  ;;  %v532_v31 = vadd.f32 %v531_v25, %v2901_v17  ;;  %v291_v51 = vpop.f32.mrf.mxu0  ;;  %v1449_v9 = vmul.f32 %v2422_v12, %v1448_v29 }
 0x20c   :  { %v2428_v33 = vpop.eup %2427  ;;  %v1198_v34 = vsub.f32 0.0, %v1134_v24  ;;  %v292_v35 = vadd.f32 %v291_v51, %v2881_v49  ;;  %818 = vmatmul.f32.gmra.mxu2 %v2426_v26 }
 0x20d   :  { %v2430_v36 = vpop.eup %2429  ;;  %v2027_v37 = vsel %vm1003_vm13, %v3007_v5, %v1963_v28  ;;  %2435 = vtanh.f32 %v532_v31  ;;  %578 = vmatmul.f32.gmra.mxu1 %v2428_v33  ;;  %v940_v5 = vmax.f32 %v3017_v30, 0.0 }
 0x20e   :  { %v2432_v39 = vpop.eup %2431  ;;  %2091 = vst [vmem:[#allocation8 + $0x30] sm:$0xff] %v2027_v37  ;;  %v1271_v40 = vmul.f32 1.442695, %v1198_v34  ;;  %2437 = vtanh.f32 %v292_v35  ;;  %887 = vmatmul.f32.gmra.mxu3 %v2430_v36 }
 0x20f   :  { %v2434_v41 = vpop.eup %2433  ;;  %v1453_v43 = vadd.f32 1.0, %v2432_v39  ;;  %v771_v44 = vpop.f32.mrf.mxu2  ;;  %2439 = vtanh.f32 %v601_v32  ;;  %v1456_v46 = vmul.f32 -0.5, %v2432_v39  ;;  %v1459_v3 = vand.u32 2147483647, %v2432_v39 }
 0x210   :  { %v1446_v45 = vmul.f32 0.6931472, %v2434_v41  ;;  %2441 = vpow2.f32 %v1271_v40  ;;  %v3050_v47 = vadd.f32 %v771_v44, %v2951_v57 }
 0x211   :  { %2443 = vlog2.f32 %v1453_v43  ;;  %v603_v50 = vpop.f32.mrf.mxu3  ;;  %v1457_v63 = vadd.f32 1.0, %v1456_v46  ;;  %vm1460_vm0 = vcmp.lt.f32.partialorder %v1459_v3, 0.0004427343 }
 0x212   :  { %v1452_v52 = vsel %vm1451_vm14, %v1449_v9, %v1446_v45  ;;  %v1135_v53 = vand.u32 2147483647, %v3050_v47  ;;  %v534_v54 = vpop.f32.mrf.mxu1  ;;  %v604_v61 = vadd.f32 %v603_v50, %v2901_v17  ;;  %vm1007_vm5 = vcmp.ne.f32.partialorder %v3050_v47, %v3050_v47 }
 0x213   :  { %v2436_v55 = vpop.eup %2435  ;;  %v1964_v56 = vadd.f32 %v1452_v52, %v940_v5  ;;  %v535_v15 = vadd.f32 %v534_v54, %v2901_v17  ;;  %v294_v59 = vpop.f32.mrf.mxu0  ;;  %v1458_v12 = vmul.f32 %v2432_v39, %v1457_v63 }
 0x214   :  { %v2438_v62 = vpop.eup %2437  ;;  %v1199_v0 = vsub.f32 0.0, %v1135_v53  ;;  %v295_v1 = vadd.f32 %v294_v59, %v2881_v49  ;;  %821 = vmatmul.f32.gmra.mxu2 %v2436_v55 }
 0x215   :  { %v2440_v2 = vpop.eup %2439  ;;  %v2028_v48 = vsel %vm1004_vm15, %v3017_v30, %v1964_v56  ;;  %2445 = vtanh.f32 %v535_v15  ;;  %581 = vmatmul.f32.gmra.mxu1 %v2438_v62  ;;  %v941_v30 = vmax.f32 %v3028_v58, 0.0 }
 0x216   :  { %v2442_v4 = vpop.eup %2441  ;;  %2092 = vst [vmem:[#allocation8 + $0x38] sm:$0xff] %v2028_v48  ;;  %v1273_v27 = vmul.f32 1.442695, %v1199_v0  ;;  %2447 = vtanh.f32 %v295_v1  ;;  %890 = vmatmul.f32.gmra.mxu3 %v2440_v2 }
 0x217   :  { %v2444_v6 = vpop.eup %2443  ;;  %v1462_v7 = vadd.f32 1.0, %v2442_v4  ;;  %v1465_v8 = vmul.f32 -0.5, %v2442_v4  ;;  %v774_v10 = vpop.f32.mrf.mxu2  ;;  %2449 = vtanh.f32 %v604_v61  ;;  %v1468_v51 = vand.u32 2147483647, %v2442_v4 }
 0x218   :  { %v1455_v11 = vmul.f32 0.6931472, %v2444_v6  ;;  %2451 = vpow2.f32 %v1273_v27  ;;  %v3061_v13 = vadd.f32 %v774_v10, %v2951_v57 }
 0x219   :  { %2453 = vlog2.f32 %v1462_v7  ;;  %v606_v14 = vpop.f32.mrf.mxu3  ;;  %v1466_v42 = vadd.f32 1.0, %v1465_v8  ;;  %vm1469_vm2 = vcmp.lt.f32.partialorder %v1468_v51, 0.0004427343 }
 0x21a   :  { %v1461_v60 = vsel %vm1460_vm0, %v1458_v12, %v1455_v11  ;;  %v1136_v16 = vand.u32 2147483647, %v3061_v13  ;;  %v537_v18 = vpop.f32.mrf.mxu1  ;;  %v607_v24 = vadd.f32 %v606_v14, %v2901_v17  ;;  %vm1008_vm7 = vcmp.ne.f32.partialorder %v3061_v13, %v3061_v13 }
 0x21b   :  { %v2446_v19 = vpop.eup %2445  ;;  %v1965_v20 = vadd.f32 %v1461_v60, %v941_v30  ;;  %v538_v22 = vadd.f32 %v537_v18, %v2901_v17  ;;  %v297_v23 = vpop.f32.mrf.mxu0  ;;  %v1467_v35 = vmul.f32 %v2442_v4, %v1466_v42 }
 0x21c   :  { %v2448_v25 = vpop.eup %2447  ;;  %v1200_v26 = vsub.f32 0.0, %v1136_v16  ;;  %v298_v28 = vadd.f32 %v297_v23, %v2881_v49  ;;  %824 = vmatmul.f32.gmra.mxu2 %v2446_v19 }
 0x21d   :  { %v2450_v29 = vpop.eup %2449  ;;  %v2029_v31 = vsel %vm1005_vm1, %v3028_v58, %v1965_v20  ;;  %2455 = vtanh.f32 %v538_v22  ;;  %584 = vmatmul.f32.gmra.mxu1 %v2448_v25  ;;  %v942_v58 = vmax.f32 %v3039_v21, 0.0 }
 0x21e   :  { %v2452_v32 = vpop.eup %2451  ;;  %2093 = vst [vmem:[#allocation8 + $0x40] sm:$0xff] %v2029_v31  ;;  %v1275_v33 = vmul.f32 1.442695, %v1200_v26  ;;  %2457 = vtanh.f32 %v298_v28  ;;  %893 = vmatmul.f32.gmra.mxu3 %v2450_v29 }
 0x21f   :  { %v2454_v34 = vpop.eup %2453  ;;  %v1471_v36 = vadd.f32 1.0, %v2452_v32  ;;  %v777_v37 = vpop.f32.mrf.mxu2  ;;  %2459 = vtanh.f32 %v607_v24  ;;  %v1474_v39 = vmul.f32 -0.5, %v2452_v32  ;;  %v1477_v61 = vand.u32 2147483647, %v2452_v32 }
 0x220   :  { %v1464_v38 = vmul.f32 0.6931472, %v2454_v34  ;;  %2461 = vpow2.f32 %v1275_v33  ;;  %v3072_v40 = vadd.f32 %v777_v37, %v2951_v57 }
 0x221   :  { %2463 = vlog2.f32 %v1471_v36  ;;  %v609_v41 = vpop.f32.mrf.mxu3  ;;  %v1475_v54 = vadd.f32 1.0, %v1474_v39  ;;  %vm1478_vm4 = vcmp.lt.f32.partialorder %v1477_v61, 0.0004427343 }
 0x222   :  { %v1470_v9 = vsel %vm1469_vm2, %v1467_v35, %v1464_v38  ;;  %v1137_v43 = vand.u32 2147483647, %v3072_v40  ;;  %v540_v44 = vpop.f32.mrf.mxu1  ;;  %v610_v52 = vadd.f32 %v609_v41, %v2901_v17  ;;  %vm1009_vm9 = vcmp.ne.f32.partialorder %v3072_v40, %v3072_v40 }
 0x223   :  { %v2456_v45 = vpop.eup %2455  ;;  %v1966_v46 = vadd.f32 %v1470_v9, %v942_v58  ;;  %v541_v5 = vadd.f32 %v540_v44, %v2901_v17  ;;  %v300_v50 = vpop.f32.mrf.mxu0  ;;  %v1476_v4 = vmul.f32 %v2452_v32, %v1475_v54 }
 0x224   :  { %v2458_v53 = vpop.eup %2457  ;;  %v1201_v55 = vsub.f32 0.0, %v1137_v43  ;;  %v301_v56 = vadd.f32 %v300_v50, %v2881_v49  ;;  %827 = vmatmul.f32.gmra.mxu2 %v2456_v45 }
 0x225   :  { %v2460_v15 = vpop.eup %2459  ;;  %v2030_v59 = vsel %vm1006_vm3, %v3039_v21, %v1966_v46  ;;  %2465 = vtanh.f32 %v541_v5  ;;  %587 = vmatmul.f32.gmra.mxu1 %v2458_v53  ;;  %v943_v21 = vmax.f32 %v3050_v47, 0.0 }
 0x226   :  { %v2462_v62 = vpop.eup %2461  ;;  %2094 = vst [vmem:[#allocation8 + $0x48] sm:$0xff] %v2030_v59  ;;  %v1277_v63 = vmul.f32 1.442695, %v1201_v55  ;;  %2467 = vtanh.f32 %v301_v56  ;;  %896 = vmatmul.f32.gmra.mxu3 %v2460_v15  ;;  %v945_v56 = vmax.f32 %v3072_v40, 0.0 }
 0x227   :  { %v2464_v0 = vpop.eup %2463  ;;  %v1480_v1 = vadd.f32 1.0, %v2462_v62  ;;  %v1483_v2 = vmul.f32 -0.5, %v2462_v62  ;;  %v780_v48 = vpop.f32.mrf.mxu2  ;;  %2469 = vtanh.f32 %v610_v52  ;;  %v1486_v20 = vand.u32 2147483647, %v2462_v62 }
 0x228   :  { %v1473_v3 = vmul.f32 0.6931472, %v2464_v0  ;;  %2471 = vpow2.f32 %v1277_v63  ;;  %v3083_v49 = vadd.f32 %v780_v48, %v2951_v57 }
 0x229   :  { %2473 = vlog2.f32 %v1480_v1  ;;  %v612_v27 = vpop.f32.mrf.mxu3  ;;  %v1484_v12 = vadd.f32 1.0, %v1483_v2  ;;  %vm1487_vm6 = vcmp.lt.f32.partialorder %v1486_v20, 0.0004427343 }
 0x22a   :  { %v1479_v6 = vsel %vm1478_vm4, %v1476_v4, %v1473_v3  ;;  %v1138_v7 = vand.u32 2147483647, %v3083_v49  ;;  %v543_v8 = vpop.f32.mrf.mxu1  ;;  %v613_v14 = vadd.f32 %v612_v27, %v2901_v17  ;;  %vm1010_vm11 = vcmp.ne.f32.partialorder %v3083_v49, %v3083_v49 }
 0x22b   :  { %v2466_v10 = vpop.eup %2465  ;;  %v1967_v11 = vadd.f32 %v1479_v6, %v943_v21  ;;  %v544_v30 = vadd.f32 %v543_v8, %v2901_v17  ;;  %v1485_v24 = vmul.f32 %v2462_v62, %v1484_v12 }
 0x22c   :  { %v2468_v60 = vpop.eup %2467  ;;  %v1202_v16 = vsub.f32 0.0, %v1138_v7  ;;  %830 = vmatmul.f32.gmra.mxu2 %v2466_v10 }
 0x22d   :  { %v2470_v18 = vpop.eup %2469  ;;  %v2031_v19 = vsel %vm1007_vm5, %v3050_v47, %v1967_v11  ;;  %2475 = vtanh.f32 %v544_v30  ;;  %590 = vmatmul.f32.gmra.mxu1 %v2468_v60  ;;  %v944_v47 = vmax.f32 %v3061_v13, 0.0  ;;  %v946_v60 = vmax.f32 %v3083_v49, 0.0 }
 0x22e   :  { %v2472_v42 = vpop.eup %2471  ;;  %2095 = vst [vmem:[#allocation8 + $0x50] sm:$0xff] %v2031_v19  ;;  %v1279_v22 = vmul.f32 1.442695, %v1202_v16  ;;  %2477 = vtanh.f32 %v613_v14  ;;  %899 = vmatmul.f32.gmra.mxu3 %v2470_v18 }
 0x22f   :  { %v2474_v23 = vpop.eup %2473  ;;  %v1489_v25 = vadd.f32 1.0, %v2472_v42  ;;  %v783_v26 = vpop.f32.mrf.mxu2  ;;  %v1492_v29 = vmul.f32 -0.5, %v2472_v42  ;;  %v1495_v43 = vand.u32 2147483647, %v2472_v42 }
 0x230   :  { %v1482_v28 = vmul.f32 0.6931472, %v2474_v23  ;;  %2479 = vpow2.f32 %v1279_v22  ;;  %v3093_v31 = vadd.f32 %v783_v26, %v2951_v57 }
 0x231   :  { %2481 = vlog2.f32 %v1489_v25  ;;  %v615_v51 = vpop.f32.mrf.mxu3  ;;  %v1493_v58 = vadd.f32 1.0, %v1492_v29  ;;  %vm1496_vm8 = vcmp.lt.f32.partialorder %v1495_v43, 0.0004427343 }
 0x232   :  { %v1488_v32 = vsel %vm1487_vm6, %v1485_v24, %v1482_v28  ;;  %v1139_v33 = vand.u32 2147483647, %v3093_v31  ;;  %v546_v34 = vpop.f32.mrf.mxu1  ;;  %v616_v38 = vadd.f32 %v615_v51, %v2901_v17  ;;  %vm1011_vm13 = vcmp.ne.f32.partialorder %v3093_v31, %v3093_v31 }
 0x233   :  { %v2476_v35 = vpop.eup %2475  ;;  %v1968_v36 = vadd.f32 %v1488_v32, %v944_v47  ;;  %v547_v37 = vadd.f32 %v546_v34, %v2901_v17  ;;  %v1494_v54 = vmul.f32 %v2472_v42, %v1493_v58 }
 0x234   :  { %v2478_v39 = vpop.eup %2477  ;;  %v1203_v41 = vsub.f32 0.0, %v1139_v33  ;;  %833 = vmatmul.f32.gmra.mxu2 %v2476_v35 }
 0x235   :  { %v2032_v9 = vsel %vm1008_vm7, %v3061_v13, %v1968_v36  ;;  %2483 = vtanh.f32 %v547_v37 }
 0x236   :  { %v2480_v44 = vpop.eup %2479  ;;  %2096 = vst [vmem:[#allocation8 + $0x58] sm:$0xff] %v2032_v9  ;;  %v1281_v45 = vmul.f32 1.442695, %v1203_v41  ;;  %2485 = vtanh.f32 %v616_v38  ;;  %902 = vmatmul.f32.gmra.mxu3 %v2478_v39  ;;  %v947_v39 = vmax.f32 %v3093_v31, 0.0 }
 0x237   :  { %v2482_v46 = vpop.eup %2481  ;;  %v1498_v5 = vadd.f32 1.0, %v2480_v44  ;;  %v1501_v50 = vmul.f32 -0.5, %v2480_v44  ;;  %v786_v52 = vpop.f32.mrf.mxu2  ;;  %v1504_v21 = vand.u32 2147483647, %v2480_v44 }
 0x238   :  { %v1491_v53 = vmul.f32 0.6931472, %v2482_v46  ;;  %2487 = vpow2.f32 %v1281_v45  ;;  %v3103_v55 = vadd.f32 %v786_v52, %v2951_v57 }
 0x239   :  { %2489 = vlog2.f32 %v1498_v5  ;;  %v618_v13 = vpop.f32.mrf.mxu3  ;;  %v1502_v0 = vadd.f32 1.0, %v1501_v50  ;;  %vm1505_vm10 = vcmp.lt.f32.partialorder %v1504_v21, 0.0004427343 }
 0x23a   :  { %v1497_v15 = vsel %vm1496_vm8, %v1494_v54, %v1491_v53  ;;  %v1140_v59 = vand.u32 2147483647, %v3103_v55  ;;  %v549_v61 = vpop.f32.mrf.mxu1  ;;  %v619_v2 = vadd.f32 %v618_v13, %v2901_v17  ;;  %vm1012_vm15 = vcmp.ne.f32.partialorder %v3103_v55, %v3103_v55 }
 0x23b   :  { %v2484_v62 = vpop.eup %2483  ;;  %v1969_v63 = vadd.f32 %v1497_v15, %v945_v56  ;;  %v550_v1 = vadd.f32 %v549_v61, %v2901_v17  ;;  %v1503_v8 = vmul.f32 %v2480_v44, %v1502_v0 }
 0x23c   :  { %v2486_v48 = vpop.eup %2485  ;;  %v1204_v3 = vsub.f32 0.0, %v1140_v59  ;;  %836 = vmatmul.f32.gmra.mxu2 %v2484_v62 }
 0x23d   :  { %v2033_v4 = vsel %vm1009_vm9, %v3072_v40, %v1969_v63  ;;  %2491 = vtanh.f32 %v550_v1 }
 0x23e   :  { %v2488_v27 = vpop.eup %2487  ;;  %2097 = vst [vmem:[#allocation8 + $0x60] sm:$0xff] %v2033_v4  ;;  %v1283_v6 = vmul.f32 1.442695, %v1204_v3  ;;  %2493 = vtanh.f32 %v619_v2  ;;  %905 = vmatmul.f32.gmra.mxu3 %v2486_v48  ;;  %v948_v2 = vmax.f32 %v3103_v55, 0.0 }
 0x23f   :  { %v2490_v7 = vpop.eup %2489  ;;  %v1507_v10 = vadd.f32 1.0, %v2488_v27  ;;  %v789_v11 = vpop.f32.mrf.mxu2  ;;  %v1510_v30 = vmul.f32 -0.5, %v2488_v27  ;;  %v1513_v29 = vand.u32 2147483647, %v2488_v27 }
 0x240   :  { %v1500_v12 = vmul.f32 0.6931472, %v2490_v7  ;;  %2495 = vpow2.f32 %v1283_v6  ;;  %v3113_v14 = vadd.f32 %v789_v11, %v2951_v57 }
 0x241   :  { %2497 = vlog2.f32 %v1507_v10  ;;  %v621_v40 = vpop.f32.mrf.mxu3  ;;  %v1511_v25 = vadd.f32 1.0, %v1510_v30  ;;  %vm1514_vm12 = vcmp.lt.f32.partialorder %v1513_v29, 0.0004427343 }
 0x242   :  { %v1506_v16 = vsel %vm1505_vm10, %v1503_v8, %v1500_v12  ;;  %v1141_v18 = vand.u32 2147483647, %v3113_v14  ;;  %v552_v19 = vpop.f32.mrf.mxu1  ;;  %v622_v23 = vadd.f32 %v621_v40, %v2901_v17  ;;  %vm1013_vm1 = vcmp.ne.f32.partialorder %v3113_v14, %v3113_v14 }
 0x243   :  { %v2492_v20 = vpop.eup %2491  ;;  %v1970_v42 = vadd.f32 %v1506_v16, %v946_v60  ;;  %v553_v22 = vadd.f32 %v552_v19, %v2901_v17  ;;  %v1512_v37 = vmul.f32 %v2488_v27, %v1511_v25 }
 0x244   :  { %v2494_v24 = vpop.eup %2493  ;;  %v1205_v26 = vsub.f32 0.0, %v1141_v18  ;;  %839 = vmatmul.f32.gmra.mxu2 %v2492_v20 }
 0x245   :  { %v2034_v28 = vsel %vm1010_vm11, %v3083_v49, %v1970_v42  ;;  %2499 = vtanh.f32 %v553_v22 }
 0x246   :  { %v2496_v47 = vpop.eup %2495  ;;  %2098 = vst [vmem:[#allocation8 + $0x68] sm:$0xff] %v2034_v28  ;;  %v1285_v51 = vmul.f32 1.442695, %v1205_v26  ;;  %2501 = vtanh.f32 %v622_v23  ;;  %908 = vmatmul.f32.gmra.mxu3 %v2494_v24  ;;  %v949_v24 = vmax.f32 %v3113_v14, 0.0 }
 0x247   :  { %v2498_v32 = vpop.eup %2497  ;;  %v1516_v33 = vadd.f32 1.0, %v2496_v47  ;;  %v1519_v34 = vmul.f32 -0.5, %v2496_v47  ;;  %v792_v35 = vpop.f32.mrf.mxu2  ;;  %v1522_v54 = vand.u32 2147483647, %v2496_v47 }
 0x248   :  { %v1509_v36 = vmul.f32 0.6931472, %v2498_v32  ;;  %2503 = vpow2.f32 %v1285_v51  ;;  %v3123_v38 = vadd.f32 %v792_v35, %v2951_v57 }
 0x249   :  { %2505 = vlog2.f32 %v1516_v33  ;;  %v624_v49 = vpop.f32.mrf.mxu3  ;;  %v1520_v45 = vadd.f32 1.0, %v1519_v34  ;;  %vm1523_vm14 = vcmp.lt.f32.partialorder %v1522_v54, 0.0004427343 }
 0x24a   :  { %v1515_v58 = vsel %vm1514_vm12, %v1512_v37, %v1509_v36  ;;  %v1142_v41 = vand.u32 2147483647, %v3123_v38  ;;  %v555_v9 = vpop.f32.mrf.mxu1  ;;  %v625_v5 = vadd.f32 %v624_v49, %v2901_v17  ;;  %vm1014_vm3 = vcmp.ne.f32.partialorder %v3123_v38, %v3123_v38 }
 0x24b   :  { %v2500_v43 = vpop.eup %2499  ;;  %v1971_v44 = vadd.f32 %v1515_v58, %v947_v39  ;;  %v556_v46 = vadd.f32 %v555_v9, %v2901_v17  ;;  %v1521_v59 = vmul.f32 %v2496_v47, %v1520_v45 }
 0x24c   :  { %v2502_v50 = vpop.eup %2501  ;;  %v1206_v52 = vsub.f32 0.0, %v1142_v41  ;;  %842 = vmatmul.f32.gmra.mxu2 %v2500_v43 }
 0x24d   :  { %v2035_v53 = vsel %vm1011_vm13, %v3093_v31, %v1971_v44  ;;  %2507 = vtanh.f32 %v556_v46 }
 0x24e   :  { %v2504_v56 = vpop.eup %2503  ;;  %2099 = vst [vmem:[#allocation8 + $0x70] sm:$0xff] %v2035_v53  ;;  %v1287_v13 = vmul.f32 1.442695, %v1206_v52  ;;  %2509 = vtanh.f32 %v625_v5  ;;  %911 = vmatmul.f32.gmra.mxu3 %v2502_v50  ;;  %v950_v5 = vmax.f32 %v3123_v38, 0.0 }
 0x24f   :  { %v2506_v15 = vpop.eup %2505  ;;  %v1525_v61 = vadd.f32 1.0, %v2504_v56  ;;  %v795_v62 = vpop.f32.mrf.mxu2  ;;  %v1528_v0 = vmul.f32 -0.5, %v2504_v56  ;;  %v1531_v30 = vand.u32 2147483647, %v2504_v56 }
 0x250   :  { %v1518_v63 = vmul.f32 0.6931472, %v2506_v15  ;;  %2511 = vpow2.f32 %v1287_v13  ;;  %v3133_v1 = vadd.f32 %v795_v62, %v2951_v57 }
 0x251   :  { %2513 = vlog2.f32 %v1525_v61  ;;  %v627_v31 = vpop.f32.mrf.mxu3  ;;  %v1529_v10 = vadd.f32 1.0, %v1528_v0  ;;  %vm1532_vm0 = vcmp.lt.f32.partialorder %v1531_v30, 0.0004427343 }
 0x252   :  { %v1524_v48 = vsel %vm1523_vm14, %v1521_v59, %v1518_v63  ;;  %v1143_v3 = vand.u32 2147483647, %v3133_v1  ;;  %v558_v4 = vpop.f32.mrf.mxu1  ;;  %v628_v7 = vadd.f32 %v627_v31, %v2901_v17  ;;  %vm1015_vm5 = vcmp.ne.f32.partialorder %v3133_v1, %v3133_v1 }
 0x253   :  { %v2508_v21 = vpop.eup %2507  ;;  %v1972_v27 = vadd.f32 %v1524_v48, %v948_v2  ;;  %v559_v6 = vadd.f32 %v558_v4, %v2901_v17  ;;  %v1530_v22 = vmul.f32 %v2504_v56, %v1529_v10 }
 0x254   :  { %v2510_v8 = vpop.eup %2509  ;;  %v1207_v11 = vsub.f32 0.0, %v1143_v3  ;;  %845 = vmatmul.f32.gmra.mxu2 %v2508_v21 }
 0x255   :  { %v2036_v12 = vsel %vm1012_vm15, %v3103_v55, %v1972_v27  ;;  %2515 = vtanh.f32 %v559_v6 }
 0x256   :  { %v2512_v60 = vpop.eup %2511  ;;  %2100 = vst [vmem:[#allocation8 + $0x78] sm:$0xff] %v2036_v12  ;;  %v1289_v40 = vmul.f32 1.442695, %v1207_v11  ;;  %2517 = vtanh.f32 %v628_v7  ;;  %914 = vmatmul.f32.gmra.mxu3 %v2510_v8  ;;  %v951_v8 = vmax.f32 %v3133_v1, 0.0 }
 0x257   :  { %v2514_v16 = vpop.eup %2513  ;;  %v1534_v18 = vadd.f32 1.0, %v2512_v60  ;;  %v1537_v19 = vmul.f32 -0.5, %v2512_v60  ;;  %v798_v20 = vpop.f32.mrf.mxu2  ;;  %v1540_v37 = vand.u32 2147483647, %v2512_v60 }
 0x258   :  { %v1527_v42 = vmul.f32 0.6931472, %v2514_v16  ;;  %2519 = vpow2.f32 %v1289_v40  ;;  %v3143_v23 = vadd.f32 %v798_v20, %v2951_v57 }
 0x259   :  { %2521 = vlog2.f32 %v1534_v18  ;;  %v630_v55 = vpop.f32.mrf.mxu3  ;;  %v1538_v51 = vadd.f32 1.0, %v1537_v19  ;;  %vm1541_vm2 = vcmp.lt.f32.partialorder %v1540_v37, 0.0004427343 }
 0x25a   :  { %v1533_v25 = vsel %vm1532_vm0, %v1530_v22, %v1527_v42  ;;  %v1144_v26 = vand.u32 2147483647, %v3143_v23  ;;  %v561_v28 = vpop.f32.mrf.mxu1  ;;  %v631_v33 = vadd.f32 %v630_v55, %v2901_v17  ;;  %vm1016_vm7 = vcmp.ne.f32.partialorder %v3143_v23, %v3143_v23 }
 0x25b   :  { %v2516_v29 = vpop.eup %2515  ;;  %v1973_v47 = vadd.f32 %v1533_v25, %v949_v24  ;;  %v562_v32 = vadd.f32 %v561_v28, %v2901_v17  ;;  %v1539_v41 = vmul.f32 %v2512_v60, %v1538_v51 }
 0x25c   :  { %v2518_v34 = vpop.eup %2517  ;;  %v1208_v35 = vsub.f32 0.0, %v1144_v26  ;;  %848 = vmatmul.f32.gmra.mxu2 %v2516_v29 }
 0x25d   :  { %v2037_v36 = vsel %vm1013_vm1, %v3113_v14, %v1973_v47  ;;  %2523 = vtanh.f32 %v562_v32 }
 0x25e   :  { %v2520_v39 = vpop.eup %2519  ;;  %2101 = vst [vmem:[#allocation8 + $0x80] sm:$0xff] %v2037_v36  ;;  %v1291_v49 = vmul.f32 1.442695, %v1208_v35  ;;  %2525 = vtanh.f32 %v631_v33  ;;  %917 = vmatmul.f32.gmra.mxu3 %v2518_v34  ;;  %v952_v33 = vmax.f32 %v3143_v23, 0.0 }
 0x25f   :  { %v2522_v58 = vpop.eup %2521  ;;  %v1543_v9 = vadd.f32 1.0, %v2520_v39  ;;  %v801_v43 = vpop.f32.mrf.mxu2  ;;  %v1546_v45 = vmul.f32 -0.5, %v2520_v39  ;;  %v1549_v0 = vand.u32 2147483647, %v2520_v39 }
 0x260   :  { %v1536_v44 = vmul.f32 0.6931472, %v2522_v58  ;;  %2527 = vpow2.f32 %v1291_v49  ;;  %v3153_v46 = vadd.f32 %v801_v43, %v2951_v57 }
 0x261   :  { %2529 = vlog2.f32 %v1543_v9  ;;  %v633_v14 = vpop.f32.mrf.mxu3  ;;  %v1547_v61 = vadd.f32 1.0, %v1546_v45  ;;  %vm1550_vm4 = vcmp.lt.f32.partialorder %v1549_v0, 0.0004427343 }
 0x262   :  { %v1542_v50 = vsel %vm1541_vm2, %v1539_v41, %v1536_v44  ;;  %v1145_v52 = vand.u32 2147483647, %v3153_v46  ;;  %v564_v53 = vpop.f32.mrf.mxu1  ;;  %v634_v15 = vadd.f32 %v633_v14, %v2901_v17  ;;  %vm1017_vm9 = vcmp.ne.f32.partialorder %v3153_v46, %v3153_v46 }
 0x263   :  { %v2524_v54 = vpop.eup %2523  ;;  %v1974_v56 = vadd.f32 %v1542_v50, %v950_v5  ;;  %v565_v13 = vadd.f32 %v564_v53, %v2901_v17  ;;  %v1548_v6 = vmul.f32 %v2520_v39, %v1547_v61 }
 0x264   :  { %v2526_v59 = vpop.eup %2525  ;;  %v1209_v62 = vsub.f32 0.0, %v1145_v52  ;;  %851 = vmatmul.f32.gmra.mxu2 %v2524_v54 }
 0x265   :  { %v2038_v63 = vsel %vm1014_vm3, %v3123_v38, %v1974_v56  ;;  %2531 = vtanh.f32 %v565_v13 }
 0x266   :  { %v2528_v2 = vpop.eup %2527  ;;  %2102 = vst [vmem:[#allocation8 + $0x88] sm:$0xff] %v2038_v63  ;;  %v1293_v31 = vmul.f32 1.442695, %v1209_v62  ;;  %2533 = vtanh.f32 %v634_v15  ;;  %920 = vmatmul.f32.gmra.mxu3 %v2526_v59  ;;  %v953_v59 = vmax.f32 %v3153_v46, 0.0 }
 0x267   :  { %v2530_v48 = vpop.eup %2529  ;;  %v1552_v3 = vadd.f32 1.0, %v2528_v2  ;;  %v1555_v4 = vmul.f32 -0.5, %v2528_v2  ;;  %v804_v21 = vpop.f32.mrf.mxu2  ;;  %v1558_v22 = vand.u32 2147483647, %v2528_v2 }
 0x268   :  { %v1545_v27 = vmul.f32 0.6931472, %v2530_v48  ;;  %2535 = vpow2.f32 %v1293_v31  ;;  %v3163_v7 = vadd.f32 %v804_v21, %v2951_v57 }
 0x269   :  { %2537 = vlog2.f32 %v1552_v3  ;;  %v636_v38 = vpop.f32.mrf.mxu3  ;;  %v1556_v40 = vadd.f32 1.0, %v1555_v4  ;;  %vm1559_vm6 = vcmp.lt.f32.partialorder %v1558_v22, 0.0004427343 }
 0x26a   :  { %v1551_v10 = vsel %vm1550_vm4, %v1548_v6, %v1545_v27  ;;  %v1146_v11 = vand.u32 2147483647, %v3163_v7  ;;  %v567_v12 = vpop.f32.mrf.mxu1  ;;  %v637_v18 = vadd.f32 %v636_v38, %v2901_v17  ;;  %vm1018_vm11 = vcmp.ne.f32.partialorder %v3163_v7, %v3163_v7 }
 0x26b   :  { %v2532_v30 = vpop.eup %2531  ;;  %v1975_v60 = vadd.f32 %v1551_v10, %v951_v8  ;;  %v568_v16 = vadd.f32 %v567_v12, %v2901_v17  ;;  %v1557_v26 = vmul.f32 %v2528_v2, %v1556_v40  ;;  %v954_v40 = vmax.f32 %v3163_v7, 0.0 }
 0x26c   :  { %v2534_v19 = vpop.eup %2533  ;;  %v1210_v20 = vsub.f32 0.0, %v1146_v11  ;;  %854 = vmatmul.f32.gmra.mxu2 %v2532_v30 }
 0x26d   :  { %v2039_v42 = vsel %vm1015_vm5, %v3133_v1, %v1975_v60  ;;  %2539 = vtanh.f32 %v568_v16 }
 0x26e   :  { %v2536_v24 = vpop.eup %2535  ;;  %2103 = vst [vmem:[#allocation8 + $0x90] sm:$0xff] %v2039_v42  ;;  %v1295_v55 = vmul.f32 1.442695, %v1210_v20  ;;  %2541 = vtanh.f32 %v637_v18  ;;  %923 = vmatmul.f32.gmra.mxu3 %v2534_v19 }
 0x26f   :  { %v2538_v25 = vpop.eup %2537  ;;  %v1561_v28 = vadd.f32 1.0, %v2536_v24  ;;  %v807_v29 = vpop.f32.mrf.mxu2  ;;  %v1564_v51 = vmul.f32 -0.5, %v2536_v24  ;;  %v1567_v45 = vand.u32 2147483647, %v2536_v24 }
 0x270   :  { %v1554_v47 = vmul.f32 0.6931472, %v2538_v25  ;;  %2543 = vpow2.f32 %v1295_v55  ;;  %v3173_v32 = vadd.f32 %v807_v29, %v2951_v57 }
 0x271   :  { %2545 = vlog2.f32 %v1561_v28  ;;  %v639_v1 = vpop.f32.mrf.mxu3  ;;  %v1565_v9 = vadd.f32 1.0, %v1564_v51  ;;  %vm1568_vm8 = vcmp.lt.f32.partialorder %v1567_v45, 0.0004427343 }
 0x272   :  { %v1560_v34 = vsel %vm1559_vm6, %v1557_v26, %v1554_v47  ;;  %v1147_v35 = vand.u32 2147483647, %v3173_v32  ;;  %v570_v36 = vpop.f32.mrf.mxu1  ;;  %v640_v58 = vadd.f32 %v639_v1, %v2901_v17  ;;  %vm1019_vm13 = vcmp.ne.f32.partialorder %v3173_v32, %v3173_v32 }
 0x273   :  { %v2540_v37 = vpop.eup %2539  ;;  %v1976_v39 = vadd.f32 %v1560_v34, %v952_v33  ;;  %v571_v49 = vadd.f32 %v570_v36, %v2901_v17  ;;  %v1566_v13 = vmul.f32 %v2536_v24, %v1565_v9  ;;  %v955_v36 = vmax.f32 %v3173_v32, 0.0 }
 0x274   :  { %v2542_v41 = vpop.eup %2541  ;;  %v1211_v43 = vsub.f32 0.0, %v1147_v35  ;;  %857 = vmatmul.f32.gmra.mxu2 %v2540_v37 }
 0x275   :  { %v2040_v44 = vsel %vm1016_vm7, %v3143_v23, %v1976_v39  ;;  %2547 = vtanh.f32 %v571_v49 }
 0x276   :  { %v2544_v5 = vpop.eup %2543  ;;  %2104 = vst [vmem:[#allocation8 + $0x98] sm:$0xff] %v2040_v44  ;;  %v1297_v14 = vmul.f32 1.442695, %v1211_v43  ;;  %2549 = vtanh.f32 %v640_v58  ;;  %926 = vmatmul.f32.gmra.mxu3 %v2542_v41 }
 0x277   :  { %v2546_v50 = vpop.eup %2545  ;;  %v1570_v52 = vadd.f32 1.0, %v2544_v5  ;;  %v1573_v53 = vmul.f32 -0.5, %v2544_v5  ;;  %v810_v54 = vpop.f32.mrf.mxu2  ;;  %v1576_v21 = vand.u32 2147483647, %v2544_v5 }
 0x278   :  { %v1563_v56 = vmul.f32 0.6931472, %v2546_v50  ;;  %2551 = vpow2.f32 %v1297_v14  ;;  %v3183_v15 = vadd.f32 %v810_v54, %v2951_v57 }
 0x279   :  { %2553 = vlog2.f32 %v1570_v52  ;;  %v1574_v2 = vadd.f32 1.0, %v1573_v53  ;;  %vm1577_vm10 = vcmp.lt.f32.partialorder %v1576_v21, 0.0004427343 }
 0x27a   :  { %v1569_v23 = vsel %vm1568_vm8, %v1566_v13, %v1563_v56  ;;  %v1148_v61 = vand.u32 2147483647, %v3183_v15  ;;  %v573_v62 = vpop.f32.mrf.mxu1  ;;  %vm1020_vm15 = vcmp.ne.f32.partialorder %v3183_v15, %v3183_v15 }
 0x27b   :  { %v2548_v63 = vpop.eup %2547  ;;  %v1977_v0 = vadd.f32 %v1569_v23, %v953_v59  ;;  %v574_v31 = vadd.f32 %v573_v62, %v2901_v17  ;;  %v1575_v38 = vmul.f32 %v2544_v5, %v1574_v2 }
 0x27c   :  { %v2550_v48 = vpop.eup %2549  ;;  %v1212_v3 = vsub.f32 0.0, %v1148_v61  ;;  %860 = vmatmul.f32.gmra.mxu2 %v2548_v63 }
 0x27d   :  { %v2041_v4 = vsel %vm1017_vm9, %v3153_v46, %v1977_v0  ;;  %2555 = vtanh.f32 %v574_v31 }
 0x27e   :  { %v2552_v27 = vpop.eup %2551  ;;  %2105 = vst [vmem:[#allocation8 + $0xa0] sm:$0xff] %v2041_v4  ;;  %v1299_v6 = vmul.f32 1.442695, %v1212_v3  ;;  %929 = vmatmul.f32.gmra.mxu3 %v2550_v48 }
 0x27f   :  { %v2554_v8 = vpop.eup %2553  ;;  %v1579_v10 = vadd.f32 1.0, %v2552_v27  ;;  %v813_v11 = vpop.f32.mrf.mxu2  ;;  %v1582_v30 = vmul.f32 -0.5, %v2552_v27  ;;  %v1585_v25 = vand.u32 2147483647, %v2552_v27 }
 0x280   :  { %v1572_v12 = vmul.f32 0.6931472, %v2554_v8  ;;  %2557 = vpow2.f32 %v1299_v6  ;;  %v3192_v60 = vadd.f32 %v813_v11, %v2951_v57 }
 0x281   :  { %2559 = vlog2.f32 %v1579_v10  ;;  %v1583_v22 = vadd.f32 1.0, %v1582_v30  ;;  %vm1586_vm12 = vcmp.lt.f32.partialorder %v1585_v25, 0.0004427343 }
 0x282   :  { %v1578_v46 = vsel %vm1577_vm10, %v1575_v38, %v1572_v12  ;;  %v1149_v16 = vand.u32 2147483647, %v3192_v60  ;;  %v576_v18 = vpop.f32.mrf.mxu1  ;;  %vm1021_vm1 = vcmp.ne.f32.partialorder %v3192_v60, %v3192_v60 }
 0x283   :  { %v2556_v19 = vpop.eup %2555  ;;  %v1978_v20 = vadd.f32 %v1578_v46, %v954_v40  ;;  %v577_v42 = vadd.f32 %v576_v18, %v2901_v17  ;;  %v1584_v34 = vmul.f32 %v2552_v27, %v1583_v22 }
 0x284   :  { %v1213_v24 = vsub.f32 0.0, %v1149_v16  ;;  %863 = vmatmul.f32.gmra.mxu2 %v2556_v19 }
 0x285   :  { %v2042_v55 = vsel %vm1018_vm11, %v3163_v7, %v1978_v20  ;;  %2561 = vtanh.f32 %v577_v42 }
 0x286   :  { %v2558_v26 = vpop.eup %2557  ;;  %2106 = vst [vmem:[#allocation8 + $0xa8] sm:$0xff] %v2042_v55  ;;  %v1301_v28 = vmul.f32 1.442695, %v1213_v24 }
 0x287   :  { %v2560_v29 = vpop.eup %2559  ;;  %v1588_v47 = vadd.f32 1.0, %v2558_v26  ;;  %v1591_v51 = vmul.f32 -0.5, %v2558_v26  ;;  %v816_v33 = vpop.f32.mrf.mxu2  ;;  %v1594_v14 = vand.u32 2147483647, %v2558_v26 }
 0x288   :  { %v1581_v1 = vmul.f32 0.6931472, %v2560_v29  ;;  %2563 = vpow2.f32 %v1301_v28  ;;  %v3201_v35 = vadd.f32 %v816_v33, %v2951_v57 }
 0x289   :  { %2565 = vlog2.f32 %v1588_v47  ;;  %v885_v7 = vpop.f32.mrf.mxu3  ;;  %v1592_v9 = vadd.f32 1.0, %v1591_v51  ;;  %vm1595_vm14 = vcmp.lt.f32.partialorder %v1594_v14, 0.0004427343 }
 0x28a   :  { %v1587_v37 = vsel %vm1586_vm12, %v1584_v34, %v1581_v1  ;;  %v1150_v39 = vand.u32 2147483647, %v3201_v35  ;;  %v579_v49 = vpop.f32.mrf.mxu1  ;;  %v3207_v44 = vadd.f32 %v885_v7, %v2951_v57  ;;  %vm1022_vm3 = vcmp.ne.f32.partialorder %v3201_v35, %v3201_v35 }
 0x28b   :  { %v2562_v58 = vpop.eup %2561  ;;  %v1979_v41 = vadd.f32 %v1587_v37, %v955_v36  ;;  %v580_v43 = vadd.f32 %v579_v49, %v2901_v17  ;;  %v1593_v56 = vmul.f32 %v2558_v26, %v1592_v9 }
 0x28c   :  { %v1214_v45 = vsub.f32 0.0, %v1150_v39  ;;  %866 = vmatmul.f32.gmra.mxu2 %v2562_v58  ;;  %v1173_v50 = vand.u32 2147483647, %v3207_v44  ;;  %vm1045_vm5 = vcmp.ne.f32.partialorder %v3207_v44, %v3207_v44 }
 0x28d   :  { %v2043_v5 = vsel %vm1019_vm13, %v3173_v32, %v1979_v41  ;;  %2567 = vtanh.f32 %v580_v43  ;;  %v956_v32 = vmax.f32 %v3183_v15, 0.0 }
 0x28e   :  { %v2564_v52 = vpop.eup %2563  ;;  %2107 = vst [vmem:[#allocation8 + $0xb0] sm:$0xff] %v2043_v5  ;;  %v1303_v53 = vmul.f32 1.442695, %v1214_v45  ;;  %v1237_v23 = vsub.f32 0.0, %v1173_v50 }
 0x28f   :  { %v2566_v54 = vpop.eup %2565  ;;  %v1597_v13 = vadd.f32 1.0, %v2564_v52  ;;  %v819_v59 = vpop.f32.mrf.mxu2  ;;  %v1600_v62 = vmul.f32 -0.5, %v2564_v52  ;;  %v1603_v11 = vand.u32 2147483647, %v2564_v52 }
 0x290   :  { %v1590_v61 = vmul.f32 0.6931472, %v2566_v54  ;;  %2569 = vpow2.f32 %v1303_v53  ;;  %v3214_v63 = vadd.f32 %v819_v59, %v2951_v57  ;;  %v1349_v0 = vmul.f32 1.442695, %v1237_v23 }
 0x291   :  { %2571 = vlog2.f32 %v1597_v13  ;;  %v888_v2 = vpop.f32.mrf.mxu3  ;;  %v1601_v6 = vadd.f32 1.0, %v1600_v62  ;;  %vm1604_vm0 = vcmp.lt.f32.partialorder %v1603_v11, 0.0004427343 }
 0x292   :  { %v1596_v31 = vsel %vm1595_vm14, %v1593_v56, %v1590_v61  ;;  %v1151_v48 = vand.u32 2147483647, %v3214_v63  ;;  %v582_v3 = vpop.f32.mrf.mxu1  ;;  %2573 = vpow2.f32 %v1349_v0  ;;  %v3222_v38 = vadd.f32 %v888_v2, %v2951_v57 }
 0x293   :  { %v2568_v4 = vpop.eup %2567  ;;  %v1980_v21 = vadd.f32 %v1596_v31, %v956_v32  ;;  %v583_v27 = vadd.f32 %v582_v3, %v2901_v17  ;;  %v1602_v42 = vmul.f32 %v2564_v52, %v1601_v6  ;;  %vm1023_vm7 = vcmp.ne.f32.partialorder %v3214_v63, %v3214_v63 }
 0x294   :  { %v1215_v8 = vsub.f32 0.0, %v1151_v48  ;;  %869 = vmatmul.f32.gmra.mxu2 %v2568_v4  ;;  %v1174_v19 = vand.u32 2147483647, %v3222_v38  ;;  %v981_v4 = vmax.f32 %v3207_v44, 0.0  ;;  %vm1046_vm12 = vcmp.ne.f32.partialorder %v3222_v38, %v3222_v38 }
 0x295   :  { %v2044_v10 = vsel %vm1020_vm15, %v3183_v15, %v1980_v21  ;;  %2575 = vtanh.f32 %v583_v27  ;;  %v957_v15 = vmax.f32 %v3192_v60, 0.0 }
 0x296   :  { %v2570_v12 = vpop.eup %2569  ;;  %2108 = vst [vmem:[#allocation8 + $0xb8] sm:$0xff] %v2044_v10  ;;  %v1305_v30 = vmul.f32 1.442695, %v1215_v8  ;;  %v1238_v34 = vsub.f32 0.0, %v1174_v19 }
 0x297   :  { %v2572_v40 = vpop.eup %2571  ;;  %v1606_v46 = vadd.f32 1.0, %v2570_v12  ;;  %v1609_v16 = vmul.f32 -0.5, %v2570_v12  ;;  %v822_v18 = vpop.f32.mrf.mxu2  ;;  %v1612_v39 = vand.u32 2147483647, %v2570_v12 }
 0x298   :  { %v1599_v20 = vmul.f32 0.6931472, %v2572_v40  ;;  %2577 = vpow2.f32 %v1305_v30  ;;  %v3227_v22 = vadd.f32 %v822_v18, %v2951_v57  ;;  %v2574_v24 = vpop.eup %2573  ;;  %v1351_v50 = vmul.f32 1.442695, %v1238_v34 }
 0x299   :  { %2579 = vlog2.f32 %v1606_v46  ;;  %v891_v55 = vpop.f32.mrf.mxu3  ;;  %v1610_v26 = vadd.f32 1.0, %v1609_v16  ;;  %v1813_v1 = vadd.f32 1.0, %v2574_v24  ;;  %v1816_v7 = vmul.f32 -0.5, %v2574_v24 }
 0x29a   :  { %v1605_v25 = vsel %vm1604_vm0, %v1602_v42, %v1599_v20  ;;  %v1152_v28 = vand.u32 2147483647, %v3227_v22  ;;  %v585_v29 = vpop.f32.mrf.mxu1  ;;  %v1819_v54 = vand.u32 2147483647, %v2574_v24  ;;  %vm1613_vm2 = vcmp.lt.f32.partialorder %v1612_v39, 0.0004427343 }
 0x29b   :  { %v2576_v47 = vpop.eup %2575  ;;  %v1981_v51 = vadd.f32 %v1605_v25, %v957_v15  ;;  %v586_v33 = vadd.f32 %v585_v29, %v2901_v17  ;;  %v1611_v58 = vmul.f32 %v2570_v12, %v1610_v26  ;;  %v1817_v14 = vadd.f32 1.0, %v1816_v7 }
 0x29c   :  { %v1216_v36 = vsub.f32 0.0, %v1152_v28  ;;  %872 = vmatmul.f32.gmra.mxu2 %v2576_v47  ;;  %v3241_v61 = vadd.f32 %v891_v55, %v2951_v57  ;;  %vm3247_vm4 = vcmp.lt.f32.partialorder %v1819_v54, 0.0004427343  ;;  %v959_v55 = vmax.f32 %v3214_v63, 0.0 }
 0x29d   :  { %v2045_v37 = vsel %vm1021_vm1, %v3192_v60, %v1981_v51  ;;  %2581 = vtanh.f32 %v586_v33  ;;  %v958_v60 = vmax.f32 %v3201_v35, 0.0  ;;  %v1818_v2 = vmul.f32 %v2574_v24, %v1817_v14 }
 0x29e   :  { %v2578_v49 = vpop.eup %2577  ;;  %2109 = vst [vmem:[#allocation8 + $0xc0] sm:$0xff] %v2045_v37  ;;  %v1307_v41 = vmul.f32 1.442695, %v1216_v36  ;;  %2583 = vlog2.f32 %v1813_v1  ;;  %v1175_v30 = vand.u32 2147483647, %v3241_v61  ;;  %vm1024_vm9 = vcmp.ne.f32.partialorder %v3227_v22, %v3227_v22 }
 0x29f   :  { %v2580_v9 = vpop.eup %2579  ;;  %v1615_v43 = vadd.f32 1.0, %v2578_v49  ;;  %v1618_v45 = vmul.f32 -0.5, %v2578_v49  ;;  %v825_v5 = vpop.f32.mrf.mxu2  ;;  %v1621_v6 = vand.u32 2147483647, %v2578_v49  ;;  %vm1047_vm15 = vcmp.ne.f32.partialorder %v3241_v61, %v3241_v61 }
 0x2a0   :  { %v1608_v52 = vmul.f32 0.6931472, %v2580_v9  ;;  %2585 = vpow2.f32 %v1307_v41  ;;  %v3236_v53 = vadd.f32 %v825_v5, %v2951_v57  ;;  %v1239_v34 = vsub.f32 0.0, %v1175_v30 }
 0x2a1   :  { %2587 = vlog2.f32 %v1615_v43  ;;  %v1619_v13 = vadd.f32 1.0, %v1618_v45  ;;  %v894_v31 = vpop.f32.mrf.mxu3  ;;  %vm1622_vm6 = vcmp.lt.f32.partialorder %v1621_v6, 0.0004427343 }
 0x2a2   :  { %v1614_v56 = vsel %vm1613_vm2, %v1611_v58, %v1608_v52  ;;  %v1153_v59 = vand.u32 2147483647, %v3236_v53  ;;  %v588_v23 = vpop.f32.mrf.mxu1  ;;  %2589 = vpow2.f32 %v1351_v50  ;;  %v1353_v52 = vmul.f32 1.442695, %v1239_v34 }
 0x2a3   :  { %v2582_v62 = vpop.eup %2581  ;;  %v1982_v32 = vadd.f32 %v1614_v56, %v958_v60  ;;  %v589_v0 = vadd.f32 %v588_v23, %v2901_v17  ;;  %v1620_v11 = vmul.f32 %v2578_v49, %v1619_v13  ;;  %v960_v13 = vmax.f32 %v3227_v22, 0.0 }
 0x2a4   :  { %v2584_v48 = vpop.eup %2583  ;;  %v1217_v3 = vsub.f32 0.0, %v1153_v59  ;;  %875 = vmatmul.f32.gmra.mxu2 %v2582_v62  ;;  %vm1025_vm13 = vcmp.ne.f32.partialorder %v3236_v53, %v3236_v53 }
 0x2a5   :  { %v2046_v27 = vsel %vm1022_vm3, %v3201_v35, %v1982_v32  ;;  %2591 = vtanh.f32 %v589_v0  ;;  %v1815_v8 = vmul.f32 0.6931472, %v2584_v48  ;;  %v3258_v35 = vadd.f32 %v894_v31, %v2951_v57 }
 0x2a6   :  { %v2586_v10 = vpop.eup %2585  ;;  %2110 = vst [vmem:[#allocation8 + $0xc8] sm:$0xff] %v2046_v27  ;;  %v1309_v12 = vmul.f32 1.442695, %v1217_v3  ;;  %v982_v3 = vmax.f32 %v3222_v38, 0.0 }
 0x2a7   :  { %v2588_v40 = vpop.eup %2587  ;;  %v1624_v46 = vadd.f32 1.0, %v2586_v10  ;;  %v1627_v16 = vmul.f32 -0.5, %v2586_v10  ;;  %v1821_v18 = vsel %vm3247_vm4, %v1818_v2, %v1815_v8  ;;  %v828_v19 = vpop.f32.mrf.mxu2  ;;  %v1176_v37 = vand.u32 2147483647, %v3258_v35 }
 0x2a8   :  { %v1617_v20 = vmul.f32 0.6931472, %v2588_v40  ;;  %2593 = vpow2.f32 %v1309_v12  ;;  %v2005_v42 = vadd.f32 %v1821_v18, %v981_v4  ;;  %v3261_v24 = vadd.f32 %v828_v19, %v2951_v57  ;;  %v2590_v15 = vpop.eup %2589 }
 0x2a9   :  { %2595 = vlog2.f32 %v1624_v46  ;;  %v1628_v26 = vadd.f32 1.0, %v1627_v16  ;;  %v1822_v36 = vadd.f32 1.0, %v2590_v15  ;;  %v1825_v7 = vmul.f32 -0.5, %v2590_v15  ;;  %v897_v58 = vpop.f32.mrf.mxu3 }
 0x2aa   :  { %v1623_v25 = vsel %vm1622_vm6, %v1620_v11, %v1617_v20  ;;  %v2069_v28 = vsel %vm1045_vm5, %v3207_v44, %v2005_v42  ;;  %v591_v29 = vpop.f32.mrf.mxu1  ;;  %v1154_v33 = vand.u32 2147483647, %v3261_v24  ;;  %v1630_v44 = vand.u32 2147483647, %v2586_v10 }
 0x2ab   :  { %v2592_v47 = vpop.eup %2591  ;;  %v1983_v51 = vadd.f32 %v1623_v25, %v959_v55  ;;  %2133 = vst [vmem:[#allocation8 + $0x180] sm:$0xff] %v2069_v28  ;;  %v592_v1 = vadd.f32 %v591_v29, %v2901_v17  ;;  %v1629_v9 = vmul.f32 %v2586_v10, %v1628_v26  ;;  %v1828_v17 = vand.u32 2147483647, %v2590_v15 }
 0x2ac   :  { %878 = vmatmul.f32.gmra.mxu2 %v2592_v47  ;;  %v1218_v49 = vsub.f32 0.0, %v1154_v33  ;;  %v1826_v14 = vadd.f32 1.0, %v1825_v7  ;;  %vm1631_vm8 = vcmp.lt.f32.partialorder %v1630_v44, 0.0004427343  ;;  %v961_v10 = vmax.f32 %v3236_v53, 0.0 }
 0x2ad   :  { %v2047_v39 = vsel %vm1023_vm7, %v3214_v63, %v1983_v51  ;;  %2597 = vtanh.f32 %v592_v1  ;;  %v1240_v63 = vsub.f32 0.0, %v1176_v37  ;;  %vm3282_vm10 = vcmp.lt.f32.partialorder %v1828_v17, 0.0004427343 }
 0x2ae   :  { %v2594_v41 = vpop.eup %2593  ;;  %2111 = vst [vmem:[#allocation8 + $0xd0] sm:$0xff] %v2047_v39  ;;  %2599 = vlog2.f32 %v1822_v36  ;;  %v1311_v5 = vmul.f32 1.442695, %v1218_v49  ;;  %v1827_v0 = vmul.f32 %v2590_v15, %v1826_v14  ;;  %v3297_v42 = vadd.f32 %v897_v58, %v2951_v57 }
 0x2af   :  { %v2596_v43 = vpop.eup %2595  ;;  %v1633_v45 = vadd.f32 1.0, %v2594_v41  ;;  %v831_v50 = vpop.f32.mrf.mxu2  ;;  %v1636_v60 = vmul.f32 -0.5, %v2594_v41  ;;  %v1639_v23 = vand.u32 2147483647, %v2594_v41  ;;  %v1355_v21 = vmul.f32 1.442695, %v1240_v63 }
 0x2b0   :  { %v1626_v54 = vmul.f32 0.6931472, %v2596_v43  ;;  %v3275_v56 = vadd.f32 %v831_v50, %v2951_v57  ;;  %v1177_v36 = vand.u32 2147483647, %v3297_v42  ;;  %v962_v37 = vmax.f32 %v3261_v24, 0.0 }
 0x2b1   :  { %2601 = vlog2.f32 %v1633_v45  ;;  %v1637_v48 = vadd.f32 1.0, %v1636_v60  ;;  %vm3288_vm11 = vcmp.lt.f32.partialorder %v1639_v23, 0.0004427343  ;;  %vm1026_vm14 = vcmp.ne.f32.partialorder %v3261_v24, %v3261_v24 }
 0x2b2   :  { %v1632_v59 = vsel %vm1631_vm8, %v1629_v9, %v1626_v54  ;;  %2603 = vpow2.f32 %v1311_v5  ;;  %v1155_v2 = vand.u32 2147483647, %v3275_v56  ;;  %v983_v44 = vmax.f32 %v3241_v61, 0.0 }
 0x2b3   :  { %v2598_v62 = vpop.eup %2597  ;;  %v1984_v32 = vadd.f32 %v1632_v59, %v960_v13  ;;  %2605 = vpow2.f32 %v1353_v52  ;;  %v1638_v19 = vmul.f32 %v2594_v41, %v1637_v48  ;;  %v1241_v52 = vsub.f32 0.0, %v1177_v36 }
 0x2b4   :  { %v2600_v31 = vpop.eup %2599  ;;  %881 = vmatmul.f32.gmra.mxu2 %v2598_v62  ;;  %v1219_v8 = vsub.f32 0.0, %v1155_v2  ;;  %2607 = vpow2.f32 %v1355_v21  ;;  %v963_v48 = vmax.f32 %v3275_v56, 0.0  ;;  %vm1048_vm2 = vcmp.ne.f32.partialorder %v3258_v35, %v3258_v35 }
 0x2b5   :  { %v2048_v27 = vsel %vm1024_vm9, %v3227_v22, %v1984_v32  ;;  %v1824_v6 = vmul.f32 0.6931472, %v2600_v31  ;;  %v900_v22 = vpop.f32.mrf.mxu3  ;;  %vm1027_vm5 = vcmp.ne.f32.partialorder %v3275_v56, %v3275_v56  ;;  %vm1049_vm8 = vcmp.ne.f32.partialorder %v3297_v42, %v3297_v42 }
 0x2b6   :  { %2112 = vst [vmem:[#allocation8 + $0xd8] sm:$0xff] %v2048_v27  ;;  %v1313_v40 = vmul.f32 1.442695, %v1219_v8  ;;  %v3320_v58 = vadd.f32 %v900_v22, %v2951_v57  ;;  %v984_v22 = vmax.f32 %v3258_v35, 0.0 }
 0x2b7   :  { %v2602_v11 = vpop.eup %2601  ;;  %v1830_v30 = vsel %vm3282_vm10, %v1827_v0, %v1824_v6  ;;  %v834_v46 = vpop.f32.mrf.mxu2 }
 0x2b8   :  { %v2604_v16 = vpop.eup %2603  ;;  %v1635_v18 = vmul.f32 0.6931472, %v2602_v11  ;;  %v2006_v20 = vadd.f32 %v1830_v30, %v982_v3  ;;  %2609 = vpow2.f32 %v1313_v40  ;;  %v3300_v26 = vadd.f32 %v834_v46, %v2951_v57 }
 0x2b9   :  { %v2606_v15 = vpop.eup %2605  ;;  %v1642_v55 = vadd.f32 1.0, %v2604_v16  ;;  %v1645_v25 = vmul.f32 -0.5, %v2604_v16  ;;  %v1178_v4 = vand.u32 2147483647, %v3320_v58  ;;  %v1357_v30 = vmul.f32 1.442695, %v1241_v52 }
 0x2ba   :  { %v1641_v28 = vsel %vm3288_vm11, %v1638_v19, %v1635_v18  ;;  %v2070_v29 = vsel %vm1046_vm12, %v3222_v38, %v2006_v20  ;;  %v1831_v47 = vadd.f32 1.0, %v2606_v15  ;;  %v1834_v51 = vmul.f32 -0.5, %v2606_v15  ;;  %v2608_v1 = vpop.eup %2607 }
 0x2bb   :  { %v1985_v33 = vadd.f32 %v1641_v28, %v961_v10  ;;  %2611 = vlog2.f32 %v1642_v55  ;;  %2134 = vst [vmem:[#allocation8 + $0x188] sm:$0xff] %v2070_v29  ;;  %v1646_v34 = vadd.f32 1.0, %v1645_v25  ;;  %v1156_v38 = vand.u32 2147483647, %v3300_v26 }
 0x2bc   :  { %2613 = vlog2.f32 %v1831_v47  ;;  %v1835_v39 = vadd.f32 1.0, %v1834_v51  ;;  %v1837_v49 = vand.u32 2147483647, %v2606_v15  ;;  %v1840_v17 = vadd.f32 1.0, %v2608_v1 }
 0x2bd   :  { %v2049_v7 = vsel %vm1025_vm13, %v3236_v53, %v1985_v33  ;;  %v1648_v53 = vand.u32 2147483647, %v2604_v16  ;;  %v1220_v9 = vsub.f32 0.0, %v1156_v38  ;;  %v1843_v43 = vmul.f32 -0.5, %v2608_v1  ;;  %v903_v59 = vpop.f32.mrf.mxu3 }
 0x2be   :  { %2113 = vst [vmem:[#allocation8 + $0xe0] sm:$0xff] %v2049_v7  ;;  %v2610_v41 = vpop.eup %2609  ;;  %v1647_v5 = vmul.f32 %v2604_v16, %v1646_v34  ;;  %v1836_v63 = vmul.f32 %v2606_v15, %v1835_v39  ;;  %2615 = vlog2.f32 %v1840_v17  ;;  %vm1838_vm0 = vcmp.lt.f32.partialorder %v1837_v49, 0.0004427343 }
 0x2bf   :  { %v837_v45 = vpop.f32.mrf.mxu2  ;;  %v1651_v14 = vadd.f32 1.0, %v2610_v41  ;;  %v1654_v60 = vmul.f32 -0.5, %v2610_v41  ;;  %v1315_v13 = vmul.f32 1.442695, %v1220_v9  ;;  %v1844_v32 = vadd.f32 1.0, %v1843_v43 }
 0x2c0   :  { %v3323_v50 = vadd.f32 %v837_v45, %v2951_v57  ;;  %vm1649_vm1 = vcmp.lt.f32.partialorder %v1648_v53, 0.0004427343  ;;  %v1846_v2 = vand.u32 2147483647, %v2608_v1  ;;  %v1657_v6 = vand.u32 2147483647, %v2610_v41 }
 0x2c1   :  { %v2612_v54 = vpop.eup %2611  ;;  %2617 = vlog2.f32 %v1651_v14  ;;  %v1655_v27 = vadd.f32 1.0, %v1654_v60  ;;  %v1845_v11 = vmul.f32 %v2608_v1, %v1844_v32  ;;  %v1242_v47 = vsub.f32 0.0, %v1178_v4 }
 0x2c2   :  { %v2614_v23 = vpop.eup %2613  ;;  %v1644_v62 = vmul.f32 0.6931472, %v2612_v54  ;;  %2619 = vpow2.f32 %v1315_v13  ;;  %v1157_v3 = vand.u32 2147483647, %v3323_v50  ;;  %vm3335_vm3 = vcmp.lt.f32.partialorder %v1846_v2, 0.0004427343 }
 0x2c3   :  { %v1833_v0 = vmul.f32 0.6931472, %v2614_v23  ;;  %2621 = vpow2.f32 %v1357_v30  ;;  %v1656_v28 = vmul.f32 %v2610_v41, %v1655_v27  ;;  %vm1658_vm4 = vcmp.lt.f32.partialorder %v1657_v6, 0.0004427343 }
 0x2c4   :  { %v1650_v31 = vsel %vm1649_vm1, %v1647_v5, %v1644_v62  ;;  %v1221_v12 = vsub.f32 0.0, %v1157_v3  ;;  %v2616_v40 = vpop.eup %2615  ;;  %v3349_v1 = vadd.f32 %v903_v59, %v2951_v57  ;;  %v964_v53 = vmax.f32 %v3300_v26, 0.0 }
 0x2c5   :  { %v1986_v21 = vadd.f32 %v1650_v31, %v962_v37  ;;  %v1839_v8 = vsel %vm1838_vm0, %v1836_v63, %v1833_v0  ;;  %v1842_v15 = vmul.f32 0.6931472, %v2616_v40  ;;  %v906_v7 = vpop.f32.mrf.mxu3  ;;  %vm1028_vm6 = vcmp.ne.f32.partialorder %v3300_v26, %v3300_v26 }
 0x2c6   :  { %v2007_v10 = vadd.f32 %v1839_v8, %v983_v44  ;;  %v1317_v55 = vmul.f32 1.442695, %v1221_v12  ;;  %v1359_v44 = vmul.f32 1.442695, %v1242_v47  ;;  %v1179_v9 = vand.u32 2147483647, %v3349_v1 }
 0x2c7   :  { %v2050_v46 = vsel %vm1026_vm14, %v3261_v24, %v1986_v21  ;;  %v840_v18 = vpop.f32.mrf.mxu2  ;;  %v2618_v19 = vpop.eup %2617  ;;  %v1848_v33 = vsel %vm3335_vm3, %v1845_v11, %v1842_v15  ;;  %v3362_v17 = vadd.f32 %v906_v7, %v2951_v57  ;;  %v965_v60 = vmax.f32 %v3323_v50, 0.0 }
 0x2c8   :  { %2114 = vst [vmem:[#allocation8 + $0xe8] sm:$0xff] %v2050_v46  ;;  %v2071_v20 = vsel %vm1047_vm15, %v3241_v61, %v2007_v10  ;;  %v2620_v24 = vpop.eup %2619  ;;  %v1653_v25 = vmul.f32 0.6931472, %v2618_v19  ;;  %v3344_v29 = vadd.f32 %v840_v18, %v2951_v57  ;;  %v2008_v36 = vadd.f32 %v1848_v33, %v984_v22 }
 0x2c9   :  { %2135 = vst [vmem:[#allocation8 + $0x190] sm:$0xff] %v2071_v20  ;;  %v1660_v51 = vadd.f32 1.0, %v2620_v24  ;;  %v1663_v34 = vmul.f32 -0.5, %v2620_v24  ;;  %2623 = vpow2.f32 %v1317_v55  ;;  %v2622_v49 = vpop.eup %2621  ;;  %v1666_v52 = vand.u32 2147483647, %v2620_v24 }
 0x2ca   :  { %v1659_v61 = vsel %vm1658_vm4, %v1656_v28, %v1653_v25  ;;  %v2072_v39 = vsel %vm1048_vm2, %v3258_v35, %v2008_v36  ;;  %v1158_v38 = vand.u32 2147483647, %v3344_v29  ;;  %v1849_v45 = vadd.f32 1.0, %v2622_v49 }
 0x2cb   :  { %v1987_v37 = vadd.f32 %v1659_v61, %v963_v48  ;;  %2625 = vlog2.f32 %v1660_v51  ;;  %2136 = vst [vmem:[#allocation8 + $0x198] sm:$0xff] %v2072_v39  ;;  %v1664_v43 = vadd.f32 1.0, %v1663_v34  ;;  %v1852_v5 = vmul.f32 -0.5, %v2622_v49 }
 0x2cc   :  { %v1222_v14 = vsub.f32 0.0, %v1158_v38  ;;  %2627 = vpow2.f32 %v1359_v44  ;;  %v1243_v13 = vsub.f32 0.0, %v1179_v9  ;;  %v1180_v0 = vand.u32 2147483647, %v3362_v17 }
 0x2cd   :  { %v2051_v41 = vsel %vm1027_vm5, %v3275_v56, %v1987_v37  ;;  %2629 = vlog2.f32 %v1849_v45  ;;  %v1853_v32 = vadd.f32 1.0, %v1852_v5  ;;  %v1665_v31 = vmul.f32 %v2620_v24, %v1664_v43  ;;  %v3381_v19 = vpop.f32.mrf.mxu3 }
 0x2ce   :  { %2115 = vst [vmem:[#allocation8 + $0xf0] sm:$0xff] %v2051_v41  ;;  %v1319_v63 = vmul.f32 1.442695, %v1222_v14  ;;  %v1855_v48 = vand.u32 2147483647, %v2622_v49  ;;  %v985_v3 = vmax.f32 %v3297_v42, 0.0  ;;  %vm1029_vm9 = vcmp.ne.f32.partialorder %v3323_v50, %v3323_v50 }
 0x2cf   :  { %v843_v35 = vpop.f32.mrf.mxu2  ;;  %v2624_v54 = vpop.eup %2623  ;;  %vm1667_vm7 = vcmp.lt.f32.partialorder %v1666_v52, 0.0004427343  ;;  %v1361_v6 = vmul.f32 1.442695, %v1243_v13  ;;  %v1854_v11 = vmul.f32 %v2622_v49, %v1853_v32  ;;  %v1244_v30 = vsub.f32 0.0, %v1180_v0 }
 0x2d0   :  { %v3367_v56 = vadd.f32 %v843_v35, %v2951_v57  ;;  %v1669_v23 = vadd.f32 1.0, %v2624_v54  ;;  %v1672_v62 = vmul.f32 -0.5, %v2624_v54  ;;  %2631 = vpow2.f32 %v1319_v63 }
 0x2d1   :  { %v2626_v59 = vpop.eup %2625  ;;  %vm3377_vm10 = vcmp.lt.f32.partialorder %v1855_v48, 0.0004427343  ;;  %v1675_v15 = vand.u32 2147483647, %v2624_v54  ;;  %v1363_v7 = vmul.f32 1.442695, %v1244_v30  ;;  %vm1050_vm12 = vcmp.ne.f32.partialorder %v3320_v58, %v3320_v58 }
 0x2d2   :  { %v1662_v2 = vmul.f32 0.6931472, %v2626_v59  ;;  %2633 = vlog2.f32 %v1669_v23  ;;  %v1159_v4 = vand.u32 2147483647, %v3367_v56  ;;  %v1673_v27 = vadd.f32 1.0, %v1672_v62  ;;  %v2628_v8 = vpop.eup %2627 }
 0x2d3   :  { %v2630_v40 = vpop.eup %2629  ;;  %v1858_v22 = vadd.f32 1.0, %v2628_v8  ;;  %v1861_v16 = vmul.f32 -0.5, %v2628_v8  ;;  %2635 = vpow2.f32 %v1361_v6  ;;  %v1864_v39 = vand.u32 2147483647, %v2628_v8 }
 0x2d4   :  { %v1668_v21 = vsel %vm1667_vm7, %v1665_v31, %v1662_v2  ;;  %v1223_v12 = vsub.f32 0.0, %v1159_v4  ;;  %v1851_v55 = vmul.f32 0.6931472, %v2630_v40  ;;  %v1674_v28 = vmul.f32 %v2624_v54, %v1673_v27 }
 0x2d5   :  { %v1988_v10 = vadd.f32 %v1668_v21, %v964_v53  ;;  %2637 = vlog2.f32 %v1858_v22  ;;  %v1862_v47 = vadd.f32 1.0, %v1861_v16  ;;  %vm1676_vm11 = vcmp.lt.f32.partialorder %v1675_v15, 0.0004427343  ;;  %v3414_v2 = vpop.f32.mrf.mxu3 }
 0x2d6   :  { %v1321_v24 = vmul.f32 1.442695, %v1223_v12  ;;  %v2632_v25 = vpop.eup %2631  ;;  %v1857_v61 = vsel %vm3377_vm10, %v1854_v11, %v1851_v55  ;;  %v986_v38 = vmax.f32 %v3320_v58, 0.0  ;;  %v966_v52 = vmax.f32 %v3344_v29, 0.0 }
 0x2d7   :  { %v846_v18 = vpop.f32.mrf.mxu2  ;;  %v2052_v20 = vsel %vm1028_vm6, %v3300_v26, %v1988_v10  ;;  %v1678_v34 = vadd.f32 1.0, %v2632_v25  ;;  %v1681_v36 = vmul.f32 -0.5, %v2632_v25  ;;  %v2009_v26 = vadd.f32 %v1857_v61, %v985_v3 }
 0x2d8   :  { %2116 = vst [vmem:[#allocation8 + $0xf8] sm:$0xff] %v2052_v20  ;;  %v3388_v51 = vadd.f32 %v846_v18, %v2951_v57  ;;  %v2634_v33 = vpop.eup %2633  ;;  %2639 = vpow2.f32 %v1321_v24  ;;  %v1863_v53 = vmul.f32 %v2628_v8, %v1862_v47  ;;  %vm3401_vm13 = vcmp.lt.f32.partialorder %v1864_v39, 0.0004427343 }
 0x2d9   :  { %v1671_v37 = vmul.f32 0.6931472, %v2634_v33  ;;  %2641 = vlog2.f32 %v1678_v34  ;;  %v2636_v44 = vpop.eup %2635  ;;  %v2073_v41 = vsel %vm1049_vm8, %v3297_v42, %v2009_v26  ;;  %v1682_v45 = vadd.f32 1.0, %v1681_v36 }
 0x2da   :  { %v1160_v9 = vand.u32 2147483647, %v3388_v51  ;;  %2137 = vst [vmem:[#allocation8 + $0x1a0] sm:$0xff] %v2073_v41  ;;  %v1867_v5 = vadd.f32 1.0, %v2636_v44  ;;  %v1870_v14 = vmul.f32 -0.5, %v2636_v44  ;;  %2643 = vpow2.f32 %v1363_v7 }
 0x2db   :  { %v1677_v49 = vsel %vm1676_vm11, %v1674_v28, %v1671_v37  ;;  %v2638_v35 = vpop.eup %2637  ;;  %vm1030_vm14 = vcmp.ne.f32.partialorder %v3344_v29, %v3344_v29  ;;  %v1683_v48 = vmul.f32 %v2632_v25, %v1682_v45  ;;  %v1873_v4 = vand.u32 2147483647, %v2636_v44 }
 0x2dc   :  { %v1989_v43 = vadd.f32 %v1677_v49, %v965_v60  ;;  %v1224_v63 = vsub.f32 0.0, %v1160_v9  ;;  %v1684_v60 = vand.u32 2147483647, %v2632_v25  ;;  %v1860_v59 = vmul.f32 0.6931472, %v2638_v35 }
 0x2dd   :  { %2645 = vlog2.f32 %v1867_v5  ;;  %v1871_v62 = vadd.f32 1.0, %v1870_v14  ;;  %v967_v8 = vmax.f32 %v3367_v56, 0.0  ;;  %v987_v10 = vmax.f32 %v3349_v1, 0.0 }
 0x2de   :  { %v2053_v42 = vsel %vm1029_vm9, %v3323_v50, %v1989_v43  ;;  %v2640_v23 = vpop.eup %2639  ;;  %v1323_v32 = vmul.f32 1.442695, %v1224_v63  ;;  %v1866_v50 = vsel %vm3401_vm13, %v1863_v53, %v1860_v59  ;;  %vm1685_vm15 = vcmp.lt.f32.partialorder %v1684_v60, 0.0004427343  ;;  %v915_v53 = vpop.f32.mrf.mxu3 }
 0x2df   :  { %v849_v13 = vpop.f32.mrf.mxu2  ;;  %2117 = vst [vmem:[#allocation8 + $0x100] sm:$0xff] %v2053_v42  ;;  %v2642_v31 = vpop.eup %2641  ;;  %v1687_v3 = vadd.f32 1.0, %v2640_v23  ;;  %v2010_v27 = vadd.f32 %v1866_v50, %v986_v38  ;;  %v1690_v6 = vmul.f32 -0.5, %v2640_v23  ;;  %v1872_v40 = vmul.f32 %v2636_v44, %v1871_v62 }
 0x2e0   :  { %v3412_v0 = vadd.f32 %v849_v13, %v2951_v57  ;;  %v1680_v21 = vmul.f32 0.6931472, %v2642_v31  ;;  %2647 = vpow2.f32 %v1323_v32  ;;  %v2644_v11 = vpop.eup %2643  ;;  %vm3425_vm0 = vcmp.lt.f32.partialorder %v1873_v4, 0.0004427343 }
 0x2e1   :  { %2649 = vlog2.f32 %v1687_v3  ;;  %v2074_v30 = vsel %vm1050_vm12, %v3320_v58, %v2010_v27  ;;  %v1876_v20 = vadd.f32 1.0, %v2644_v11  ;;  %v1879_v15 = vmul.f32 -0.5, %v2644_v11 }
 0x2e2   :  { %v1686_v12 = vsel %vm1685_vm15, %v1683_v48, %v1680_v21  ;;  %v1161_v46 = vand.u32 2147483647, %v3412_v0  ;;  %2138 = vst [vmem:[#allocation8 + $0x1a8] sm:$0xff] %v2074_v30  ;;  %v1691_v55 = vadd.f32 1.0, %v1690_v6  ;;  %v3431_v28 = vadd.f32 %v3381_v19, %v2951_v57 }
 0x2e3   :  { %v2646_v22 = vpop.eup %2645  ;;  %v1990_v16 = vadd.f32 %v1686_v12, %v966_v52  ;;  %v1693_v33 = vand.u32 2147483647, %v2640_v23  ;;  %vm1051_vm1 = vcmp.ne.f32.partialorder %v3349_v1, %v3349_v1  ;;  %2651 = vlog2.f32 %v1876_v20 }
 0x2e4   :  { %v1869_v24 = vmul.f32 0.6931472, %v2646_v22  ;;  %v1225_v25 = vsub.f32 0.0, %v1161_v46  ;;  %v1880_v36 = vadd.f32 1.0, %v1879_v15  ;;  %v1882_v7 = vand.u32 2147483647, %v2644_v11 }
 0x2e5   :  { %v2054_v47 = vsel %vm1030_vm14, %v3344_v29, %v1990_v16  ;;  %v1692_v49 = vmul.f32 %v2640_v23, %v1691_v55  ;;  %v1181_v41 = vand.u32 2147483647, %v3431_v28  ;;  %vm1694_vm2 = vcmp.lt.f32.partialorder %v1693_v33, 0.0004427343 }
 0x2e6   :  { %v2648_v61 = vpop.eup %2647  ;;  %2118 = vst [vmem:[#allocation8 + $0x108] sm:$0xff] %v2054_v47  ;;  %v1875_v34 = vsel %vm3425_vm0, %v1872_v40, %v1869_v24  ;;  %v1325_v19 = vmul.f32 1.442695, %v1225_v25  ;;  %v988_v43 = vmax.f32 %v3362_v17, 0.0  ;;  %v1881_v14 = vmul.f32 %v2644_v11, %v1880_v36  ;;  %v918_v22 = vpop.f32.mrf.mxu3 }
 0x2e7   :  { %v852_v58 = vpop.f32.mrf.mxu2  ;;  %v2650_v37 = vpop.eup %2649  ;;  %v2011_v26 = vadd.f32 %v1875_v34, %v987_v10  ;;  %v1696_v39 = vadd.f32 1.0, %v2648_v61  ;;  %v1699_v38 = vmul.f32 -0.5, %v2648_v61  ;;  %v1245_v35 = vsub.f32 0.0, %v1181_v41 }
 0x2e8   :  { %v3442_v44 = vadd.f32 %v852_v58, %v2951_v57  ;;  %v1689_v29 = vmul.f32 0.6931472, %v2650_v37  ;;  %2653 = vpow2.f32 %v1325_v19  ;;  %vm3450_vm3 = vcmp.lt.f32.partialorder %v1882_v7, 0.0004427343 }
 0x2e9   :  { %v2075_v9 = vsel %vm1051_vm1, %v3349_v1, %v2011_v26  ;;  %2655 = vlog2.f32 %v1696_v39  ;;  %v1700_v5 = vadd.f32 1.0, %v1699_v38  ;;  %v2652_v52 = vpop.eup %2651  ;;  %v3457_v42 = vadd.f32 %v3414_v2, %v2951_v57 }
 0x2ea   :  { %v1695_v45 = vsel %vm1694_vm2, %v1692_v49, %v1689_v29  ;;  %2139 = vst [vmem:[#allocation8 + $0x1b0] sm:$0xff] %v2075_v9  ;;  %v1162_v13 = vand.u32 2147483647, %v3442_v44  ;;  %vm1031_vm4 = vcmp.ne.f32.partialorder %v3367_v56, %v3367_v56  ;;  %v1878_v1 = vmul.f32 0.6931472, %v2652_v52 }
 0x2eb   :  { %v1991_v54 = vadd.f32 %v1695_v45, %v967_v8  ;;  %v1365_v60 = vmul.f32 1.442695, %v1245_v35  ;;  %v1702_v62 = vand.u32 2147483647, %v2648_v61  ;;  %vm1052_vm5 = vcmp.ne.f32.partialorder %v3362_v17, %v3362_v17 }
 0x2ec   :  { %v1226_v32 = vsub.f32 0.0, %v1162_v13  ;;  %v1701_v48 = vmul.f32 %v2648_v61, %v1700_v5  ;;  %v1884_v2 = vsel %vm3450_vm3, %v1881_v14, %v1878_v1  ;;  %v1182_v50 = vand.u32 2147483647, %v3457_v42 }
 0x2ed   :  { %v2055_v23 = vsel %vm1031_vm4, %v3367_v56, %v1991_v54  ;;  %2657 = vpow2.f32 %v1365_v60  ;;  %v2012_v4 = vadd.f32 %v1884_v2, %v988_v43  ;;  %v3471_v56 = vadd.f32 %v915_v53, %v2951_v57 }
 0x2ee   :  { %v2654_v31 = vpop.eup %2653  ;;  %2119 = vst [vmem:[#allocation8 + $0x110] sm:$0xff] %v2055_v23  ;;  %v1327_v10 = vmul.f32 1.442695, %v1226_v32  ;;  %v1246_v11 = vsub.f32 0.0, %v1182_v50  ;;  %v968_v12 = vmax.f32 %v3388_v51, 0.0  ;;  %vm1032_vm7 = vcmp.ne.f32.partialorder %v3388_v51, %v3388_v51 }
 0x2ef   :  { %v855_v59 = vpop.f32.mrf.mxu2  ;;  %v2656_v3 = vpop.eup %2655  ;;  %v1705_v21 = vadd.f32 1.0, %v2654_v31  ;;  %v1708_v8 = vmul.f32 -0.5, %v2654_v31  ;;  %vm1703_vm6 = vcmp.lt.f32.partialorder %v1702_v62, 0.0004427343  ;;  %v2076_v30 = vsel %vm1052_vm5, %v3362_v17, %v2012_v4 }
 0x2f0   :  { %v3468_v27 = vadd.f32 %v855_v59, %v2951_v57  ;;  %v1698_v6 = vmul.f32 0.6931472, %v2656_v3  ;;  %2140 = vst [vmem:[#allocation8 + $0x1b8] sm:$0xff] %v2076_v30  ;;  %v1367_v46 = vmul.f32 1.442695, %v1246_v11  ;;  %v969_v55 = vmax.f32 %v3412_v0, 0.0  ;;  %v921_v62 = vpop.f32.mrf.mxu3 }
 0x2f1   :  { %2659 = vlog2.f32 %v1705_v21  ;;  %v1711_v18 = vand.u32 2147483647, %v2654_v31  ;;  %v1709_v24 = vadd.f32 1.0, %v1708_v8  ;;  %v1183_v17 = vand.u32 2147483647, %v3471_v56 }
 0x2f2   :  { %v1704_v40 = vsel %vm1703_vm6, %v1701_v48, %v1698_v6  ;;  %2661 = vpow2.f32 %v1327_v10  ;;  %v1163_v20 = vand.u32 2147483647, %v3468_v27  ;;  %v3485_v61 = vadd.f32 %v918_v22, %v2951_v57 }
 0x2f3   :  { %v1992_v16 = vadd.f32 %v1704_v40, %v968_v12  ;;  %v2658_v15 = vpop.eup %2657  ;;  %2663 = vpow2.f32 %v1367_v46  ;;  %vm1033_vm8 = vcmp.ne.f32.partialorder %v3412_v0, %v3412_v0  ;;  %v1247_v36 = vsub.f32 0.0, %v1183_v17 }
 0x2f4   :  { %v1885_v47 = vadd.f32 1.0, %v2658_v15  ;;  %v1888_v33 = vmul.f32 -0.5, %v2658_v15  ;;  %v1227_v34 = vsub.f32 0.0, %v1163_v20  ;;  %vm3492_vm9 = vcmp.lt.f32.partialorder %v1711_v18, 0.0004427343 }
 0x2f5   :  { %v2056_v58 = vsel %vm1032_vm7, %v3388_v51, %v1992_v16  ;;  %v989_v51 = vmax.f32 %v3431_v28, 0.0  ;;  %v1710_v29 = vmul.f32 %v2654_v31, %v1709_v24  ;;  %vm1053_vm10 = vcmp.ne.f32.partialorder %v3431_v28, %v3431_v28 }
 0x2f6   :  { %2120 = vst [vmem:[#allocation8 + $0x118] sm:$0xff] %v2056_v58  ;;  %2665 = vlog2.f32 %v1885_v47  ;;  %v1889_v26 = vadd.f32 1.0, %v1888_v33  ;;  %v1329_v49 = vmul.f32 1.442695, %v1227_v34  ;;  %v1369_v41 = vmul.f32 1.442695, %v1247_v36 }
 0x2f7   :  { %v858_v25 = vpop.f32.mrf.mxu2  ;;  %v2660_v19 = vpop.eup %2659  ;;  %v1891_v53 = vand.u32 2147483647, %v2658_v15  ;;  %v1184_v45 = vand.u32 2147483647, %v3485_v61  ;;  %v970_v35 = vmax.f32 %v3442_v44, 0.0  ;;  %vm1034_vm12 = vcmp.ne.f32.partialorder %v3442_v44, %v3442_v44 }
 0x2f8   :  { %v3490_v7 = vadd.f32 %v858_v25, %v2951_v57  ;;  %v2662_v39 = vpop.eup %2661  ;;  %v1707_v38 = vmul.f32 0.6931472, %v2660_v19  ;;  %2667 = vpow2.f32 %v1329_v49  ;;  %v1890_v63 = vmul.f32 %v2658_v15, %v1889_v26  ;;  %v924_v49 = vpop.f32.mrf.mxu3 }
 0x2f9   :  { %v1714_v9 = vadd.f32 1.0, %v2662_v39  ;;  %v1717_v43 = vmul.f32 -0.5, %v2662_v39  ;;  %v2664_v5 = vpop.eup %2663  ;;  %v1720_v13 = vand.u32 2147483647, %v2662_v39  ;;  %vm3508_vm11 = vcmp.lt.f32.partialorder %v1891_v53, 0.0004427343 }
 0x2fa   :  { %v1713_v14 = vsel %vm3492_vm9, %v1710_v29, %v1707_v38  ;;  %v1164_v52 = vand.u32 2147483647, %v3490_v7  ;;  %v1894_v60 = vadd.f32 1.0, %v2664_v5  ;;  %v1897_v59 = vmul.f32 -0.5, %v2664_v5 }
 0x2fb   :  { %v1993_v54 = vadd.f32 %v1713_v14, %v969_v55  ;;  %2669 = vlog2.f32 %v1714_v9  ;;  %v1718_v1 = vadd.f32 1.0, %v1717_v43  ;;  %v1248_v50 = vsub.f32 0.0, %v1184_v45 }
 0x2fc   :  { %2671 = vpow2.f32 %v1369_v41  ;;  %v2666_v32 = vpop.eup %2665  ;;  %v1228_v2 = vsub.f32 0.0, %v1164_v52  ;;  %v990_v4 = vmax.f32 %v3457_v42, 0.0  ;;  %v1900_v21 = vand.u32 2147483647, %v2664_v5 }
 0x2fd   :  { %v2057_v31 = vsel %vm1033_vm8, %v3412_v0, %v1993_v54  ;;  %v1887_v3 = vmul.f32 0.6931472, %v2666_v32  ;;  %2673 = vlog2.f32 %v1894_v60  ;;  %vm1054_vm13 = vcmp.ne.f32.partialorder %v3457_v42, %v3457_v42 }
 0x2fe   :  { %2121 = vst [vmem:[#allocation8 + $0x120] sm:$0xff] %v2057_v31  ;;  %v1898_v6 = vadd.f32 1.0, %v1897_v59  ;;  %v1331_v0 = vmul.f32 1.442695, %v1228_v2  ;;  %v3518_v8 = vadd.f32 %v921_v62, %v2951_v57  ;;  %v2668_v10 = vpop.eup %2667  ;;  %v1719_v12 = vmul.f32 %v2662_v39, %v1718_v1 }
 0x2ff   :  { %v861_v23 = vpop.f32.mrf.mxu2  ;;  %v1893_v11 = vsel %vm3508_vm11, %v1890_v63, %v1887_v3  ;;  %vm3522_vm14 = vcmp.lt.f32.partialorder %v1720_v13, 0.0004427343  ;;  %v971_v40 = vmax.f32 %v3468_v27, 0.0  ;;  %v1723_v16 = vadd.f32 1.0, %v2668_v10 }
 0x300   :  { %v2013_v22 = vadd.f32 %v1893_v11, %v989_v51  ;;  %v1726_v18 = vmul.f32 -0.5, %v2668_v10  ;;  %v1371_v20 = vmul.f32 1.442695, %v1248_v50  ;;  %vm3527_vm15 = vcmp.lt.f32.partialorder %v1900_v21, 0.0004427343 }
 0x301   :  { %v2670_v46 = vpop.eup %2669  ;;  %2675 = vpow2.f32 %v1331_v0  ;;  %v3532_v17 = vadd.f32 %v861_v23, %v2951_v57  ;;  %v1899_v58 = vmul.f32 %v2664_v5, %v1898_v6  ;;  %v1185_v47 = vand.u32 2147483647, %v3518_v8 }
 0x302   :  { %v2672_v15 = vpop.eup %2671  ;;  %v1716_v55 = vmul.f32 0.6931472, %v2670_v46  ;;  %v2077_v25 = vsel %vm1053_vm10, %v3431_v28, %v2013_v22  ;;  %2677 = vlog2.f32 %v1723_v16  ;;  %v1729_v36 = vand.u32 2147483647, %v2668_v10 }
 0x303   :  { %v2674_v33 = vpop.eup %2673  ;;  %2141 = vst [vmem:[#allocation8 + $0x1c0] sm:$0xff] %v2077_v25  ;;  %v1903_v19 = vadd.f32 1.0, %v2672_v15  ;;  %v1906_v37 = vmul.f32 -0.5, %v2672_v15  ;;  %v1727_v38 = vadd.f32 1.0, %v1726_v18  ;;  %2679 = vpow2.f32 %v1371_v20 }
 0x304   :  { %v1722_v34 = vsel %vm3522_vm14, %v1719_v12, %v1716_v55  ;;  %v1896_v39 = vmul.f32 0.6931472, %v2674_v33  ;;  %vm1035_vm0 = vcmp.ne.f32.partialorder %v3468_v27, %v3468_v27  ;;  %v991_v28 = vmax.f32 %v3471_v56, 0.0 }
 0x305   :  { %v1994_v26 = vadd.f32 %v1722_v34, %v970_v35  ;;  %2681 = vlog2.f32 %v1903_v19  ;;  %v1165_v29 = vand.u32 2147483647, %v3532_v17  ;;  %vm1055_vm1 = vcmp.ne.f32.partialorder %v3471_v56, %v3471_v56 }
 0x306   :  { %v1902_v53 = vsel %vm3527_vm15, %v1899_v58, %v1896_v39  ;;  %v1907_v9 = vadd.f32 1.0, %v1906_v37  ;;  %v1909_v5 = vand.u32 2147483647, %v2672_v15  ;;  %v1249_v35 = vsub.f32 0.0, %v1185_v47  ;;  %v927_v37 = vpop.f32.mrf.mxu3 }
 0x307   :  { %v864_v51 = vpop.f32.mrf.mxu2  ;;  %v2058_v41 = vsel %vm1034_vm12, %v3442_v44, %v1994_v26  ;;  %v2676_v43 = vpop.eup %2675  ;;  %v2014_v45 = vadd.f32 %v1902_v53, %v990_v4  ;;  %v1229_v14 = vsub.f32 0.0, %v1165_v29  ;;  %v1728_v54 = vmul.f32 %v2668_v10, %v1727_v38 }
 0x308   :  { %2122 = vst [vmem:[#allocation8 + $0x128] sm:$0xff] %v2058_v41  ;;  %v2678_v52 = vpop.eup %2677  ;;  %vm3553_vm2 = vcmp.lt.f32.partialorder %v1729_v36, 0.0004427343  ;;  %v1732_v44 = vadd.f32 1.0, %v2676_v43  ;;  %v3558_v13 = vadd.f32 %v924_v49, %v2951_v57  ;;  %v1735_v59 = vmul.f32 -0.5, %v2676_v43 }
 0x309   :  { %v2078_v1 = vsel %vm1054_vm13, %v3457_v42, %v2014_v45  ;;  %v1725_v60 = vmul.f32 0.6931472, %v2678_v52  ;;  %v1333_v23 = vmul.f32 1.442695, %v1229_v14  ;;  %v2680_v62 = vpop.eup %2679  ;;  %v1908_v32 = vmul.f32 %v2672_v15, %v1907_v9 }
 0x30a   :  { %2142 = vst [vmem:[#allocation8 + $0x1c8] sm:$0xff] %v2078_v1  ;;  %2683 = vlog2.f32 %v1732_v44  ;;  %v1373_v31 = vmul.f32 1.442695, %v1249_v35  ;;  %v3565_v48 = vadd.f32 %v864_v51, %v2951_v57  ;;  %vm3569_vm3 = vcmp.lt.f32.partialorder %v1909_v5, 0.0004427343 }
 0x30b   :  { %v2682_v2 = vpop.eup %2681  ;;  %v1731_v50 = vsel %vm3553_vm2, %v1728_v54, %v1725_v60  ;;  %v1912_v42 = vadd.f32 1.0, %v2680_v62  ;;  %v1915_v4 = vmul.f32 -0.5, %v2680_v62  ;;  %v1738_v10 = vand.u32 2147483647, %v2676_v43 }
 0x30c   :  { %v1995_v6 = vadd.f32 %v1731_v50, %v971_v40  ;;  %v1905_v0 = vmul.f32 0.6931472, %v2682_v2  ;;  %2685 = vpow2.f32 %v1333_v23  ;;  %v1736_v11 = vadd.f32 1.0, %v1735_v59 }
 0x30d   :  { %2687 = vlog2.f32 %v1912_v42  ;;  %v1916_v12 = vadd.f32 1.0, %v1915_v4  ;;  %v1918_v30 = vand.u32 2147483647, %v2680_v62  ;;  %v1166_v16 = vand.u32 2147483647, %v3565_v48 }
 0x30e   :  { %v2059_v46 = vsel %vm1035_vm0, %v3468_v27, %v1995_v6  ;;  %v1911_v22 = vsel %vm3569_vm3, %v1908_v32, %v1905_v0  ;;  %2689 = vpow2.f32 %v1373_v31  ;;  %v972_v20 = vmax.f32 %v3490_v7, 0.0 }
 0x30f   :  { %v867_v21 = vpop.f32.mrf.mxu2  ;;  %2123 = vst [vmem:[#allocation8 + $0x130] sm:$0xff] %v2059_v46  ;;  %v2015_v40 = vadd.f32 %v1911_v22, %v991_v28  ;;  %v992_v15 = vmax.f32 %v3485_v61, 0.0  ;;  %v1230_v55 = vsub.f32 0.0, %v1166_v16  ;;  %v1186_v24 = vand.u32 2147483647, %v3558_v13 }
 0x310   :  { %v2684_v18 = vpop.eup %2683  ;;  %v1737_v58 = vmul.f32 %v2676_v43, %v1736_v11  ;;  %vm1739_vm4 = vcmp.lt.f32.partialorder %v1738_v10, 0.0004427343  ;;  %v1917_v33 = vmul.f32 %v2680_v62, %v1916_v12  ;;  %vm3587_vm5 = vcmp.lt.f32.partialorder %v1918_v30, 0.0004427343  ;;  %v930_v10 = vpop.f32.mrf.mxu3 }
 0x311   :  { %v2079_v27 = vsel %vm1055_vm1, %v3471_v56, %v2015_v40  ;;  %v1734_v25 = vmul.f32 0.6931472, %v2684_v18  ;;  %v1335_v36 = vmul.f32 1.442695, %v1230_v55  ;;  %v1250_v19 = vsub.f32 0.0, %v1186_v24 }
 0x312   :  { %v2686_v47 = vpop.eup %2685  ;;  %2143 = vst [vmem:[#allocation8 + $0x1d0] sm:$0xff] %v2079_v27  ;;  %v3592_v28 = vadd.f32 %v867_v21, %v2951_v57  ;;  %vm1036_vm6 = vcmp.ne.f32.partialorder %v3490_v7, %v3490_v7  ;;  %v3597_v43 = vadd.f32 %v927_v37, %v2951_v57  ;;  %vm1056_vm7 = vcmp.ne.f32.partialorder %v3485_v61, %v3485_v61 }
 0x313   :  { %v2688_v51 = vpop.eup %2687  ;;  %v1740_v26 = vsel %vm1739_vm4, %v1737_v58, %v1734_v25  ;;  %v1741_v39 = vadd.f32 1.0, %v2686_v47  ;;  %v1744_v38 = vmul.f32 -0.5, %v2686_v47  ;;  %2691 = vpow2.f32 %v1335_v36 }
 0x314   :  { %v2690_v29 = vpop.eup %2689  ;;  %v1996_v49 = vadd.f32 %v1740_v26, %v972_v20  ;;  %v1914_v41 = vmul.f32 0.6931472, %v2688_v51  ;;  %v1375_v53 = vmul.f32 1.442695, %v1250_v19  ;;  %v1167_v54 = vand.u32 2147483647, %v3592_v28 }
 0x315   :  { %2693 = vlog2.f32 %v1741_v39  ;;  %v1921_v9 = vadd.f32 1.0, %v2690_v29  ;;  %v1924_v14 = vmul.f32 -0.5, %v2690_v29  ;;  %v1745_v52 = vadd.f32 1.0, %v1744_v38 }
 0x316   :  { %v2060_v45 = vsel %vm1036_vm6, %v3490_v7, %v1996_v49  ;;  %v1920_v5 = vsel %vm3587_vm5, %v1917_v33, %v1914_v41  ;;  %v1747_v63 = vand.u32 2147483647, %v2686_v47  ;;  %v1927_v60 = vand.u32 2147483647, %v2690_v29 }
 0x317   :  { %v870_v56 = vpop.f32.mrf.mxu2  ;;  %2124 = vst [vmem:[#allocation8 + $0x138] sm:$0xff] %v2060_v45  ;;  %v2016_v35 = vadd.f32 %v1920_v5, %v992_v15  ;;  %2695 = vlog2.f32 %v1921_v9  ;;  %v1925_v44 = vadd.f32 1.0, %v1924_v14  ;;  %v1231_v7 = vsub.f32 0.0, %v1167_v54 }
 0x318   :  { %2697 = vpow2.f32 %v1375_v53  ;;  %v1187_v59 = vand.u32 2147483647, %v3597_v43  ;;  %v973_v62 = vmax.f32 %v3532_v17, 0.0  ;;  %vm1037_vm8 = vcmp.ne.f32.partialorder %v3532_v17, %v3532_v17 }
 0x319   :  { %v2080_v1 = vsel %vm1056_vm7, %v3485_v61, %v2016_v35  ;;  %v2692_v23 = vpop.eup %2691  ;;  %v993_v32 = vmax.f32 %v3518_v8, 0.0  ;;  %v3612_v31 = vadd.f32 %v870_v56, %v2951_v57  ;;  %v1746_v50 = vmul.f32 %v2686_v47, %v1745_v52 }
 0x31a   :  { %2144 = vst [vmem:[#allocation8 + $0x1d8] sm:$0xff] %v2080_v1  ;;  %vm1057_vm9 = vcmp.ne.f32.partialorder %v3518_v8, %v3518_v8  ;;  %v1750_v61 = vadd.f32 1.0, %v2692_v23  ;;  %v1337_v3 = vmul.f32 1.442695, %v1231_v7  ;;  %v1926_v21 = vmul.f32 %v2690_v29, %v1925_v44 }
 0x31b   :  { %v2694_v2 = vpop.eup %2693  ;;  %v1753_v6 = vmul.f32 -0.5, %v2692_v23  ;;  %v1251_v0 = vsub.f32 0.0, %v1187_v59  ;;  %vm1748_vm10 = vcmp.lt.f32.partialorder %v1747_v63, 0.0004427343  ;;  %vm3616_vm11 = vcmp.lt.f32.partialorder %v1927_v60, 0.0004427343 }
 0x31c   :  { %v1743_v4 = vmul.f32 0.6931472, %v2694_v2  ;;  %2699 = vlog2.f32 %v1750_v61  ;;  %v1168_v30 = vand.u32 2147483647, %v3612_v31  ;;  %v3622_v55 = vadd.f32 %v930_v10, %v2951_v57 }
 0x31d   :  { %v2696_v11 = vpop.eup %2695  ;;  %2701 = vpow2.f32 %v1337_v3  ;;  %v1377_v40 = vmul.f32 1.442695, %v1251_v0  ;;  %v1754_v27 = vadd.f32 1.0, %v1753_v6  ;;  %v1756_v33 = vand.u32 2147483647, %v2692_v23 }
 0x31e   :  { %v2698_v46 = vpop.eup %2697  ;;  %v1749_v22 = vsel %vm1748_vm10, %v1746_v50, %v1743_v4  ;;  %v1923_v16 = vmul.f32 0.6931472, %v2696_v11  ;;  %v1232_v25 = vsub.f32 0.0, %v1168_v30  ;;  %v1188_v39 = vand.u32 2147483647, %v3622_v55 }
 0x31f   :  { %v873_v42 = vpop.f32.mrf.mxu2  ;;  %v1997_v18 = vadd.f32 %v1749_v22, %v973_v62  ;;  %v1930_v20 = vadd.f32 1.0, %v2698_v46  ;;  %v1933_v15 = vmul.f32 -0.5, %v2698_v46  ;;  %2703 = vpow2.f32 %v1377_v40 }
 0x320   :  { %v1929_v24 = vsel %vm3616_vm11, %v1926_v21, %v1923_v16  ;;  %v1339_v36 = vmul.f32 1.442695, %v1232_v25  ;;  %v3631_v19 = vadd.f32 %v873_v42, %v2951_v57  ;;  %v1936_v26 = vand.u32 2147483647, %v2698_v46 }
 0x321   :  { %v2061_v58 = vsel %vm1037_vm8, %v3532_v17, %v1997_v18  ;;  %v2017_v47 = vadd.f32 %v1929_v24, %v993_v32  ;;  %2705 = vlog2.f32 %v1930_v20  ;;  %v1934_v34 = vadd.f32 1.0, %v1933_v15 }
 0x322   :  { %2125 = vst [vmem:[#allocation8 + $0x140] sm:$0xff] %v2061_v58  ;;  %v2700_v37 = vpop.eup %2699  ;;  %v974_v56 = vmax.f32 %v3565_v48, 0.0  ;;  %v1755_v49 = vmul.f32 %v2692_v23, %v1754_v27  ;;  %2707 = vpow2.f32 %v1339_v36  ;;  %vm1757_vm12 = vcmp.lt.f32.partialorder %v1756_v33, 0.0004427343 }
 0x323   :  { %v2081_v51 = vsel %vm1057_vm9, %v3518_v8, %v2017_v47  ;;  %v2702_v17 = vpop.eup %2701  ;;  %v1752_v29 = vmul.f32 0.6931472, %v2700_v37  ;;  %v1252_v9 = vsub.f32 0.0, %v1188_v39  ;;  %vm1038_vm13 = vcmp.ne.f32.partialorder %v3565_v48, %v3565_v48 }
 0x324   :  { %2145 = vst [vmem:[#allocation8 + $0x1e0] sm:$0xff] %v2081_v51  ;;  %v1759_v41 = vadd.f32 1.0, %v2702_v17  ;;  %v1762_v53 = vmul.f32 -0.5, %v2702_v17  ;;  %v1935_v5 = vmul.f32 %v2698_v46, %v1934_v34  ;;  %v1169_v14 = vand.u32 2147483647, %v3631_v19 }
 0x325   :  { %v2704_v45 = vpop.eup %2703  ;;  %v1758_v8 = vsel %vm1757_vm12, %v1755_v49, %v1752_v29  ;;  %v994_v54 = vmax.f32 %v3558_v13, 0.0  ;;  %vm3643_vm14 = vcmp.lt.f32.partialorder %v1936_v26, 0.0004427343  ;;  %vm1058_vm15 = vcmp.ne.f32.partialorder %v3558_v13, %v3558_v13 }
 0x326   :  { %v1998_v52 = vadd.f32 %v1758_v8, %v974_v56  ;;  %2709 = vlog2.f32 %v1759_v41  ;;  %v1939_v1 = vadd.f32 1.0, %v2704_v45  ;;  %v1942_v60 = vmul.f32 -0.5, %v2704_v45 }
 0x327   :  { %v876_v38 = vpop.f32.mrf.mxu2  ;;  %v2706_v35 = vpop.eup %2705  ;;  %v1763_v59 = vadd.f32 1.0, %v1762_v53  ;;  %v1379_v23 = vmul.f32 1.442695, %v1252_v9  ;;  %v1233_v62 = vsub.f32 0.0, %v1169_v14  ;;  %v1765_v50 = vand.u32 2147483647, %v2702_v17 }
 0x328   :  { %v1932_v44 = vmul.f32 0.6931472, %v2706_v35  ;;  %v2062_v7 = vsel %vm1038_vm13, %v3565_v48, %v1998_v52  ;;  %v2708_v32 = vpop.eup %2707  ;;  %2711 = vlog2.f32 %v1939_v1  ;;  %v3653_v61 = vadd.f32 %v876_v38, %v2951_v57 }
 0x329   :  { %2126 = vst [vmem:[#allocation8 + $0x148] sm:$0xff] %v2062_v7  ;;  %v1943_v42 = vadd.f32 1.0, %v1942_v60  ;;  %v1768_v4 = vadd.f32 1.0, %v2708_v32  ;;  %v1771_v21 = vmul.f32 -0.5, %v2708_v32  ;;  %v1945_v0 = vand.u32 2147483647, %v2704_v45 }
 0x32a   :  { %v1938_v2 = vsel %vm3643_vm14, %v1935_v5, %v1932_v44  ;;  %2713 = vpow2.f32 %v1379_v23  ;;  %v1341_v48 = vmul.f32 1.442695, %v1233_v62  ;;  %v1764_v12 = vmul.f32 %v2702_v17, %v1763_v59 }
 0x32b   :  { %v2018_v3 = vadd.f32 %v1938_v2, %v994_v54  ;;  %2715 = vlog2.f32 %v1768_v4  ;;  %v1772_v46 = vadd.f32 1.0, %v1771_v21  ;;  %v1170_v22 = vand.u32 2147483647, %v3653_v61 }
 0x32c   :  { %v2710_v10 = vpop.eup %2709  ;;  %2717 = vpow2.f32 %v1341_v48  ;;  %v975_v16 = vmax.f32 %v3592_v28, 0.0  ;;  %vm1766_vm0 = vcmp.lt.f32.partialorder %v1765_v50, 0.0004427343  ;;  %v995_v40 = vmax.f32 %v3597_v43, 0.0 }
 0x32d   :  { %v2082_v11 = vsel %vm1058_vm15, %v3558_v13, %v2018_v3  ;;  %v1761_v30 = vmul.f32 0.6931472, %v2710_v10  ;;  %v1944_v18 = vmul.f32 %v2704_v45, %v1943_v42  ;;  %vm3662_vm1 = vcmp.lt.f32.partialorder %v1945_v0, 0.0004427343 }
 0x32e   :  { %2146 = vst [vmem:[#allocation8 + $0x1e8] sm:$0xff] %v2082_v11  ;;  %v2712_v20 = vpop.eup %2711  ;;  %v1234_v13 = vsub.f32 0.0, %v1170_v22  ;;  %v1774_v47 = vand.u32 2147483647, %v2708_v32  ;;  %vm1039_vm2 = vcmp.ne.f32.partialorder %v3592_v28, %v3592_v28  ;;  %vm1059_vm3 = vcmp.ne.f32.partialorder %v3597_v43, %v3597_v43 }
 0x32f   :  { %v879_v6 = vpop.f32.mrf.mxu2  ;;  %v1767_v15 = vsel %vm1766_vm0, %v1764_v12, %v1761_v30  ;;  %v1941_v58 = vmul.f32 0.6931472, %v2712_v20  ;;  %v1773_v34 = vmul.f32 %v2708_v32, %v1772_v46  ;;  %v976_v41 = vmax.f32 %v3612_v31, 0.0 }
 0x330   :  { %v3667_v27 = vadd.f32 %v879_v6, %v2951_v57  ;;  %v1999_v25 = vadd.f32 %v1767_v15, %v975_v16  ;;  %v2714_v33 = vpop.eup %2713  ;;  %v1343_v36 = vmul.f32 1.442695, %v1234_v13  ;;  %vm1775_vm4 = vcmp.lt.f32.partialorder %v1774_v47, 0.0004427343 }
 0x331   :  { %v2716_v37 = vpop.eup %2715  ;;  %v1947_v26 = vsel %vm3662_vm1, %v1944_v18, %v1941_v58  ;;  %v1948_v39 = vadd.f32 1.0, %v2714_v33  ;;  %v1951_v38 = vmul.f32 -0.5, %v2714_v33  ;;  %v1954_v35 = vand.u32 2147483647, %v2714_v33 }
 0x332   :  { %v2063_v51 = vsel %vm1039_vm2, %v3592_v28, %v1999_v25  ;;  %v2718_v17 = vpop.eup %2717  ;;  %v2019_v56 = vadd.f32 %v1947_v26, %v995_v40  ;;  %v1770_v29 = vmul.f32 0.6931472, %v2716_v37  ;;  %2719 = vpow2.f32 %v1343_v36 }
 0x333   :  { %2127 = vst [vmem:[#allocation8 + $0x150] sm:$0xff] %v2063_v51  ;;  %v1171_v49 = vand.u32 2147483647, %v3667_v27  ;;  %2721 = vlog2.f32 %v1948_v39  ;;  %v1777_v53 = vadd.f32 1.0, %v2718_v17  ;;  %v1952_v8 = vadd.f32 1.0, %v1951_v38 }
 0x334   :  { %v2083_v28 = vsel %vm1059_vm3, %v3597_v43, %v2019_v56  ;;  %v1776_v45 = vsel %vm1775_vm4, %v1773_v34, %v1770_v29  ;;  %v1780_v5 = vmul.f32 -0.5, %v2718_v17  ;;  %vm1040_vm5 = vcmp.ne.f32.partialorder %v3612_v31, %v3612_v31 }
 0x335   :  { %2147 = vst [vmem:[#allocation8 + $0x1f0] sm:$0xff] %v2083_v28  ;;  %v2000_v14 = vadd.f32 %v1776_v45, %v976_v41  ;;  %2723 = vlog2.f32 %v1777_v53  ;;  %v1235_v52 = vsub.f32 0.0, %v1171_v49  ;;  %v1953_v1 = vmul.f32 %v2714_v33, %v1952_v8 }
 0x336   :  { %v1781_v43 = vadd.f32 1.0, %v1780_v5  ;;  %v996_v23 = vmax.f32 %v3622_v55, 0.0  ;;  %vm1955_vm6 = vcmp.lt.f32.partialorder %v1954_v35, 0.0004427343  ;;  %v1783_v62 = vand.u32 2147483647, %v2718_v17 }
 0x337   :  { %v882_v9 = vpop.f32.mrf.mxu2  ;;  %v2064_v63 = vsel %vm1040_vm5, %v3612_v31, %v2000_v14  ;;  %v1345_v60 = vmul.f32 1.442695, %v1235_v52  ;;  %vm1060_vm7 = vcmp.ne.f32.partialorder %v3622_v55, %v3622_v55  ;;  %v977_v0 = vmax.f32 %v3631_v19, 0.0 }
 0x338   :  { %v3685_v54 = vadd.f32 %v882_v9, %v2951_v57  ;;  %v2720_v44 = vpop.eup %2719  ;;  %2128 = vst [vmem:[#allocation8 + $0x158] sm:$0xff] %v2064_v63  ;;  %v1782_v4 = vmul.f32 %v2718_v17, %v1781_v43  ;;  %vm1784_vm8 = vcmp.lt.f32.partialorder %v1783_v62, 0.0004427343  ;;  %vm1041_vm9 = vcmp.ne.f32.partialorder %v3631_v19, %v3631_v19 }
 0x339   :  { %v2722_v59 = vpop.eup %2721  ;;  %v1786_v32 = vadd.f32 1.0, %v2720_v44  ;;  %v1789_v50 = vmul.f32 -0.5, %v2720_v44  ;;  %2725 = vpow2.f32 %v1345_v60  ;;  %v1792_v30 = vand.u32 2147483647, %v2720_v44 }
 0x33a   :  { %v1172_v7 = vand.u32 2147483647, %v3685_v54  ;;  %v1950_v2 = vmul.f32 0.6931472, %v2722_v59  ;;  %v978_v24 = vmax.f32 %v3653_v61, 0.0  ;;  %vm1042_vm11 = vcmp.ne.f32.partialorder %v3653_v61, %v3653_v61 }
 0x33b   :  { %v2724_v3 = vpop.eup %2723  ;;  %2727 = vlog2.f32 %v1786_v32  ;;  %v1790_v10 = vadd.f32 1.0, %v1789_v50  ;;  %vm1793_vm10 = vcmp.lt.f32.partialorder %v1792_v30, 0.0004427343  ;;  %v979_v39 = vmax.f32 %v3667_v27, 0.0 }
 0x33c   :  { %v1236_v57 = vsub.f32 0.0, %v1172_v7  ;;  %v1956_v31 = vsel %vm1955_vm6, %v1953_v1, %v1950_v2  ;;  %v1779_v42 = vmul.f32 0.6931472, %v2724_v3  ;;  %vm1043_vm13 = vcmp.ne.f32.partialorder %v3667_v27, %v3667_v27 }
 0x33d   :  { %v2020_v6 = vadd.f32 %v1956_v31, %v996_v23  ;;  %v1791_v20 = vmul.f32 %v2720_v44, %v1790_v10  ;;  %v980_v53 = vmax.f32 %v3685_v54, 0.0  ;;  %vm1044_vm15 = vcmp.ne.f32.partialorder %v3685_v54, %v3685_v54 }
 0x33e   :  { %v1347_v21 = vmul.f32 1.442695, %v1236_v57  ;;  %v1785_v48 = vsel %vm1784_vm8, %v1782_v4, %v1779_v42 }
 0x33f   :  { %v2084_v11 = vsel %vm1060_vm7, %v3622_v55, %v2020_v6  ;;  %v2001_v12 = vadd.f32 %v1785_v48, %v977_v0  ;;  %v2726_v46 = vpop.eup %2725 }
 0x340   :  { %2729 = vpow2.f32 %v1347_v21  ;;  %2148 = vst [vmem:[#allocation8 + $0x1f8] sm:$0xff] %v2084_v11  ;;  %v1795_v40 = vadd.f32 1.0, %v2726_v46  ;;  %v1798_v15 = vmul.f32 -0.5, %v2726_v46  ;;  %v1801_v34 = vand.u32 2147483647, %v2726_v46 }
 0x341   :  { %v2728_v22 = vpop.eup %2727  ;;  %v2065_v16 = vsel %vm1041_vm9, %v3631_v19, %v2001_v12 }
 0x342   :  { %2129 = vst [vmem:[#allocation8 + $0x160] sm:$0xff] %v2065_v16  ;;  %v1788_v18 = vmul.f32 0.6931472, %v2728_v22  ;;  %2731 = vlog2.f32 %v1795_v40  ;;  %v1799_v47 = vadd.f32 1.0, %v1798_v15  ;;  %vm1802_vm12 = vcmp.lt.f32.partialorder %v1801_v34, 0.0004427343 }
 0x344   :  { %v1794_v13 = vsel %vm1793_vm10, %v1791_v20, %v1788_v18  ;;  %v1800_v51 = vmul.f32 %v2726_v46, %v1799_v47 }
 0x345   :  { %v2002_v25 = vadd.f32 %v1794_v13, %v978_v24 }
 0x346   :  { %v2730_v55 = vpop.eup %2729 }
 0x347   :  { %v1804_v58 = vadd.f32 1.0, %v2730_v55  ;;  %v1807_v33 = vmul.f32 -0.5, %v2730_v55  ;;  %v2066_v19 = vsel %vm1042_vm11, %v3653_v61, %v2002_v25  ;;  %v1810_v38 = vand.u32 2147483647, %v2730_v55 }
 0x348   :  { %2130 = vst [vmem:[#allocation8 + $0x168] sm:$0xff] %v2066_v19  ;;  %v2732_v36 = vpop.eup %2731 }
 0x349   :  { %2733 = vlog2.f32 %v1804_v58  ;;  %v1797_v37 = vmul.f32 0.6931472, %v2732_v36  ;;  %v1808_v26 = vadd.f32 1.0, %v1807_v33  ;;  %vm1811_vm14 = vcmp.lt.f32.partialorder %v1810_v38, 0.0004427343 }
 0x34b   :  { %v1803_v17 = vsel %vm1802_vm12, %v1800_v51, %v1797_v37  ;;  %v1809_v41 = vmul.f32 %v2730_v55, %v1808_v26 }
 0x34c   :  { %v2003_v29 = vadd.f32 %v1803_v17, %v979_v39 }
 0x34e   :  { %v2067_v61 = vsel %vm1043_vm13, %v3667_v27, %v2003_v29 }
 0x34f   :  { %v2734_v56 = vpop.eup %2733  ;;  %2131 = vst [vmem:[#allocation8 + $0x170] sm:$0xff] %v2067_v61 }
 0x350   :  { %v1806_v49 = vmul.f32 0.6931472, %v2734_v56 }
 0x352   :  { %v1812_v9 = vsel %vm1811_vm14, %v1809_v41, %v1806_v49 }
 0x353   :  { %v2004_v28 = vadd.f32 %v1812_v9, %v980_v53 }
 0x355   :  { %v2068_v45 = vsel %vm1044_vm15, %v3685_v54, %v2004_v28 }
 0x356   :  { %2132 = vst [vmem:[#allocation8 + $0x178] sm:$0xff] %v2068_v45 }
 0x357   :  { %2161 = dma.vmem_to_hbm [thread:$0]  %s2154_s27, 8192, %s2156_s30, [#allocation4], %s2838_s20, %s2838_s20, %s2839_s21  }
 0x358   :  { %2835 = dma.done.wait [#allocation4], 8192  }
 0x359   :  { %2836 = vsyncadd [#allocation4], 4294959104 }
 0x35a   :  { %2166 = vsyncpa [#allocation3], 1 }
 0x35b   :  { %2167 = vsyncpa [#allocation6], 1 }
 0x35c   :  { %2168 = vsyncpa [#allocation4], 1 }

</bundles_post_ra>
